<compile_context>
chip_gen: v6e
topology: v6e:2x2x1
jax: 0.10.0
libtpu: 0.0.40
codegen_flags: <defaults>
</compile_context>

<pallas_src>
import jax
import jax.numpy as jnp
from jax.experimental import pallas as pl
from jax.experimental.pallas import tpu as pltpu


def _round_up(x, m):
    return (x + m - 1) // m * m


_VMEM_LIMIT = 32 * 1024 * 1024  # explicit; safe on v5e/v6e/v7x, >> actual use


# ---------------------------------------------------------------------------
# Pallas kernel: one image's conv-as-matmul  relu(X @ W + b).
# X block is (1, R, K) bf16 (im2col patches of one image), W is resident bf16,
# accumulation / bias / ReLU in f32, store bf16.
# ---------------------------------------------------------------------------
def _conv_linear_kernel(x_ref, w_ref, b_ref, o_ref):
    x = x_ref[0]                                             # (R, K) bf16
    acc = jnp.dot(x, w_ref[...], preferred_element_type=jnp.float32)
    acc = acc + b_ref[...]                                   # (1, N) broadcasts
    o_ref[0] = jnp.maximum(acc, 0.0).astype(o_ref.dtype)


def conv_linear_pallas(x, w, b2d):
    """y = relu(x @ w + b).  x:(B,R,K) bf16, w:(K,N) bf16, b2d:(1,N) f32."""
    B, R, K = x.shape
    K2, N = w.shape
    assert K == K2, (K, K2)
    return pl.pallas_call(
        _conv_linear_kernel,
        out_shape=jax.ShapeDtypeStruct((B, R, N), jnp.bfloat16),
        grid_spec=pltpu.PrefetchScalarGridSpec(
            num_scalar_prefetch=0,
            grid=(B,),
            in_specs=[
                pl.BlockSpec((1, R, K), lambda b: (b, 0, 0)),  # streamed rows
                pl.BlockSpec((K, N), lambda b: (0, 0)),        # resident weight
                pl.BlockSpec((1, N), lambda b: (0, 0)),        # resident bias
            ],
            out_specs=pl.BlockSpec((1, R, N), lambda b: (b, 0, 0)),
        ),
        compiler_params=pltpu.CompilerParams(
            dimension_semantics=("parallel",),
            vmem_limit_bytes=_VMEM_LIMIT),
    )(x, w, b2d)


# ---------------------------------------------------------------------------
# Fused fc1(+ReLU) -> fc2 kernel (weights resident, rows streamed per image).
# ---------------------------------------------------------------------------
def _mlp_kernel(x_ref, w1_ref, b1_ref, w2_ref, b2_ref, o_ref):
    x = x_ref[0]                                             # (1, 3136) bf16
    h = jnp.dot(x, w1_ref[...], preferred_element_type=jnp.float32)
    h = jnp.maximum(h + b1_ref[...], 0.0)
    o = jnp.dot(h.astype(jnp.bfloat16), w2_ref[...],
                preferred_element_type=jnp.float32)
    o_ref[0] = (o + b2_ref[...]).astype(o_ref.dtype)


def mlp_pallas(x, w1, b1, w2, b2):
    """x:(B,1,K) bf16 -> logits (B,1,N) f32, N lane-dense (padded to 128)."""
    B, _, K = x.shape
    K2, H = w1.shape
    H2, N = w2.shape
    assert K == K2 and H == H2
    return pl.pallas_call(
        _mlp_kernel,
        out_shape=jax.ShapeDtypeStruct((B, 1, N), jnp.float32),
        grid_spec=pltpu.PrefetchScalarGridSpec(
            num_scalar_prefetch=0,
            grid=(B,),
            in_specs=[
                pl.BlockSpec((1, 1, K), lambda b: (b, 0, 0)),
                pl.BlockSpec((K, H), lambda b: (0, 0)),
                pl.BlockSpec((1, H), lambda b: (0, 0)),
                pl.BlockSpec((H, N), lambda b: (0, 0)),
                pl.BlockSpec((1, N), lambda b: (0, 0)),
            ],
            out_specs=pl.BlockSpec((1, 1, N), lambda b: (b, 0, 0)),
        ),
        compiler_params=pltpu.CompilerParams(
            dimension_semantics=("parallel",),
            vmem_limit_bytes=_VMEM_LIMIT),
    )(x, w1, b1, w2, b2)


# ---------------------------------------------------------------------------
# Glue: im2col for a stride-s, kernel-k, no-padding conv (NHWC input, bf16).
# Patch feature ordering is (kh, kw, cin), matching the weight matrices below.
# ---------------------------------------------------------------------------
def im2col(x_nhwc, k, s):
    B, H, W, C = x_nhwc.shape
    OH = (H - k) // s + 1
    OW = (W - k) // s + 1
    cols = []
    for i in range(k):
        for j in range(k):
            cols.append(x_nhwc[:, i:i + s * OH:s, j:j + s * OW:s, :])
    patches = jnp.concatenate(cols, axis=-1)  # (B, OH, OW, k*k*C)
    return patches, OH, OW


# ---------------------------------------------------------------------------
# Deterministic parameter initialization (Kaiming-normal-like for weights,
# small uniform for biases), mirroring the PyTorch module's shapes.
# ---------------------------------------------------------------------------
def init_params(key, action_space_size):
    def kaiming_conv(k, cout, cin, kh, kw):
        fan_in = cin * kh * kw
        std = (2.0 / fan_in) ** 0.5
        return jax.random.normal(k, (cout, cin, kh, kw), jnp.float32) * std

    def kaiming_fc(k, out_f, in_f):
        std = (2.0 / in_f) ** 0.5
        return jax.random.normal(k, (out_f, in_f), jnp.float32) * std

    def bias(k, n, fan_in):
        bound = 1.0 / (fan_in ** 0.5)
        return jax.random.uniform(k, (n,), jnp.float32, -bound, bound)

    ks = jax.random.split(key, 10)
    return {
        "conv1_w": kaiming_conv(ks[0], 32, 4, 8, 8),
        "conv1_b": bias(ks[1], 32, 4 * 8 * 8),
        "conv2_w": kaiming_conv(ks[2], 64, 32, 4, 4),
        "conv2_b": bias(ks[3], 64, 32 * 4 * 4),
        "conv3_w": kaiming_conv(ks[4], 64, 64, 3, 3),
        "conv3_b": bias(ks[5], 64, 64 * 3 * 3),
        "fc1_w": kaiming_fc(ks[6], 512, 3136),
        "fc1_b": bias(ks[7], 512, 3136),
        "fc2_w": kaiming_fc(ks[8], action_space_size, 512),
        "fc2_b": bias(ks[9], action_space_size, 512),
    }


# ---------------------------------------------------------------------------
# One-time weight preparation (hoisted out of the jitted forward).
# ---------------------------------------------------------------------------
def prepare_params(params):
    def conv_mat(w):  # (Cout, Cin, KH, KW) -> (KH*KW*Cin, Cout)
        cout = w.shape[0]
        return jnp.transpose(w, (2, 3, 1, 0)).reshape(-1, cout)

    # Fold the x/255 input scaling into conv1's weights (bias unchanged).
    c1w = (conv_mat(params["conv1_w"]) * (1.0 / 255.0)).astype(jnp.bfloat16)
    c2w = conv_mat(params["conv2_w"]).astype(jnp.bfloat16)
    c3w = conv_mat(params["conv3_w"]).astype(jnp.bfloat16)

    # fc1: torch flattens NCHW (column index = c*49 + h*7 + w); our conv3
    # output rows are already in (h, w, c) order, so permute fc1's input rows
    # to HWC once here instead of transposing activations every forward.
    w1 = params["fc1_w"].reshape(512, 64, 7, 7)              # (out, c, h, w)
    w1 = jnp.transpose(w1, (2, 3, 1, 0)).reshape(3136, 512)  # (h*w*c, out)
    w1 = w1.astype(jnp.bfloat16)

    # fc2: transpose to (512, A) and zero-pad N up to a lane-dense 128.
    w2 = params["fc2_w"].T
    n_act = w2.shape[1]
    n_pad = _round_up(max(n_act, 1), 128)
    w2p = jnp.zeros((512, n_pad), jnp.float32).at[:, :n_act].set(w2)
    w2p = w2p.astype(jnp.bfloat16)
    b2p = jnp.zeros((1, n_pad), jnp.float32).at[0, :n_act].set(params["fc2_b"])

    return {
        "conv1_w": c1w, "conv1_b": params["conv1_b"].reshape(1, -1),
        "conv2_w": c2w, "conv2_b": params["conv2_b"].reshape(1, -1),
        "conv3_w": c3w, "conv3_b": params["conv3_b"].reshape(1, -1),
        "fc1_w": w1, "fc1_b": params["fc1_b"].reshape(1, -1),
        "fc2_w": w2p, "fc2_b": b2p,
    }


# ---------------------------------------------------------------------------
# Forward pass (matches the PyTorch module's forward semantics).
# ---------------------------------------------------------------------------
def forward(x_nchw, p, *, n_actions):
    B = x_nchw.shape[0]
    # Cast once to bf16 (frame values 0-255 are exact), then NCHW -> NHWC.
    x = jnp.transpose(x_nchw.astype(jnp.bfloat16), (0, 2, 3, 1))

    # conv1: 4->32, k=8, s=4, ReLU (x/255 folded into the weights).
    pat, oh, ow = im2col(x, 8, 4)
    y = conv_linear_pallas(pat.reshape(B, oh * ow, -1), p["conv1_w"],
                           p["conv1_b"])
    x = y.reshape(B, oh, ow, 32)

    # conv2: 32->64, k=4, s=2, ReLU.
    pat, oh, ow = im2col(x, 4, 2)
    y = conv_linear_pallas(pat.reshape(B, oh * ow, -1), p["conv2_w"],
                           p["conv2_b"])
    x = y.reshape(B, oh, ow, 64)

    # conv3: 64->64, k=3, s=1, ReLU.
    pat, oh, ow = im2col(x, 3, 1)
    y = conv_linear_pallas(pat.reshape(B, oh * ow, -1), p["conv3_w"],
                           p["conv3_b"])

    # (B, 49, 64) -> (B, 1, 3136): already the HWC flatten that the permuted
    # fc1 weight expects (no runtime transpose, same row-major bytes).
    x = y.reshape(B, 1, oh * ow * 64)

    # Fused fc1(+ReLU) -> fc2 in a single kernel (lane-dense padded output).
    out = mlp_pallas(x, p["fc1_w"], p["fc1_b"], p["fc2_w"], p["fc2_b"])
    return out.reshape(B, -1)[:, :n_actions]


# ---------------------------------------------------------------------------
# Pure-JAX f32 reference (mirrors the PyTorch forward) for tolerance testing.
# ---------------------------------------------------------------------------
def forward_reference(x_nchw, params):
    x = x_nchw / 255.0

    def conv(x, w, b, s):
        y = jax.lax.conv_general_dilated(
            x, w, (s, s), "VALID",
            dimension_numbers=("NCHW", "OIHW", "NCHW"))
        return jax.nn.relu(y + b[None, :, None, None])

    x = conv(x, params["conv1_w"], params["conv1_b"], 4)
    x = conv(x, params["conv2_w"], params["conv2_b"], 2)
    x = conv(x, params["conv3_w"], params["conv3_b"], 1)
    x = x.reshape(x.shape[0], -1)                 # NCHW flatten (torch order)
    x = jax.nn.relu(x @ params["fc1_w"].T + params["fc1_b"])
    return x @ params["fc2_w"].T + params["fc2_b"]


if __name__ == "__main__":
    ACTION_SPACE = 6
    OBS_SPACE = (4, 84, 84)   # fc1 expects 3136 = 64*7*7, which fixes 84x84.
    BATCH = 2

    key = jax.random.PRNGKey(0)
    k_params, k_x = jax.random.split(key)
    raw_params = init_params(k_params, ACTION_SPACE)
    prepared = prepare_params(raw_params)          # hoisted: runs once

    # Synthetic "frame" input in [0, 255] (float32), NCHW like PyTorch.
    x = jax.random.uniform(k_x, (BATCH,) + OBS_SPACE, jnp.float32,
                           minval=0.0, maxval=255.0)

    fwd = jax.jit(forward, static_argnames=("n_actions",))
    out = fwd(x, prepared, n_actions=ACTION_SPACE)
    out = jax.block_until_ready(out)

    assert out.shape == (BATCH, ACTION_SPACE), out.shape
    assert out.dtype == jnp.float32

    # Loose tolerance check against the f32 reference (bf16 weights/activations
    # give ~1e-2 relative error; fine for DQN).
    ref = jax.block_until_ready(forward_reference(x, raw_params))
    rel_err = float(jnp.max(jnp.abs(out - ref)) /
                    jnp.maximum(jnp.max(jnp.abs(ref)), 1.0))
    assert rel_err < 0.1, f"relative error too large: {rel_err}"

    print("KERNEL_OK")
</pallas_src>

<mosaic_0001>
module attributes {stable_mosaic.version = 11 : i64} {
  func.func @_conv_linear_kernel(%arg0: i32, %arg1: memref<1x400x256xbf16, #tpu.memory_space<vmem>>, %arg2: memref<256x32xbf16, #tpu.memory_space<vmem>>, %arg3: memref<1x32xf32, #tpu.memory_space<vmem>>, %arg4: memref<1x400x32xbf16, #tpu.memory_space<vmem>>) attributes {dimension_semantics = [#tpu.dimension_semantics<parallel>], iteration_bounds = array<i64: 2>, scalar_prefetch = 0 : i64, scratch_operands = 0 : i64, tpu.core_type = #tpu.core_type<tc>, window_params = [{transform_indices = @transform_0, window_bounds = array<i64: 1, 400, 256>}, {pipeline_mode = #tpu.pipeline_mode<synchronous>, transform_indices = @transform_1, window_bounds = array<i64: 256, 32>}, {pipeline_mode = #tpu.pipeline_mode<synchronous>, transform_indices = @transform_2, window_bounds = array<i64: 1, 32>}, {transform_indices = @transform_3, window_bounds = array<i64: 1, 400, 32>}]} {
    %c0 = arith.constant 0 : index
    %c0_0 = arith.constant 0 : index
    %c0_1 = arith.constant 0 : index
    %0 = vector.load %arg1[%c0, %c0_0, %c0_1] : memref<1x400x256xbf16, #tpu.memory_space<vmem>>, vector<1x400x256xbf16>
    %1 = vector.shape_cast %0 : vector<1x400x256xbf16> to vector<400x256xbf16>
    %c0_2 = arith.constant 0 : index
    %c0_3 = arith.constant 0 : index
    %2 = vector.load %arg2[%c0_2, %c0_3] : memref<256x32xbf16, #tpu.memory_space<vmem>>, vector<256x32xbf16>
    %cst = arith.constant dense<0.000000e+00> : vector<400x32xf32>
    %3 = tpu.matmul %1, %2, %cst {dimension_numbers = #tpu.dot_dimension_numbers<[1], [0], [0], [1], [0, 0, 1, 1], [], []>} : vector<400x256xbf16>, vector<256x32xbf16>, vector<400x32xf32> -> vector<400x32xf32>
    %c0_4 = arith.constant 0 : index
    %c0_5 = arith.constant 0 : index
    %4 = vector.load %arg3[%c0_4, %c0_5] : memref<1x32xf32, #tpu.memory_space<vmem>>, vector<1x32xf32>
    %5 = vector.broadcast %4 : vector<1x32xf32> to vector<400x32xf32>
    %6 = arith.addf %3, %5 : vector<400x32xf32>
    %cst_6 = arith.constant 0.000000e+00 : f32
    %7 = vector.broadcast %cst_6 : f32 to vector<400x32xf32>
    %8 = arith.maximumf %6, %7 : vector<400x32xf32>
    %9 = arith.truncf %8 : vector<400x32xf32> to vector<400x32xbf16>
    %c0_7 = arith.constant 0 : index
    %c0_8 = arith.constant 0 : index
    %c0_9 = arith.constant 0 : index
    %10 = vector.load %arg4[%c0_7, %c0_8, %c0_9] : memref<1x400x32xbf16, #tpu.memory_space<vmem>>, vector<1x400x32xbf16>
    %11 = vector.shape_cast %10 : vector<1x400x32xbf16> to vector<400x32xbf16>
    %12 = vector.shape_cast %9 : vector<400x32xbf16> to vector<1x400x32xbf16>
    tpu.vector_store %arg4[%c0_7, %c0_8, %c0_9], %12 {strides = array<i32>} : memref<1x400x32xbf16, #tpu.memory_space<vmem>>, vector<1x400x32xbf16>,
    return
  }
  func.func @transform_0(%arg0: i32) -> (i32, i32, i32) {
    %c0_i32 = arith.constant 0 : i32
    %c0_i32_0 = arith.constant 0 : i32
    %c0_i32_1 = arith.constant 0 : i32
    return %arg0, %c0_i32, %c0_i32_0 : i32, i32, i32
  }
  func.func @transform_1(%arg0: i32) -> (i32, i32) {
    %c0_i32 = arith.constant 0 : i32
    %c0_i32_0 = arith.constant 0 : i32
    %c0_i32_1 = arith.constant 0 : i32
    return %c0_i32, %c0_i32_0 : i32, i32
  }
  func.func @transform_2(%arg0: i32) -> (i32, i32) {
    %c0_i32 = arith.constant 0 : i32
    %c0_i32_0 = arith.constant 0 : i32
    %c0_i32_1 = arith.constant 0 : i32
    return %c0_i32, %c0_i32_0 : i32, i32
  }
  func.func @transform_3(%arg0: i32) -> (i32, i32, i32) {
    %c0_i32 = arith.constant 0 : i32
    %c0_i32_0 = arith.constant 0 : i32
    %c0_i32_1 = arith.constant 0 : i32
    return %arg0, %c0_i32, %c0_i32_0 : i32, i32, i32
  }
}

module attributes {stable_mosaic.version = 11 : i64} {
  func.func @_conv_linear_kernel(%arg0: i32, %arg1: memref<1x81x512xbf16, #tpu.memory_space<vmem>>, %arg2: memref<512x64xbf16, #tpu.memory_space<vmem>>, %arg3: memref<1x64xf32, #tpu.memory_space<vmem>>, %arg4: memref<1x81x64xbf16, #tpu.memory_space<vmem>>) attributes {dimension_semantics = [#tpu.dimension_semantics<parallel>], iteration_bounds = array<i64: 2>, scalar_prefetch = 0 : i64, scratch_operands = 0 : i64, tpu.core_type = #tpu.core_type<tc>, window_params = [{transform_indices = @transform_0, window_bounds = array<i64: 1, 81, 512>}, {pipeline_mode = #tpu.pipeline_mode<synchronous>, transform_indices = @transform_1, window_bounds = array<i64: 512, 64>}, {pipeline_mode = #tpu.pipeline_mode<synchronous>, transform_indices = @transform_2, window_bounds = array<i64: 1, 64>}, {transform_indices = @transform_3, window_bounds = array<i64: 1, 81, 64>}]} {
    %c0 = arith.constant 0 : index
    %c0_0 = arith.constant 0 : index
    %c0_1 = arith.constant 0 : index
    %0 = vector.load %arg1[%c0, %c0_0, %c0_1] : memref<1x81x512xbf16, #tpu.memory_space<vmem>>, vector<1x81x512xbf16>
    %1 = vector.shape_cast %0 : vector<1x81x512xbf16> to vector<81x512xbf16>
    %c0_2 = arith.constant 0 : index
    %c0_3 = arith.constant 0 : index
    %2 = vector.load %arg2[%c0_2, %c0_3] : memref<512x64xbf16, #tpu.memory_space<vmem>>, vector<512x64xbf16>
    %cst = arith.constant dense<0.000000e+00> : vector<81x64xf32>
    %3 = tpu.matmul %1, %2, %cst {dimension_numbers = #tpu.dot_dimension_numbers<[1], [0], [0], [1], [0, 0, 1, 1], [], []>} : vector<81x512xbf16>, vector<512x64xbf16>, vector<81x64xf32> -> vector<81x64xf32>
    %c0_4 = arith.constant 0 : index
    %c0_5 = arith.constant 0 : index
    %4 = vector.load %arg3[%c0_4, %c0_5] : memref<1x64xf32, #tpu.memory_space<vmem>>, vector<1x64xf32>
    %5 = vector.broadcast %4 : vector<1x64xf32> to vector<81x64xf32>
    %6 = arith.addf %3, %5 : vector<81x64xf32>
    %cst_6 = arith.constant 0.000000e+00 : f32
    %7 = vector.broadcast %cst_6 : f32 to vector<81x64xf32>
    %8 = arith.maximumf %6, %7 : vector<81x64xf32>
    %9 = arith.truncf %8 : vector<81x64xf32> to vector<81x64xbf16>
    %c0_7 = arith.constant 0 : index
    %c0_8 = arith.constant 0 : index
    %c0_9 = arith.constant 0 : index
    %10 = vector.load %arg4[%c0_7, %c0_8, %c0_9] : memref<1x81x64xbf16, #tpu.memory_space<vmem>>, vector<1x81x64xbf16>
    %11 = vector.shape_cast %10 : vector<1x81x64xbf16> to vector<81x64xbf16>
    %12 = vector.shape_cast %9 : vector<81x64xbf16> to vector<1x81x64xbf16>
    tpu.vector_store %arg4[%c0_7, %c0_8, %c0_9], %12 {strides = array<i32>} : memref<1x81x64xbf16, #tpu.memory_space<vmem>>, vector<1x81x64xbf16>,
    return
  }
  func.func @transform_0(%arg0: i32) -> (i32, i32, i32) {
    %c0_i32 = arith.constant 0 : i32
    %c0_i32_0 = arith.constant 0 : i32
    %c0_i32_1 = arith.constant 0 : i32
    return %arg0, %c0_i32, %c0_i32_0 : i32, i32, i32
  }
  func.func @transform_1(%arg0: i32) -> (i32, i32) {
    %c0_i32 = arith.constant 0 : i32
    %c0_i32_0 = arith.constant 0 : i32
    %c0_i32_1 = arith.constant 0 : i32
    return %c0_i32, %c0_i32_0 : i32, i32
  }
  func.func @transform_2(%arg0: i32) -> (i32, i32) {
    %c0_i32 = arith.constant 0 : i32
    %c0_i32_0 = arith.constant 0 : i32
    %c0_i32_1 = arith.constant 0 : i32
    return %c0_i32, %c0_i32_0 : i32, i32
  }
  func.func @transform_3(%arg0: i32) -> (i32, i32, i32) {
    %c0_i32 = arith.constant 0 : i32
    %c0_i32_0 = arith.constant 0 : i32
    %c0_i32_1 = arith.constant 0 : i32
    return %arg0, %c0_i32, %c0_i32_0 : i32, i32, i32
  }
}

module attributes {stable_mosaic.version = 11 : i64} {
  func.func @_conv_linear_kernel(%arg0: i32, %arg1: memref<1x49x576xbf16, #tpu.memory_space<vmem>>, %arg2: memref<576x64xbf16, #tpu.memory_space<vmem>>, %arg3: memref<1x64xf32, #tpu.memory_space<vmem>>, %arg4: memref<1x49x64xbf16, #tpu.memory_space<vmem>>) attributes {dimension_semantics = [#tpu.dimension_semantics<parallel>], iteration_bounds = array<i64: 2>, scalar_prefetch = 0 : i64, scratch_operands = 0 : i64, tpu.core_type = #tpu.core_type<tc>, window_params = [{transform_indices = @transform_0, window_bounds = array<i64: 1, 49, 576>}, {pipeline_mode = #tpu.pipeline_mode<synchronous>, transform_indices = @transform_1, window_bounds = array<i64: 576, 64>}, {pipeline_mode = #tpu.pipeline_mode<synchronous>, transform_indices = @transform_2, window_bounds = array<i64: 1, 64>}, {transform_indices = @transform_3, window_bounds = array<i64: 1, 49, 64>}]} {
    %c0 = arith.constant 0 : index
    %c0_0 = arith.constant 0 : index
    %c0_1 = arith.constant 0 : index
    %0 = vector.load %arg1[%c0, %c0_0, %c0_1] : memref<1x49x576xbf16, #tpu.memory_space<vmem>>, vector<1x49x576xbf16>
    %1 = vector.shape_cast %0 : vector<1x49x576xbf16> to vector<49x576xbf16>
    %c0_2 = arith.constant 0 : index
    %c0_3 = arith.constant 0 : index
    %2 = vector.load %arg2[%c0_2, %c0_3] : memref<576x64xbf16, #tpu.memory_space<vmem>>, vector<576x64xbf16>
    %cst = arith.constant dense<0.000000e+00> : vector<49x64xf32>
    %3 = tpu.matmul %1, %2, %cst {dimension_numbers = #tpu.dot_dimension_numbers<[1], [0], [0], [1], [0, 0, 1, 1], [], []>} : vector<49x576xbf16>, vector<576x64xbf16>, vector<49x64xf32> -> vector<49x64xf32>
    %c0_4 = arith.constant 0 : index
    %c0_5 = arith.constant 0 : index
    %4 = vector.load %arg3[%c0_4, %c0_5] : memref<1x64xf32, #tpu.memory_space<vmem>>, vector<1x64xf32>
    %5 = vector.broadcast %4 : vector<1x64xf32> to vector<49x64xf32>
    %6 = arith.addf %3, %5 : vector<49x64xf32>
    %cst_6 = arith.constant 0.000000e+00 : f32
    %7 = vector.broadcast %cst_6 : f32 to vector<49x64xf32>
    %8 = arith.maximumf %6, %7 : vector<49x64xf32>
    %9 = arith.truncf %8 : vector<49x64xf32> to vector<49x64xbf16>
    %c0_7 = arith.constant 0 : index
    %c0_8 = arith.constant 0 : index
    %c0_9 = arith.constant 0 : index
    %10 = vector.load %arg4[%c0_7, %c0_8, %c0_9] : memref<1x49x64xbf16, #tpu.memory_space<vmem>>, vector<1x49x64xbf16>
    %11 = vector.shape_cast %10 : vector<1x49x64xbf16> to vector<49x64xbf16>
    %12 = vector.shape_cast %9 : vector<49x64xbf16> to vector<1x49x64xbf16>
    tpu.vector_store %arg4[%c0_7, %c0_8, %c0_9], %12 {strides = array<i32>} : memref<1x49x64xbf16, #tpu.memory_space<vmem>>, vector<1x49x64xbf16>,
    return
  }
  func.func @transform_0(%arg0: i32) -> (i32, i32, i32) {
    %c0_i32 = arith.constant 0 : i32
    %c0_i32_0 = arith.constant 0 : i32
    %c0_i32_1 = arith.constant 0 : i32
    return %arg0, %c0_i32, %c0_i32_0 : i32, i32, i32
  }
  func.func @transform_1(%arg0: i32) -> (i32, i32) {
    %c0_i32 = arith.constant 0 : i32
    %c0_i32_0 = arith.constant 0 : i32
    %c0_i32_1 = arith.constant 0 : i32
    return %c0_i32, %c0_i32_0 : i32, i32
  }
  func.func @transform_2(%arg0: i32) -> (i32, i32) {
    %c0_i32 = arith.constant 0 : i32
    %c0_i32_0 = arith.constant 0 : i32
    %c0_i32_1 = arith.constant 0 : i32
    return %c0_i32, %c0_i32_0 : i32, i32
  }
  func.func @transform_3(%arg0: i32) -> (i32, i32, i32) {
    %c0_i32 = arith.constant 0 : i32
    %c0_i32_0 = arith.constant 0 : i32
    %c0_i32_1 = arith.constant 0 : i32
    return %arg0, %c0_i32, %c0_i32_0 : i32, i32, i32
  }
}

module attributes {stable_mosaic.version = 11 : i64} {
  func.func @_mlp_kernel(%arg0: i32, %arg1: memref<1x1x3136xbf16, #tpu.memory_space<vmem>>, %arg2: memref<3136x512xbf16, #tpu.memory_space<vmem>>, %arg3: memref<1x512xf32, #tpu.memory_space<vmem>>, %arg4: memref<512x128xbf16, #tpu.memory_space<vmem>>, %arg5: memref<1x128xf32, #tpu.memory_space<vmem>>, %arg6: memref<1x1x128xf32, #tpu.memory_space<vmem>>) attributes {dimension_semantics = [#tpu.dimension_semantics<parallel>], iteration_bounds = array<i64: 2>, scalar_prefetch = 0 : i64, scratch_operands = 0 : i64, tpu.core_type = #tpu.core_type<tc>, window_params = [{transform_indices = @transform_0, window_bounds = array<i64: 1, 1, 3136>}, {pipeline_mode = #tpu.pipeline_mode<synchronous>, transform_indices = @transform_1, window_bounds = array<i64: 3136, 512>}, {pipeline_mode = #tpu.pipeline_mode<synchronous>, transform_indices = @transform_2, window_bounds = array<i64: 1, 512>}, {pipeline_mode = #tpu.pipeline_mode<synchronous>, transform_indices = @transform_3, window_bounds = array<i64: 512, 128>}, {pipeline_mode = #tpu.pipeline_mode<synchronous>, transform_indices = @transform_4, window_bounds = array<i64: 1, 128>}, {transform_indices = @transform_5, window_bounds = array<i64: 1, 1, 128>}]} {
    %c0 = arith.constant 0 : index
    %c0_0 = arith.constant 0 : index
    %c0_1 = arith.constant 0 : index
    %0 = vector.load %arg1[%c0, %c0_0, %c0_1] : memref<1x1x3136xbf16, #tpu.memory_space<vmem>>, vector<1x1x3136xbf16>
    %1 = vector.shape_cast %0 : vector<1x1x3136xbf16> to vector<1x3136xbf16>
    %c0_2 = arith.constant 0 : index
    %c0_3 = arith.constant 0 : index
    %2 = vector.load %arg2[%c0_2, %c0_3] : memref<3136x512xbf16, #tpu.memory_space<vmem>>, vector<3136x512xbf16>
    %cst = arith.constant dense<0.000000e+00> : vector<1x512xf32>
    %3 = tpu.matmul %1, %2, %cst {dimension_numbers = #tpu.dot_dimension_numbers<[1], [0], [0], [1], [0, 0, 1, 1], [], []>} : vector<1x3136xbf16>, vector<3136x512xbf16>, vector<1x512xf32> -> vector<1x512xf32>
    %c0_4 = arith.constant 0 : index
    %c0_5 = arith.constant 0 : index
    %4 = vector.load %arg3[%c0_4, %c0_5] : memref<1x512xf32, #tpu.memory_space<vmem>>, vector<1x512xf32>
    %5 = arith.addf %3, %4 : vector<1x512xf32>
    %cst_6 = arith.constant 0.000000e+00 : f32
    %6 = vector.broadcast %cst_6 : f32 to vector<1x512xf32>
    %7 = arith.maximumf %5, %6 : vector<1x512xf32>
    %8 = arith.truncf %7 : vector<1x512xf32> to vector<1x512xbf16>
    %c0_7 = arith.constant 0 : index
    %c0_8 = arith.constant 0 : index
    %9 = vector.load %arg4[%c0_7, %c0_8] : memref<512x128xbf16, #tpu.memory_space<vmem>>, vector<512x128xbf16>
    %cst_9 = arith.constant dense<0.000000e+00> : vector<1x128xf32>
    %10 = tpu.matmul %8, %9, %cst_9 {dimension_numbers = #tpu.dot_dimension_numbers<[1], [0], [0], [1], [0, 0, 1, 1], [], []>} : vector<1x512xbf16>, vector<512x128xbf16>, vector<1x128xf32> -> vector<1x128xf32>
    %c0_10 = arith.constant 0 : index
    %c0_11 = arith.constant 0 : index
    %11 = vector.load %arg5[%c0_10, %c0_11] : memref<1x128xf32, #tpu.memory_space<vmem>>, vector<1x128xf32>
    %12 = arith.addf %10, %11 : vector<1x128xf32>
    %c0_12 = arith.constant 0 : index
    %c0_13 = arith.constant 0 : index
    %c0_14 = arith.constant 0 : index
    %13 = vector.load %arg6[%c0_12, %c0_13, %c0_14] : memref<1x1x128xf32, #tpu.memory_space<vmem>>, vector<1x1x128xf32>
    %14 = vector.shape_cast %13 : vector<1x1x128xf32> to vector<1x128xf32>
    %15 = vector.shape_cast %12 : vector<1x128xf32> to vector<1x1x128xf32>
    tpu.vector_store %arg6[%c0_12, %c0_13, %c0_14], %15 {strides = array<i32>} : memref<1x1x128xf32, #tpu.memory_space<vmem>>, vector<1x1x128xf32>,
    return
  }
  func.func @transform_0(%arg0: i32) -> (i32, i32, i32) {
    %c0_i32 = arith.constant 0 : i32
    %c0_i32_0 = arith.constant 0 : i32
    %c0_i32_1 = arith.constant 0 : i32
    return %arg0, %c0_i32, %c0_i32_0 : i32, i32, i32
  }
  func.func @transform_1(%arg0: i32) -> (i32, i32) {
    %c0_i32 = arith.constant 0 : i32
    %c0_i32_0 = arith.constant 0 : i32
    %c0_i32_1 = arith.constant 0 : i32
    return %c0_i32, %c0_i32_0 : i32, i32
  }
  func.func @transform_2(%arg0: i32) -> (i32, i32) {
    %c0_i32 = arith.constant 0 : i32
    %c0_i32_0 = arith.constant 0 : i32
    %c0_i32_1 = arith.constant 0 : i32
    return %c0_i32, %c0_i32_0 : i32, i32
  }
  func.func @transform_3(%arg0: i32) -> (i32, i32) {
    %c0_i32 = arith.constant 0 : i32
    %c0_i32_0 = arith.constant 0 : i32
    %c0_i32_1 = arith.constant 0 : i32
    return %c0_i32, %c0_i32_0 : i32, i32
  }
  func.func @transform_4(%arg0: i32) -> (i32, i32) {
    %c0_i32 = arith.constant 0 : i32
    %c0_i32_0 = arith.constant 0 : i32
    %c0_i32_1 = arith.constant 0 : i32
    return %c0_i32, %c0_i32_0 : i32, i32
  }
  func.func @transform_5(%arg0: i32) -> (i32, i32, i32) {
    %c0_i32 = arith.constant 0 : i32
    %c0_i32_0 = arith.constant 0 : i32
    %c0_i32_1 = arith.constant 0 : i32
    return %arg0, %c0_i32, %c0_i32_0 : i32, i32, i32
  }
}

</mosaic_0001>

<bundles_post_ra>
// kernel: forward.4
= control target key start
LH: loop header
LB: loop body
LE: loop exit
PB: predicated region body
PF: predicated region fallthrough
CT: control target
= control target key end

     0   :  { %s1535_s12 = smov 0   ;;  %s1845_s0 = inlined_call_operand.vmem [shape: bf16[2,400,256], index: 0, kind: input, shape index: {}]   ;;  %s1846_s1 = inlined_call_operand.vmem [shape: bf16[256,32], index: 1, kind: input, shape index: {}]   ;;  %s1847_s2 = inlined_call_operand.vmem [shape: f32[1,32], index: 2, kind: input, shape index: {}]   ;;  %s1848_s3 = inlined_call_operand.vmem [shape: bf16[2,400,32], index: 3, kind: output, shape index: {}]  }
   0x1 LB: > { %s1196_s13 = sadd.s32 4294967295, %s1512_s12   ;;  %p1200_p0 = scmp.ge.s32.totalorder %s1512_s12, 1  ;;  %s1512_s12 = sphi %s1535_s12, %s13_s12  }
   0x2   : > { %p137_p1 = scmp.lt.s32.totalorder %s1512_s12, 3 }
   0x4   : > { %p138_p2 = pnand %p1200_p0, %p137_p1 }
   0x5   : > { %p161_p3 = scmp.lt.s32.totalorder (!%p138_p2), %s1196_s13, 1 }
   0x6   : > { %141 = sbr.rel (%p138_p2) target bundleno = 376 (0x178), region = 32 }
   0xb   : > { %v1415_v0 = vld [vmem:[%s1846_s1 + $0x38] sm:$0xff]   ;;  %v1514_v1 = vmov 0   ;;  %v1416_v2 = vld [vmem:[%s1846_s1 + $0x30] sm:$0xff]   ;;  %v1417_v3 = vld [vmem:[%s1846_s1 + $0x28] sm:$0xff]   ;;  %s1850_s13 = smov (!%p161_p3, %s1196_s13), 1  ;;  %vm1090_vm0 = vcmask 257024  }
   0xc   : > { %607 = vmatprep.subr.bf16.mxu0 %v1514_v1  ;;  %1372 = vmatprep.subr.bf16.mxu1 %v1514_v1  ;;  %v1418_v4 = vld [vmem:[%s1846_s1 + $0x20] sm:$0xff]   ;;  %s1404_s22 = smul.u32 400, %s1850_s13  ;;  %v1419_v5 = vld [vmem:[%s1846_s1 + $0x18] sm:$0xff]   ;;  %v1420_v7 = vld [vmem:[%s1846_s1 + $0x10] sm:$0xff]  }
   0xd   : > { %608 = vmatpush1.bf16.msra.mxu0 %v1415_v0  ;;  %1388 = vmatpush1.bf16.msra.mxu1 %v1415_v0  ;;  %v1421_v9 = vld [vmem:[%s1846_s1 + $0x8] sm:$0xff]   ;;  %v1422_v10 = vld [vmem:[%s1846_s1] sm:$0xff]   ;;  %v1423_v11 = vld [vmem:[%s1846_s1 + $0x78] sm:$0xff]   ;;  %s1405_s28 = smul.u32 200, %s1850_s13 }
   0xe   : > { %609 = vmatprep.subr.bf16.mxu0 %v1514_v1  ;;  %1373 = vmatprep.subr.bf16.mxu1 %v1514_v1  ;;  %s1572_s27 = scalar_lea.vmem %s1845_s0, %s1404_s22  ;;  %v1424_v12 = vld [vmem:[%s1846_s1 + $0x70] sm:$0xff]   ;;  %v1425_v13 = vld [vmem:[%s1846_s1 + $0x68] sm:$0xff]   ;;  %v1426_v14 = vld [vmem:[%s1846_s1 + $0x60] sm:$0xff]  }
   0xf   : > { %v1433_v6 = vld [vmem:[%s1572_s27 + $0x4] ss:$8 sps:$4 sm:$0xff]   ;;  %v1436_v8 = vld [vmem:[%s1572_s27 + $0xd4] ss:$8 sps:$4 sm:$0xff]   ;;  %v1431_v19 = vld [vmem:[%s1572_s27] ss:$8 sps:$4 sm:$0xff]  }
  0x10   : > { %639 = vmatprep.mubr.bf16.mxu0 %v1433_v6  ;;  %743 = vmatprep.mubr.bf16.mxu1 %v1436_v8  ;;  %v1427_v15 = vld [vmem:[%s1846_s1 + $0x58] sm:$0xff]   ;;  %v1428_v16 = vld [vmem:[%s1846_s1 + $0x50] sm:$0xff]   ;;  %v1429_v17 = vld [vmem:[%s1846_s1 + $0x48] sm:$0xff]  }
  0x11   : > { %610 = vmatpush1.bf16.msra.mxu0 %v1416_v2  ;;  %1389 = vmatpush1.bf16.msra.mxu1 %v1416_v2  ;;  %v1430_v18 = vld [vmem:[%s1846_s1 + $0x40] sm:$0xff]   ;;  %v1434_v20 = vld [vmem:[%s1572_s27 + $0xd0] ss:$8 sps:$4 sm:$0xff]   ;;  %v1437_v21 = vld [vmem:[%s1572_s27 + $0x14] ss:$8 sps:$4 sm:$0xff]  }
  0x12   : > { %611 = vmatprep.subr.bf16.mxu0 %v1514_v1  ;;  %1374 = vmatprep.subr.bf16.mxu1 %v1514_v1  ;;  %v1440_v22 = vld [vmem:[%s1572_s27 + $0xe4] ss:$8 sps:$4 sm:$0xff]   ;;  %v1439_v23 = vld [vmem:[%s1572_s27 + $0x10] ss:$8 sps:$4 sm:$0xff]   ;;  %v1442_v24 = vld [vmem:[%s1572_s27 + $0xe0] ss:$8 sps:$4 sm:$0xff]  }
  0x13   : > { %v1443_v25 = vld [vmem:[%s1572_s27 + $0x24] ss:$8 sps:$4 sm:$0xff]   ;;  %v1446_v26 = vld [vmem:[%s1572_s27 + $0xf4] ss:$8 sps:$4 sm:$0xff]   ;;  %v1445_v27 = vld [vmem:[%s1572_s27 + $0x20] ss:$8 sps:$4 sm:$0xff]  }
  0x14   : > { %v1448_v28 = vld [vmem:[%s1572_s27 + $0xf0] ss:$8 sps:$4 sm:$0xff]   ;;  %v1449_v29 = vld [vmem:[%s1572_s27 + $0x34] ss:$8 sps:$4 sm:$0xff]   ;;  %v1452_v30 = vld [vmem:[%s1572_s27 + $0x104] ss:$8 sps:$4 sm:$0xff]  }
  0x15   : > { %612 = vmatpush1.bf16.msra.mxu0 %v1417_v3  ;;  %1390 = vmatpush1.bf16.msra.mxu1 %v1417_v3  ;;  %v1451_v31 = vld [vmem:[%s1572_s27 + $0x30] ss:$8 sps:$4 sm:$0xff]   ;;  %v1454_v32 = vld [vmem:[%s1572_s27 + $0x100] ss:$8 sps:$4 sm:$0xff]   ;;  %v1455_v33 = vld [vmem:[%s1572_s27 + $0x44] ss:$8 sps:$4 sm:$0xff]  }
  0x16   : > { %613 = vmatprep.subr.bf16.mxu0 %v1514_v1  ;;  %1375 = vmatprep.subr.bf16.mxu1 %v1514_v1  ;;  %v1458_v34 = vld [vmem:[%s1572_s27 + $0x114] ss:$8 sps:$4 sm:$0xff]   ;;  %v1457_v35 = vld [vmem:[%s1572_s27 + $0x40] ss:$8 sps:$4 sm:$0xff]   ;;  %v1460_v36 = vld [vmem:[%s1572_s27 + $0x110] ss:$8 sps:$4 sm:$0xff]  }
  0x17   : > { %v1461_v37 = vld [vmem:[%s1572_s27 + $0x54] ss:$8 sps:$4 sm:$0xff]   ;;  %v1464_v38 = vld [vmem:[%s1572_s27 + $0x124] ss:$8 sps:$4 sm:$0xff]   ;;  %v1463_v39 = vld [vmem:[%s1572_s27 + $0x50] ss:$8 sps:$4 sm:$0xff]  }
  0x18   : > { %v1466_v40 = vld [vmem:[%s1572_s27 + $0x120] ss:$8 sps:$4 sm:$0xff]   ;;  %v1467_v41 = vld [vmem:[%s1572_s27 + $0x64] ss:$8 sps:$4 sm:$0xff]   ;;  %v1470_v42 = vld [vmem:[%s1572_s27 + $0x134] ss:$8 sps:$4 sm:$0xff]  }
  0x19   : > { %614 = vmatpush1.bf16.msra.mxu0 %v1418_v4  ;;  %1391 = vmatpush1.bf16.msra.mxu1 %v1418_v4  ;;  %v1469_v43 = vld [vmem:[%s1572_s27 + $0x60] ss:$8 sps:$4 sm:$0xff]   ;;  %v1472_v44 = vld [vmem:[%s1572_s27 + $0x130] ss:$8 sps:$4 sm:$0xff]   ;;  %v1473_v45 = vld [vmem:[%s1572_s27 + $0x74] ss:$8 sps:$4 sm:$0xff]  }
  0x1a   : > { %615 = vmatprep.subr.bf16.mxu0 %v1514_v1  ;;  %1376 = vmatprep.subr.bf16.mxu1 %v1514_v1  ;;  %v1476_v46 = vld [vmem:[%s1572_s27 + $0x144] ss:$8 sps:$4 sm:$0xff]   ;;  %v1475_v47 = vld [vmem:[%s1572_s27 + $0x70] ss:$8 sps:$4 sm:$0xff]   ;;  %v1478_v48 = vld [vmem:[%s1572_s27 + $0x140] ss:$8 sps:$4 sm:$0xff]  }
  0x1b   : > { %v1479_v49 = vld [vmem:[%s1572_s27 + $0x84] ss:$8 sps:$4 sm:$0xff]   ;;  %v1482_v50 = vld [vmem:[%s1572_s27 + $0x154] ss:$8 sps:$4 sm:$0xff]   ;;  %v1481_v51 = vld [vmem:[%s1572_s27 + $0x80] ss:$8 sps:$4 sm:$0xff]  }
  0x1c   : > { %v1484_v52 = vld [vmem:[%s1572_s27 + $0x150] ss:$8 sps:$4 sm:$0xff]   ;;  %v1485_v53 = vld [vmem:[%s1572_s27 + $0x94] ss:$8 sps:$4 sm:$0xff]   ;;  %v1488_v54 = vld [vmem:[%s1572_s27 + $0x164] ss:$8 sps:$4 sm:$0xff]  }
  0x1d   : > { %616 = vmatpush1.bf16.msra.mxu0 %v1419_v5  ;;  %1392 = vmatpush1.bf16.msra.mxu1 %v1419_v5  ;;  %v1487_v55 = vld [vmem:[%s1572_s27 + $0x90] ss:$8 sps:$4 sm:$0xff]   ;;  %v1490_v56 = vld [vmem:[%s1572_s27 + $0x160] ss:$8 sps:$4 sm:$0xff]   ;;  %v1491_v57 = vld [vmem:[%s1572_s27 + $0xa4] ss:$8 sps:$4 sm:$0xff]  }
  0x1e   : > { %617 = vmatprep.subr.bf16.mxu0 %v1514_v1  ;;  %1377 = vmatprep.subr.bf16.mxu1 %v1514_v1  ;;  %v1494_v58 = vld [vmem:[%s1572_s27 + $0x174] ss:$8 sps:$4 sm:$0xff]   ;;  %v1493_v59 = vld [vmem:[%s1572_s27 + $0xa0] ss:$8 sps:$4 sm:$0xff]   ;;  %v1496_v60 = vld [vmem:[%s1572_s27 + $0x170] ss:$8 sps:$4 sm:$0xff]  }
  0x1f   : > { %v1497_v61 = vld [vmem:[%s1572_s27 + $0xb4] ss:$8 sps:$4 sm:$0xff]   ;;  %v1500_v62 = vld [vmem:[%s1572_s27 + $0x184] ss:$8 sps:$4 sm:$0xff]   ;;  %v1499_v63 = vld [vmem:[%s1572_s27 + $0xb0] ss:$8 sps:$4 sm:$0xff]  }
  0x20   : > { %v1502_v0 = vld [vmem:[%s1572_s27 + $0x180] ss:$8 sps:$4 sm:$0xff]  }
  0x21   : > { %618 = vmatpush1.bf16.msra.mxu0 %v1420_v7  ;;  %1393 = vmatpush1.bf16.msra.mxu1 %v1420_v7  ;;  %v1505_v2 = vld [vmem:[%s1572_s27 + $0xc0] ss:$8 sps:$4 sm:$0xff]  }
  0x22   : > { %619 = vmatprep.subr.bf16.mxu0 %v1514_v1  ;;  %1378 = vmatprep.subr.bf16.mxu1 %v1514_v1  ;;  %v1684_v3 = vld [vmem:[%s1847_s2] ss:$0 sm:$0xff] }
  0x25   : > { %620 = vmatpush1.bf16.msra.mxu0 %v1421_v9  ;;  %1394 = vmatpush1.bf16.msra.mxu1 %v1421_v9 }
  0x26   : > { %621 = vmatprep.subr.bf16.mxu0 %v1514_v1  ;;  %1379 = vmatprep.subr.bf16.mxu1 %v1514_v1 }
  0x29   : > { %622 = vmatpush1.bf16.msra.mxu0 %v1422_v10  ;;  %1395 = vmatpush1.bf16.msra.mxu1 %v1422_v10 }
  0x2a   : > { %623 = vmatprep.subr.bf16.mxu0 %v1514_v1  ;;  %1380 = vmatprep.subr.bf16.mxu1 %v1514_v1 }
  0x2d   : > { %624 = vmatpush2.bf16.msra.mxu0 %v1423_v11  ;;  %1396 = vmatpush2.bf16.msra.mxu1 %v1423_v11 }
  0x2e   : > { %625 = vmatprep.subr.bf16.mxu0 %v1514_v1  ;;  %1381 = vmatprep.subr.bf16.mxu1 %v1514_v1 }
  0x31   : > { %626 = vmatpush2.bf16.msra.mxu0 %v1424_v12  ;;  %1397 = vmatpush2.bf16.msra.mxu1 %v1424_v12 }
  0x32   : > { %627 = vmatprep.subr.bf16.mxu0 %v1514_v1  ;;  %1382 = vmatprep.subr.bf16.mxu1 %v1514_v1 }
  0x35   : > { %628 = vmatpush2.bf16.msra.mxu0 %v1425_v13  ;;  %1398 = vmatpush2.bf16.msra.mxu1 %v1425_v13 }
  0x36   : > { %629 = vmatprep.subr.bf16.mxu0 %v1514_v1  ;;  %1383 = vmatprep.subr.bf16.mxu1 %v1514_v1 }
  0x39   : > { %630 = vmatpush2.bf16.msra.mxu0 %v1426_v14  ;;  %1399 = vmatpush2.bf16.msra.mxu1 %v1426_v14 }
  0x3a   : > { %631 = vmatprep.subr.bf16.mxu0 %v1514_v1  ;;  %1384 = vmatprep.subr.bf16.mxu1 %v1514_v1 }
  0x3d   : > { %632 = vmatpush2.bf16.msra.mxu0 %v1427_v15  ;;  %1400 = vmatpush2.bf16.msra.mxu1 %v1427_v15 }
  0x3e   : > { %633 = vmatprep.subr.bf16.mxu0 %v1514_v1  ;;  %1385 = vmatprep.subr.bf16.mxu1 %v1514_v1 }
  0x41   : > { %634 = vmatpush2.bf16.msra.mxu0 %v1428_v16  ;;  %1401 = vmatpush2.bf16.msra.mxu1 %v1428_v16 }
  0x42   : > { %635 = vmatprep.subr.bf16.mxu0 %v1514_v1  ;;  %1386 = vmatprep.subr.bf16.mxu1 %v1514_v1 }
  0x45   : > { %636 = vmatpush2.bf16.msra.mxu0 %v1429_v17  ;;  %1402 = vmatpush2.bf16.msra.mxu1 %v1429_v17 }
  0x46   : > { %637 = vmatprep.subr.bf16.mxu0 %v1514_v1  ;;  %1387 = vmatprep.subr.bf16.mxu1 %v1514_v1  ;;  %v1503_v1 = vld [vmem:[%s1572_s27 + $0xc4] ss:$8 sps:$4 sm:$0xff]   ;;  %s1692_s27 = scalar_lea.vmem %s1848_s3, %s1405_s28 }
  0x49   : > { %638 = vmatpush2.bf16.msra.mxu0 %v1430_v18  ;;  %1403 = vmatpush2.bf16.msra.mxu1 %v1430_v18 }
  0x4c   : > { %640 = vmatmul.mubr.bf16.vlgmr.msra.gmra.mxu0 %v1431_v19  ;;  %744 = vmatmul.mubr.bf16.vlgmr.msra.gmra.mxu1 %v1434_v20 }
  0x4d   : > { %647 = vmatprep.mubr.bf16.mxu0 %v1437_v21  ;;  %751 = vmatprep.mubr.bf16.mxu1 %v1440_v22 }
  0x54   : > { %648 = vmatmul.mubr.bf16.gmra.mxu0 %v1439_v23  ;;  %752 = vmatmul.mubr.bf16.gmra.mxu1 %v1442_v24 }
  0x55   : > { %655 = vmatprep.mubr.bf16.mxu0 %v1443_v25  ;;  %759 = vmatprep.mubr.bf16.mxu1 %v1446_v26 }
  0x5c   : > { %656 = vmatmul.mubr.bf16.gmra.mxu0 %v1445_v27  ;;  %760 = vmatmul.mubr.bf16.gmra.mxu1 %v1448_v28 }
  0x5d   : > { %663 = vmatprep.mubr.bf16.mxu0 %v1449_v29  ;;  %767 = vmatprep.mubr.bf16.mxu1 %v1452_v30 }
  0x64   : > { %664 = vmatmul.mubr.bf16.gmra.mxu0 %v1451_v31  ;;  %768 = vmatmul.mubr.bf16.gmra.mxu1 %v1454_v32 }
  0x65   : > { %671 = vmatprep.mubr.bf16.mxu0 %v1455_v33  ;;  %775 = vmatprep.mubr.bf16.mxu1 %v1458_v34 }
  0x6c   : > { %672 = vmatmul.mubr.bf16.gmra.mxu0 %v1457_v35  ;;  %776 = vmatmul.mubr.bf16.gmra.mxu1 %v1460_v36 }
  0x6d   : > { %679 = vmatprep.mubr.bf16.mxu0 %v1461_v37  ;;  %783 = vmatprep.mubr.bf16.mxu1 %v1464_v38 }
  0x74   : > { %680 = vmatmul.mubr.bf16.gmra.mxu0 %v1463_v39  ;;  %784 = vmatmul.mubr.bf16.gmra.mxu1 %v1466_v40 }
  0x75   : > { %687 = vmatprep.mubr.bf16.mxu0 %v1467_v41  ;;  %791 = vmatprep.mubr.bf16.mxu1 %v1470_v42 }
  0x7c   : > { %688 = vmatmul.mubr.bf16.gmra.mxu0 %v1469_v43  ;;  %792 = vmatmul.mubr.bf16.gmra.mxu1 %v1472_v44 }
  0x7d   : > { %695 = vmatprep.mubr.bf16.mxu0 %v1473_v45  ;;  %799 = vmatprep.mubr.bf16.mxu1 %v1476_v46 }
  0x84   : > { %696 = vmatmul.mubr.bf16.gmra.mxu0 %v1475_v47  ;;  %800 = vmatmul.mubr.bf16.gmra.mxu1 %v1478_v48 }
  0x85   : > { %703 = vmatprep.mubr.bf16.mxu0 %v1479_v49  ;;  %807 = vmatprep.mubr.bf16.mxu1 %v1482_v50 }
  0x8c   : > { %704 = vmatmul.mubr.bf16.gmra.mxu0 %v1481_v51  ;;  %808 = vmatmul.mubr.bf16.gmra.mxu1 %v1484_v52 }
  0x8d   : > { %711 = vmatprep.mubr.bf16.mxu0 %v1485_v53  ;;  %815 = vmatprep.mubr.bf16.mxu1 %v1488_v54 }
  0x94   : > { %712 = vmatmul.mubr.bf16.gmra.mxu0 %v1487_v55  ;;  %816 = vmatmul.mubr.bf16.gmra.mxu1 %v1490_v56 }
  0x95   : > { %719 = vmatprep.mubr.bf16.mxu0 %v1491_v57  ;;  %823 = vmatprep.mubr.bf16.mxu1 %v1494_v58 }
  0x9c   : > { %720 = vmatmul.mubr.bf16.gmra.mxu0 %v1493_v59  ;;  %824 = vmatmul.mubr.bf16.gmra.mxu1 %v1496_v60 }
  0x9d   : > { %727 = vmatprep.mubr.bf16.mxu0 %v1497_v61  ;;  %831 = vmatprep.mubr.bf16.mxu1 %v1500_v62 }
  0xa4   : > { %728 = vmatmul.mubr.bf16.gmra.mxu0 %v1499_v63  ;;  %832 = vmatmul.mubr.bf16.gmra.mxu1 %v1502_v0 }
  0xa5   : > { %735 = vmatprep.mubr.bf16.mxu0 %v1503_v1 }
  0xac   : > { %736 = vmatmul.mubr.bf16.gmra.mxu0 %v1505_v2 }
 0x10c   : > { %v641_v4 = vpop.f32.mrf.mxu0  ;;  %v745_v5 = vpop.f32.mrf.mxu1 }
 0x10d   : > { %v642_v6 = vadd.f32 %v1684_v3, %v641_v4  ;;  %v746_v7 = vadd.f32 %v1684_v3, %v745_v5 }
 0x10e   : > { %v643_v8 = vpop.f32.mrf.mxu0  ;;  %v747_v9 = vpop.f32.mrf.mxu1 }
 0x10f   : > { %v840_v10 = vmax.f32 %v642_v6, 0.0  ;;  %v866_v11 = vmax.f32 %v746_v7, 0.0 }
 0x110   : > { %v644_v12 = vpop.f32.mrf.mxu0  ;;  %v748_v13 = vpop.f32.mrf.mxu1 }
 0x111   : > { %v1322_v14 = vpack.c.bf16 %v840_v10, %v840_v10  ;;  %v1348_v15 = vpack.c.bf16 %v866_v11, %v866_v11  ;;  %v645_v16 = vadd.f32 %v1684_v3, %v644_v12  ;;  %v749_v17 = vadd.f32 %v1684_v3, %v748_v13 }
 0x112   : > { %v646_v18 = vpop.f32.mrf.mxu0  ;;  %v750_v19 = vpop.f32.mrf.mxu1 }
 0x113   : > { %1091 = vst.msk [vmem:[%s1692_s27] sm:$0xf] %vm1090_vm0, %v1322_v14  ;;  %1117 = vst.msk [vmem:[%s1692_s27 + $0x68] sm:$0xf] %vm1090_vm0, %v1348_v15  ;;  %v841_v20 = vmax.f32 %v645_v16, 0.0  ;;  %v867_v21 = vmax.f32 %v749_v17, 0.0 }
 0x114   : > { %v649_v22 = vpop.f32.mrf.mxu0  ;;  %v753_v23 = vpop.f32.mrf.mxu1 }
 0x115   : > { %v1323_v24 = vpack.c.bf16 %v841_v20, %v841_v20  ;;  %v1349_v25 = vpack.c.bf16 %v867_v21, %v867_v21  ;;  %v650_v26 = vadd.f32 %v1684_v3, %v649_v22  ;;  %v754_v27 = vadd.f32 %v1684_v3, %v753_v23 }
 0x116   : > { %v651_v28 = vpop.f32.mrf.mxu0  ;;  %v755_v29 = vpop.f32.mrf.mxu1 }
 0x117   : > { %1092 = vst.msk [vmem:[%s1692_s27 + $0x4] sm:$0xf] %vm1090_vm0, %v1323_v24  ;;  %1118 = vst.msk [vmem:[%s1692_s27 + $0x6c] sm:$0xf] %vm1090_vm0, %v1349_v25  ;;  %v842_v30 = vmax.f32 %v650_v26, 0.0  ;;  %v868_v31 = vmax.f32 %v754_v27, 0.0 }
 0x118   : > { %v652_v32 = vpop.f32.mrf.mxu0  ;;  %v756_v33 = vpop.f32.mrf.mxu1 }
 0x119   : > { %v1324_v34 = vpack.c.bf16 %v842_v30, %v842_v30  ;;  %v1350_v35 = vpack.c.bf16 %v868_v31, %v868_v31  ;;  %v653_v36 = vadd.f32 %v1684_v3, %v652_v32  ;;  %v757_v37 = vadd.f32 %v1684_v3, %v756_v33 }
 0x11a   : > { %v654_v38 = vpop.f32.mrf.mxu0  ;;  %v758_v39 = vpop.f32.mrf.mxu1 }
 0x11b   : > { %1093 = vst.msk [vmem:[%s1692_s27 + $0x8] sm:$0xf] %vm1090_vm0, %v1324_v34  ;;  %1119 = vst.msk [vmem:[%s1692_s27 + $0x70] sm:$0xf] %vm1090_vm0, %v1350_v35  ;;  %v843_v40 = vmax.f32 %v653_v36, 0.0  ;;  %v869_v41 = vmax.f32 %v757_v37, 0.0 }
 0x11c   : > { %v657_v42 = vpop.f32.mrf.mxu0  ;;  %v761_v43 = vpop.f32.mrf.mxu1 }
 0x11d   : > { %v1325_v44 = vpack.c.bf16 %v843_v40, %v843_v40  ;;  %v1351_v45 = vpack.c.bf16 %v869_v41, %v869_v41  ;;  %v658_v46 = vadd.f32 %v1684_v3, %v657_v42  ;;  %v762_v47 = vadd.f32 %v1684_v3, %v761_v43 }
 0x11e   : > { %v659_v48 = vpop.f32.mrf.mxu0  ;;  %v763_v49 = vpop.f32.mrf.mxu1 }
 0x11f   : > { %1094 = vst.msk [vmem:[%s1692_s27 + $0xc] sm:$0xf] %vm1090_vm0, %v1325_v44  ;;  %1120 = vst.msk [vmem:[%s1692_s27 + $0x74] sm:$0xf] %vm1090_vm0, %v1351_v45  ;;  %v844_v50 = vmax.f32 %v658_v46, 0.0  ;;  %v870_v51 = vmax.f32 %v762_v47, 0.0 }
 0x120   : > { %v660_v52 = vpop.f32.mrf.mxu0  ;;  %v764_v53 = vpop.f32.mrf.mxu1 }
 0x121   : > { %v1326_v54 = vpack.c.bf16 %v844_v50, %v844_v50  ;;  %v1352_v55 = vpack.c.bf16 %v870_v51, %v870_v51  ;;  %v661_v56 = vadd.f32 %v1684_v3, %v660_v52  ;;  %v765_v57 = vadd.f32 %v1684_v3, %v764_v53 }
 0x122   : > { %v662_v58 = vpop.f32.mrf.mxu0  ;;  %v766_v59 = vpop.f32.mrf.mxu1 }
 0x123   : > { %1095 = vst.msk [vmem:[%s1692_s27 + $0x10] sm:$0xf] %vm1090_vm0, %v1326_v54  ;;  %1121 = vst.msk [vmem:[%s1692_s27 + $0x78] sm:$0xf] %vm1090_vm0, %v1352_v55  ;;  %v845_v60 = vmax.f32 %v661_v56, 0.0  ;;  %v871_v61 = vmax.f32 %v765_v57, 0.0 }
 0x124   : > { %v665_v62 = vpop.f32.mrf.mxu0  ;;  %v769_v63 = vpop.f32.mrf.mxu1 }
 0x125   : > { %v1327_v0 = vpack.c.bf16 %v845_v60, %v845_v60  ;;  %v1353_v1 = vpack.c.bf16 %v871_v61, %v871_v61  ;;  %v666_v2 = vadd.f32 %v1684_v3, %v665_v62  ;;  %v770_v4 = vadd.f32 %v1684_v3, %v769_v63 }
 0x126   : > { %v667_v5 = vpop.f32.mrf.mxu0  ;;  %v771_v6 = vpop.f32.mrf.mxu1 }
 0x127   : > { %1096 = vst.msk [vmem:[%s1692_s27 + $0x14] sm:$0xf] %vm1090_vm0, %v1327_v0  ;;  %1122 = vst.msk [vmem:[%s1692_s27 + $0x7c] sm:$0xf] %vm1090_vm0, %v1353_v1  ;;  %v846_v7 = vmax.f32 %v666_v2, 0.0  ;;  %v872_v8 = vmax.f32 %v770_v4, 0.0 }
 0x128   : > { %v668_v9 = vpop.f32.mrf.mxu0  ;;  %v772_v10 = vpop.f32.mrf.mxu1 }
 0x129   : > { %v1328_v11 = vpack.c.bf16 %v846_v7, %v846_v7  ;;  %v1354_v12 = vpack.c.bf16 %v872_v8, %v872_v8  ;;  %v669_v13 = vadd.f32 %v1684_v3, %v668_v9  ;;  %v773_v14 = vadd.f32 %v1684_v3, %v772_v10 }
 0x12a   : > { %v670_v15 = vpop.f32.mrf.mxu0  ;;  %v774_v16 = vpop.f32.mrf.mxu1 }
 0x12b   : > { %1097 = vst.msk [vmem:[%s1692_s27 + $0x18] sm:$0xf] %vm1090_vm0, %v1328_v11  ;;  %1123 = vst.msk [vmem:[%s1692_s27 + $0x80] sm:$0xf] %vm1090_vm0, %v1354_v12  ;;  %v847_v17 = vmax.f32 %v669_v13, 0.0  ;;  %v873_v18 = vmax.f32 %v773_v14, 0.0 }
 0x12c   : > { %v673_v19 = vpop.f32.mrf.mxu0  ;;  %v777_v20 = vpop.f32.mrf.mxu1 }
 0x12d   : > { %v1329_v21 = vpack.c.bf16 %v847_v17, %v847_v17  ;;  %v1355_v22 = vpack.c.bf16 %v873_v18, %v873_v18  ;;  %v674_v23 = vadd.f32 %v1684_v3, %v673_v19  ;;  %v778_v24 = vadd.f32 %v1684_v3, %v777_v20 }
 0x12e   : > { %v675_v25 = vpop.f32.mrf.mxu0  ;;  %v779_v26 = vpop.f32.mrf.mxu1 }
 0x12f   : > { %1098 = vst.msk [vmem:[%s1692_s27 + $0x1c] sm:$0xf] %vm1090_vm0, %v1329_v21  ;;  %1124 = vst.msk [vmem:[%s1692_s27 + $0x84] sm:$0xf] %vm1090_vm0, %v1355_v22  ;;  %v848_v27 = vmax.f32 %v674_v23, 0.0  ;;  %v874_v28 = vmax.f32 %v778_v24, 0.0 }
 0x130   : > { %v676_v29 = vpop.f32.mrf.mxu0  ;;  %v780_v30 = vpop.f32.mrf.mxu1 }
 0x131   : > { %v1330_v31 = vpack.c.bf16 %v848_v27, %v848_v27  ;;  %v1356_v32 = vpack.c.bf16 %v874_v28, %v874_v28  ;;  %v677_v33 = vadd.f32 %v1684_v3, %v676_v29  ;;  %v781_v34 = vadd.f32 %v1684_v3, %v780_v30 }
 0x132   : > { %v678_v35 = vpop.f32.mrf.mxu0  ;;  %v782_v36 = vpop.f32.mrf.mxu1 }
 0x133   : > { %1099 = vst.msk [vmem:[%s1692_s27 + $0x20] sm:$0xf] %vm1090_vm0, %v1330_v31  ;;  %1125 = vst.msk [vmem:[%s1692_s27 + $0x88] sm:$0xf] %vm1090_vm0, %v1356_v32  ;;  %v849_v37 = vmax.f32 %v677_v33, 0.0  ;;  %v875_v38 = vmax.f32 %v781_v34, 0.0 }
 0x134   : > { %v681_v39 = vpop.f32.mrf.mxu0  ;;  %v785_v40 = vpop.f32.mrf.mxu1 }
 0x135   : > { %v1331_v41 = vpack.c.bf16 %v849_v37, %v849_v37  ;;  %v1357_v42 = vpack.c.bf16 %v875_v38, %v875_v38  ;;  %v682_v43 = vadd.f32 %v1684_v3, %v681_v39  ;;  %v786_v44 = vadd.f32 %v1684_v3, %v785_v40 }
 0x136   : > { %v683_v45 = vpop.f32.mrf.mxu0  ;;  %v787_v46 = vpop.f32.mrf.mxu1 }
 0x137   : > { %1100 = vst.msk [vmem:[%s1692_s27 + $0x24] sm:$0xf] %vm1090_vm0, %v1331_v41  ;;  %1126 = vst.msk [vmem:[%s1692_s27 + $0x8c] sm:$0xf] %vm1090_vm0, %v1357_v42  ;;  %v850_v47 = vmax.f32 %v682_v43, 0.0  ;;  %v876_v48 = vmax.f32 %v786_v44, 0.0 }
 0x138   : > { %v684_v49 = vpop.f32.mrf.mxu0  ;;  %v788_v50 = vpop.f32.mrf.mxu1 }
 0x139   : > { %v1332_v51 = vpack.c.bf16 %v850_v47, %v850_v47  ;;  %v1358_v52 = vpack.c.bf16 %v876_v48, %v876_v48  ;;  %v685_v53 = vadd.f32 %v1684_v3, %v684_v49  ;;  %v789_v54 = vadd.f32 %v1684_v3, %v788_v50 }
 0x13a   : > { %v686_v55 = vpop.f32.mrf.mxu0  ;;  %v790_v56 = vpop.f32.mrf.mxu1 }
 0x13b   : > { %1101 = vst.msk [vmem:[%s1692_s27 + $0x28] sm:$0xf] %vm1090_vm0, %v1332_v51  ;;  %1127 = vst.msk [vmem:[%s1692_s27 + $0x90] sm:$0xf] %vm1090_vm0, %v1358_v52  ;;  %v851_v57 = vmax.f32 %v685_v53, 0.0  ;;  %v877_v58 = vmax.f32 %v789_v54, 0.0 }
 0x13c   : > { %v689_v59 = vpop.f32.mrf.mxu0  ;;  %v793_v60 = vpop.f32.mrf.mxu1 }
 0x13d   : > { %v1333_v61 = vpack.c.bf16 %v851_v57, %v851_v57  ;;  %v1359_v62 = vpack.c.bf16 %v877_v58, %v877_v58  ;;  %v690_v63 = vadd.f32 %v1684_v3, %v689_v59  ;;  %v794_v0 = vadd.f32 %v1684_v3, %v793_v60 }
 0x13e   : > { %v691_v1 = vpop.f32.mrf.mxu0  ;;  %v795_v2 = vpop.f32.mrf.mxu1 }
 0x13f   : > { %1102 = vst.msk [vmem:[%s1692_s27 + $0x2c] sm:$0xf] %vm1090_vm0, %v1333_v61  ;;  %1128 = vst.msk [vmem:[%s1692_s27 + $0x94] sm:$0xf] %vm1090_vm0, %v1359_v62  ;;  %v852_v4 = vmax.f32 %v690_v63, 0.0  ;;  %v878_v5 = vmax.f32 %v794_v0, 0.0 }
 0x140   : > { %v692_v6 = vpop.f32.mrf.mxu0  ;;  %v796_v7 = vpop.f32.mrf.mxu1 }
 0x141   : > { %v1334_v8 = vpack.c.bf16 %v852_v4, %v852_v4  ;;  %v1360_v9 = vpack.c.bf16 %v878_v5, %v878_v5  ;;  %v693_v10 = vadd.f32 %v1684_v3, %v692_v6  ;;  %v797_v11 = vadd.f32 %v1684_v3, %v796_v7 }
 0x142   : > { %v694_v12 = vpop.f32.mrf.mxu0  ;;  %v798_v13 = vpop.f32.mrf.mxu1 }
 0x143   : > { %1103 = vst.msk [vmem:[%s1692_s27 + $0x30] sm:$0xf] %vm1090_vm0, %v1334_v8  ;;  %1129 = vst.msk [vmem:[%s1692_s27 + $0x98] sm:$0xf] %vm1090_vm0, %v1360_v9  ;;  %v853_v14 = vmax.f32 %v693_v10, 0.0  ;;  %v879_v15 = vmax.f32 %v797_v11, 0.0 }
 0x144   : > { %v697_v16 = vpop.f32.mrf.mxu0  ;;  %v801_v17 = vpop.f32.mrf.mxu1 }
 0x145   : > { %v1335_v18 = vpack.c.bf16 %v853_v14, %v853_v14  ;;  %v1361_v19 = vpack.c.bf16 %v879_v15, %v879_v15  ;;  %v698_v20 = vadd.f32 %v1684_v3, %v697_v16  ;;  %v802_v21 = vadd.f32 %v1684_v3, %v801_v17 }
 0x146   : > { %v699_v22 = vpop.f32.mrf.mxu0  ;;  %v803_v23 = vpop.f32.mrf.mxu1 }
 0x147   : > { %1104 = vst.msk [vmem:[%s1692_s27 + $0x34] sm:$0xf] %vm1090_vm0, %v1335_v18  ;;  %1130 = vst.msk [vmem:[%s1692_s27 + $0x9c] sm:$0xf] %vm1090_vm0, %v1361_v19  ;;  %v854_v24 = vmax.f32 %v698_v20, 0.0  ;;  %v880_v25 = vmax.f32 %v802_v21, 0.0 }
 0x148   : > { %v700_v26 = vpop.f32.mrf.mxu0  ;;  %v804_v27 = vpop.f32.mrf.mxu1 }
 0x149   : > { %v1336_v28 = vpack.c.bf16 %v854_v24, %v854_v24  ;;  %v1362_v29 = vpack.c.bf16 %v880_v25, %v880_v25  ;;  %v701_v30 = vadd.f32 %v1684_v3, %v700_v26  ;;  %v805_v31 = vadd.f32 %v1684_v3, %v804_v27 }
 0x14a   : > { %v702_v32 = vpop.f32.mrf.mxu0  ;;  %v806_v33 = vpop.f32.mrf.mxu1 }
 0x14b   : > { %1105 = vst.msk [vmem:[%s1692_s27 + $0x38] sm:$0xf] %vm1090_vm0, %v1336_v28  ;;  %1131 = vst.msk [vmem:[%s1692_s27 + $0xa0] sm:$0xf] %vm1090_vm0, %v1362_v29  ;;  %v855_v34 = vmax.f32 %v701_v30, 0.0  ;;  %v881_v35 = vmax.f32 %v805_v31, 0.0 }
 0x14c   : > { %v705_v36 = vpop.f32.mrf.mxu0  ;;  %v809_v37 = vpop.f32.mrf.mxu1 }
 0x14d   : > { %v1337_v38 = vpack.c.bf16 %v855_v34, %v855_v34  ;;  %v1363_v39 = vpack.c.bf16 %v881_v35, %v881_v35  ;;  %v706_v40 = vadd.f32 %v1684_v3, %v705_v36  ;;  %v810_v41 = vadd.f32 %v1684_v3, %v809_v37 }
 0x14e   : > { %v707_v42 = vpop.f32.mrf.mxu0  ;;  %v811_v43 = vpop.f32.mrf.mxu1 }
 0x14f   : > { %1106 = vst.msk [vmem:[%s1692_s27 + $0x3c] sm:$0xf] %vm1090_vm0, %v1337_v38  ;;  %1132 = vst.msk [vmem:[%s1692_s27 + $0xa4] sm:$0xf] %vm1090_vm0, %v1363_v39  ;;  %v856_v44 = vmax.f32 %v706_v40, 0.0  ;;  %v882_v45 = vmax.f32 %v810_v41, 0.0 }
 0x150   : > { %v708_v46 = vpop.f32.mrf.mxu0  ;;  %v812_v47 = vpop.f32.mrf.mxu1 }
 0x151   : > { %v1338_v48 = vpack.c.bf16 %v856_v44, %v856_v44  ;;  %v1364_v49 = vpack.c.bf16 %v882_v45, %v882_v45  ;;  %v709_v50 = vadd.f32 %v1684_v3, %v708_v46  ;;  %v813_v51 = vadd.f32 %v1684_v3, %v812_v47 }
 0x152   : > { %v710_v52 = vpop.f32.mrf.mxu0  ;;  %v814_v53 = vpop.f32.mrf.mxu1 }
 0x153   : > { %1107 = vst.msk [vmem:[%s1692_s27 + $0x40] sm:$0xf] %vm1090_vm0, %v1338_v48  ;;  %1133 = vst.msk [vmem:[%s1692_s27 + $0xa8] sm:$0xf] %vm1090_vm0, %v1364_v49  ;;  %v857_v54 = vmax.f32 %v709_v50, 0.0  ;;  %v883_v55 = vmax.f32 %v813_v51, 0.0 }
 0x154   : > { %v713_v56 = vpop.f32.mrf.mxu0  ;;  %v817_v57 = vpop.f32.mrf.mxu1 }
 0x155   : > { %v1339_v58 = vpack.c.bf16 %v857_v54, %v857_v54  ;;  %v1365_v59 = vpack.c.bf16 %v883_v55, %v883_v55  ;;  %v714_v60 = vadd.f32 %v1684_v3, %v713_v56  ;;  %v818_v61 = vadd.f32 %v1684_v3, %v817_v57 }
 0x156   : > { %v715_v62 = vpop.f32.mrf.mxu0  ;;  %v819_v63 = vpop.f32.mrf.mxu1 }
 0x157   : > { %1108 = vst.msk [vmem:[%s1692_s27 + $0x44] sm:$0xf] %vm1090_vm0, %v1339_v58  ;;  %1134 = vst.msk [vmem:[%s1692_s27 + $0xac] sm:$0xf] %vm1090_vm0, %v1365_v59  ;;  %v858_v0 = vmax.f32 %v714_v60, 0.0  ;;  %v884_v1 = vmax.f32 %v818_v61, 0.0 }
 0x158   : > { %v716_v2 = vpop.f32.mrf.mxu0  ;;  %v820_v4 = vpop.f32.mrf.mxu1 }
 0x159   : > { %v1340_v5 = vpack.c.bf16 %v858_v0, %v858_v0  ;;  %v1366_v6 = vpack.c.bf16 %v884_v1, %v884_v1  ;;  %v717_v7 = vadd.f32 %v1684_v3, %v716_v2  ;;  %v821_v8 = vadd.f32 %v1684_v3, %v820_v4 }
 0x15a   : > { %v718_v9 = vpop.f32.mrf.mxu0  ;;  %v822_v10 = vpop.f32.mrf.mxu1 }
 0x15b   : > { %1109 = vst.msk [vmem:[%s1692_s27 + $0x48] sm:$0xf] %vm1090_vm0, %v1340_v5  ;;  %1135 = vst.msk [vmem:[%s1692_s27 + $0xb0] sm:$0xf] %vm1090_vm0, %v1366_v6  ;;  %v859_v11 = vmax.f32 %v717_v7, 0.0  ;;  %v885_v12 = vmax.f32 %v821_v8, 0.0 }
 0x15c   : > { %v721_v13 = vpop.f32.mrf.mxu0  ;;  %v825_v14 = vpop.f32.mrf.mxu1 }
 0x15d   : > { %v1341_v15 = vpack.c.bf16 %v859_v11, %v859_v11  ;;  %v1367_v16 = vpack.c.bf16 %v885_v12, %v885_v12  ;;  %v722_v17 = vadd.f32 %v1684_v3, %v721_v13  ;;  %v826_v18 = vadd.f32 %v1684_v3, %v825_v14 }
 0x15e   : > { %v723_v19 = vpop.f32.mrf.mxu0  ;;  %v827_v20 = vpop.f32.mrf.mxu1 }
 0x15f   : > { %1110 = vst.msk [vmem:[%s1692_s27 + $0x4c] sm:$0xf] %vm1090_vm0, %v1341_v15  ;;  %1136 = vst.msk [vmem:[%s1692_s27 + $0xb4] sm:$0xf] %vm1090_vm0, %v1367_v16  ;;  %v860_v21 = vmax.f32 %v722_v17, 0.0  ;;  %v886_v22 = vmax.f32 %v826_v18, 0.0 }
 0x160   : > { %v724_v23 = vpop.f32.mrf.mxu0  ;;  %v828_v24 = vpop.f32.mrf.mxu1 }
 0x161   : > { %v1342_v25 = vpack.c.bf16 %v860_v21, %v860_v21  ;;  %v1368_v26 = vpack.c.bf16 %v886_v22, %v886_v22  ;;  %v725_v27 = vadd.f32 %v1684_v3, %v724_v23  ;;  %v829_v28 = vadd.f32 %v1684_v3, %v828_v24 }
 0x162   : > { %v726_v29 = vpop.f32.mrf.mxu0  ;;  %v830_v30 = vpop.f32.mrf.mxu1 }
 0x163   : > { %1111 = vst.msk [vmem:[%s1692_s27 + $0x50] sm:$0xf] %vm1090_vm0, %v1342_v25  ;;  %1137 = vst.msk [vmem:[%s1692_s27 + $0xb8] sm:$0xf] %vm1090_vm0, %v1368_v26  ;;  %v861_v31 = vmax.f32 %v725_v27, 0.0  ;;  %v887_v32 = vmax.f32 %v829_v28, 0.0 }
 0x164   : > { %v729_v33 = vpop.f32.mrf.mxu0  ;;  %v833_v34 = vpop.f32.mrf.mxu1 }
 0x165   : > { %v1343_v35 = vpack.c.bf16 %v861_v31, %v861_v31  ;;  %v1369_v36 = vpack.c.bf16 %v887_v32, %v887_v32  ;;  %v730_v37 = vadd.f32 %v1684_v3, %v729_v33  ;;  %v834_v38 = vadd.f32 %v1684_v3, %v833_v34 }
 0x166   : > { %v731_v39 = vpop.f32.mrf.mxu0  ;;  %v835_v40 = vpop.f32.mrf.mxu1 }
 0x167   : > { %1112 = vst.msk [vmem:[%s1692_s27 + $0x54] sm:$0xf] %vm1090_vm0, %v1343_v35  ;;  %1138 = vst.msk [vmem:[%s1692_s27 + $0xbc] sm:$0xf] %vm1090_vm0, %v1369_v36  ;;  %v862_v41 = vmax.f32 %v730_v37, 0.0  ;;  %v888_v42 = vmax.f32 %v834_v38, 0.0 }
 0x168   : > { %v732_v43 = vpop.f32.mrf.mxu0  ;;  %v836_v44 = vpop.f32.mrf.mxu1 }
 0x169   : > { %v1344_v45 = vpack.c.bf16 %v862_v41, %v862_v41  ;;  %v1370_v46 = vpack.c.bf16 %v888_v42, %v888_v42  ;;  %v733_v47 = vadd.f32 %v1684_v3, %v732_v43  ;;  %v837_v48 = vadd.f32 %v1684_v3, %v836_v44 }
 0x16a   : > { %v734_v49 = vpop.f32.mrf.mxu0  ;;  %v838_v50 = vpop.f32.mrf.mxu1 }
 0x16b   : > { %1113 = vst.msk [vmem:[%s1692_s27 + $0x58] sm:$0xf] %vm1090_vm0, %v1344_v45  ;;  %1139 = vst.msk [vmem:[%s1692_s27 + $0xc0] sm:$0xf] %vm1090_vm0, %v1370_v46  ;;  %v863_v51 = vmax.f32 %v733_v47, 0.0  ;;  %v889_v52 = vmax.f32 %v837_v48, 0.0 }
 0x16c   : > { %v737_v53 = vpop.f32.mrf.mxu0 }
 0x16d   : > { %v1345_v54 = vpack.c.bf16 %v863_v51, %v863_v51  ;;  %v1371_v55 = vpack.c.bf16 %v889_v52, %v889_v52  ;;  %v738_v56 = vadd.f32 %v1684_v3, %v737_v53 }
 0x16e   : > { %v739_v57 = vpop.f32.mrf.mxu0 }
 0x16f   : > { %1114 = vst.msk [vmem:[%s1692_s27 + $0x5c] sm:$0xf] %vm1090_vm0, %v1345_v54  ;;  %1140 = vst.msk [vmem:[%s1692_s27 + $0xc4] sm:$0xf] %vm1090_vm0, %v1371_v55  ;;  %v864_v58 = vmax.f32 %v738_v56, 0.0 }
 0x170   : > { %v740_v59 = vpop.f32.mrf.mxu0 }
 0x171   : > { %v1346_v60 = vpack.c.bf16 %v864_v58, %v864_v58  ;;  %v741_v61 = vadd.f32 %v1684_v3, %v740_v59 }
 0x172   : > { %v742_v62 = vpop.f32.mrf.mxu0 }
 0x173   : > { %1115 = vst.msk [vmem:[%s1692_s27 + $0x60] sm:$0xf] %vm1090_vm0, %v1346_v60  ;;  %v865_v63 = vmax.f32 %v741_v61, 0.0 }
 0x175   : > { %v1347_v0 = vpack.c.bf16 %v865_v63, %v865_v63 }
 0x177   : > { %1116 = vst.msk [vmem:[%s1692_s27 + $0x64] sm:$0xf] %vm1090_vm0, %v1347_v0 }
 0x178 PF: > { %s13_s12 = sadd.s32 1, %s1512_s12  }
 0x179   : > { %p10_p4 = scmp.ge.s32.totalorder %s13_s12, 4  }
 0x17b   :  { %12 = sbr.rel (!%p10_p4) target bundleno = 1 (0x1), region = 62 }

// kernel: forward.5
= control target key start
LH: loop header
LB: loop body
LE: loop exit
PB: predicated region body
PF: predicated region fallthrough
CT: control target
= control target key end

     0   :  { %s1155_s12 = smov 0   ;;  %s1340_s0 = inlined_call_operand.vmem [shape: bf16[2,81,512], index: 0, kind: input, shape index: {}]   ;;  %s1341_s1 = inlined_call_operand.vmem [shape: bf16[512,64], index: 1, kind: input, shape index: {}]   ;;  %s1342_s2 = inlined_call_operand.vmem [shape: f32[1,64], index: 2, kind: input, shape index: {}]   ;;  %s1343_s3 = inlined_call_operand.vmem [shape: bf16[2,81,64], index: 3, kind: output, shape index: {}]  }
   0x1 LB: > { %s859_s13 = sadd.s32 4294967295, %s1133_s12   ;;  %p863_p0 = scmp.ge.s32.totalorder %s1133_s12, 1  ;;  %s1133_s12 = sphi %s1155_s12, %s13_s12  }
   0x2   : > { %p137_p1 = scmp.lt.s32.totalorder %s1133_s12, 3 }
   0x4   : > { %p138_p2 = pnand %p863_p0, %p137_p1 }
   0x5   : > { %p161_p3 = scmp.lt.s32.totalorder (!%p138_p2), %s859_s13, 1 }
   0x6   : > { %141 = sbr.rel (%p138_p2) target bundleno = 292 (0x124), region = 32 }
   0xb   : > { %v1061_v0 = vld [vmem:[%s1341_s1 + $0x78] sm:$0xff]   ;;  %v1065_v4 = vld [vmem:[%s1341_s1 + $0x70] sm:$0xff]   ;;  %v1069_v8 = vld [vmem:[%s1341_s1 + $0x68] sm:$0xff]   ;;  %s1345_s13 = smov (!%p161_p3, %s859_s13), 1  ;;  %vm787_vm0 = vcmask 519168   ;;  %vm798_vm1 = vcmask 516096  }
   0xc   : > { %v1062_v1 = vld [vmem:[%s1341_s1 + $0xf8] sm:$0xff]   ;;  %947 = vmatprep.subr.bf16.mxu0 %v1061_v0  ;;  %v1066_v5 = vld [vmem:[%s1341_s1 + $0xf0] sm:$0xff]   ;;  %v1070_v9 = vld [vmem:[%s1341_s1 + $0xe8] sm:$0xff]   ;;  %s1051_s16 = smul.u32 176, %s1345_s13  ;;  %vm799_vm2 = vsmask.f32 256 }
   0xd   : > { %v1063_v2 = vld [vmem:[%s1341_s1 + $0x38] sm:$0xff]   ;;  %999 = vmatprep.subr.bf16.mxu1 %v1062_v1  ;;  %v1067_v6 = vld [vmem:[%s1341_s1 + $0x30] sm:$0xff]   ;;  %v1071_v10 = vld [vmem:[%s1341_s1 + $0x28] sm:$0xff]   ;;  %s1052_s7 = smul.u32 44, %s1345_s13 }
   0xe   : > { %v1064_v3 = vld [vmem:[%s1341_s1 + $0xb8] sm:$0xff]   ;;  %948 = vmatpush3.bf16.msra.mxu0 %v1063_v2  ;;  %v1068_v7 = vld [vmem:[%s1341_s1 + $0xb0] sm:$0xff]   ;;  %v1072_v11 = vld [vmem:[%s1341_s1 + $0xa8] sm:$0xff]   ;;  %s1263_s27 = scalar_lea.vmem %s1340_s0, %s1051_s16 }
   0xf   : > { %1000 = vmatpush3.bf16.msra.mxu1 %v1064_v3  ;;  %949 = vmatprep.subr.bf16.mxu0 %v1065_v4  ;;  %v1073_v12 = vld [vmem:[%s1341_s1 + $0x60] sm:$0xff]   ;;  %v1077_v16 = vld [vmem:[%s1341_s1 + $0x58] sm:$0xff]   ;;  %v1081_v20 = vld [vmem:[%s1341_s1 + $0x50] sm:$0xff]   ;;  %s1304_s10 = scalar_lea.vmem %s1343_s3, %s1052_s7 }
  0x10   : > { %1001 = vmatprep.subr.bf16.mxu1 %v1066_v5  ;;  %v1074_v13 = vld [vmem:[%s1341_s1 + $0xe0] sm:$0xff]   ;;  %v1078_v17 = vld [vmem:[%s1341_s1 + $0xd8] sm:$0xff]   ;;  %v1082_v21 = vld [vmem:[%s1341_s1 + $0xd0] sm:$0xff]  }
  0x11   : > { %v1075_v14 = vld [vmem:[%s1341_s1 + $0x20] sm:$0xff]   ;;  %v1079_v18 = vld [vmem:[%s1341_s1 + $0x18] sm:$0xff]   ;;  %v1083_v22 = vld [vmem:[%s1341_s1 + $0x10] sm:$0xff]  }
  0x12   : > { %950 = vmatpush3.bf16.msra.mxu0 %v1067_v6  ;;  %v1076_v15 = vld [vmem:[%s1341_s1 + $0xa0] sm:$0xff]   ;;  %v1080_v19 = vld [vmem:[%s1341_s1 + $0x98] sm:$0xff]   ;;  %v1084_v23 = vld [vmem:[%s1341_s1 + $0x90] sm:$0xff]  }
  0x13   : > { %1002 = vmatpush3.bf16.msra.mxu1 %v1068_v7  ;;  %951 = vmatprep.subr.bf16.mxu0 %v1069_v8  ;;  %v1085_v24 = vld [vmem:[%s1341_s1 + $0x48] sm:$0xff]   ;;  %v1089_v28 = vld [vmem:[%s1341_s1 + $0x40] sm:$0xff]   ;;  %vm800_vm3 = vmand %vm798_vm1, %vm799_vm2 }
  0x14   : > { %1003 = vmatprep.subr.bf16.mxu1 %v1070_v9  ;;  %v1086_v25 = vld [vmem:[%s1341_s1 + $0xc8] sm:$0xff]   ;;  %v1090_v29 = vld [vmem:[%s1341_s1 + $0xc0] sm:$0xff]  }
  0x15   : > { %v1087_v26 = vld [vmem:[%s1341_s1 + $0x8] sm:$0xff]   ;;  %v1091_v30 = vld [vmem:[%s1341_s1] sm:$0xff]  }
  0x16   : > { %952 = vmatpush3.bf16.msra.mxu0 %v1071_v10  ;;  %v1088_v27 = vld [vmem:[%s1341_s1 + $0x88] sm:$0xff]   ;;  %v1092_v31 = vld [vmem:[%s1341_s1 + $0x80] sm:$0xff]  }
  0x17   : > { %1004 = vmatpush3.bf16.msra.mxu1 %v1072_v11  ;;  %953 = vmatprep.subr.bf16.mxu0 %v1073_v12  ;;  %v1093_v32 = vld [vmem:[%s1263_s27] ss:$16 sps:$4 sm:$0xff]   ;;  %v1095_v33 = vld [vmem:[%s1263_s27 + $0x4] ss:$16 sps:$4 sm:$0xff]   ;;  %v1096_v34 = vld [vmem:[%s1263_s27 + $0x8] ss:$16 sps:$4 sm:$0xff]  }
  0x18   : > { %1005 = vmatprep.subr.bf16.mxu1 %v1074_v13  ;;  %v1098_v35 = vld [vmem:[%s1263_s27 + $0xc] ss:$16 sps:$4 sm:$0xff]   ;;  %603 = vmatprep.mubr.bf16.mxu0 %v1095_v33  ;;  %v1099_v36 = vld [vmem:[%s1263_s27 + $0x24] ss:$16 sps:$4 sm:$0xff]   ;;  %v1103_v38 = vld [vmem:[%s1263_s27 + $0x20] ss:$16 sps:$4 sm:$0xff]  }
  0x19   : > { %683 = vmatprep.mubr.bf16.mxu1 %v1098_v35  ;;  %v1101_v37 = vld [vmem:[%s1263_s27 + $0x2c] ss:$16 sps:$4 sm:$0xff]   ;;  %v1104_v39 = vld [vmem:[%s1263_s27 + $0x28] ss:$16 sps:$4 sm:$0xff]   ;;  %v1105_v40 = vld [vmem:[%s1263_s27 + $0x44] ss:$16 sps:$4 sm:$0xff]  }
  0x1a   : > { %954 = vmatpush3.bf16.msra.mxu0 %v1075_v14  ;;  %v1107_v41 = vld [vmem:[%s1263_s27 + $0x4c] ss:$16 sps:$4 sm:$0xff]   ;;  %v1109_v42 = vld [vmem:[%s1263_s27 + $0x40] ss:$16 sps:$4 sm:$0xff]   ;;  %v1110_v43 = vld [vmem:[%s1263_s27 + $0x48] ss:$16 sps:$4 sm:$0xff]  }
  0x1b   : > { %1006 = vmatpush3.bf16.msra.mxu1 %v1076_v15  ;;  %955 = vmatprep.subr.bf16.mxu0 %v1077_v16  ;;  %v1111_v44 = vld [vmem:[%s1263_s27 + $0x64] ss:$16 sps:$4 sm:$0xff]   ;;  %v1113_v45 = vld [vmem:[%s1263_s27 + $0x6c] ss:$16 sps:$4 sm:$0xff]   ;;  %v1115_v46 = vld [vmem:[%s1263_s27 + $0x60] ss:$16 sps:$4 sm:$0xff]  }
  0x1c   : > { %1007 = vmatprep.subr.bf16.mxu1 %v1078_v17  ;;  %v1116_v47 = vld [vmem:[%s1263_s27 + $0x68] ss:$16 sps:$4 sm:$0xff]   ;;  %v1117_v48 = vld [vmem:[%s1263_s27 + $0x84] ss:$16 sps:$4 sm:$0xff]   ;;  %v1119_v49 = vld [vmem:[%s1263_s27 + $0x8c] ss:$16 sps:$4 sm:$0xff]  }
  0x1d   : > { %v192_v50 = vld [vmem:[%s1263_s27 + $0xa0] sm:$0x11]  ;;  %v193_v51 = vld [vmem:[%s1263_s27 + $0xa8] sm:$0x11] }
  0x1e   : > { %956 = vmatpush3.bf16.msra.mxu0 %v1079_v18  ;;  %v1121_v52 = vld [vmem:[%s1263_s27 + $0x80] ss:$16 sps:$4 sm:$0xff]   ;;  %v1122_v53 = vld [vmem:[%s1263_s27 + $0x88] ss:$16 sps:$4 sm:$0xff]   ;;  %v888_v54 = vcombine.high %v192_v50, %v192_v50  ;;  %v890_v55 = vcombine.high %v193_v51, %v193_v51  ;;  %v887_v56 = vcombine.low %v192_v50, %v192_v50  ;;  %v889_v57 = vcombine.low %v193_v51, %v193_v51 }
  0x1f   : > { %1008 = vmatpush3.bf16.msra.mxu1 %v1080_v19  ;;  %957 = vmatprep.subr.bf16.mxu0 %v1081_v20  ;;  %v1296_v60 = vld [vmem:[%s1342_s2] ss:$0 sm:$0xff] }
  0x20   : > { %1009 = vmatprep.subr.bf16.mxu1 %v1082_v21 }
  0x22   : > { %958 = vmatpush3.bf16.msra.mxu0 %v1083_v22 }
  0x23   : > { %1010 = vmatpush3.bf16.msra.mxu1 %v1084_v23  ;;  %959 = vmatprep.subr.bf16.mxu0 %v1085_v24 }
  0x24   : > { %1011 = vmatprep.subr.bf16.mxu1 %v1086_v25 }
  0x26   : > { %960 = vmatpush3.bf16.msra.mxu0 %v1087_v26 }
  0x27   : > { %1012 = vmatpush3.bf16.msra.mxu1 %v1088_v27  ;;  %961 = vmatprep.subr.bf16.mxu0 %v1089_v28 }
  0x28   : > { %1013 = vmatprep.subr.bf16.mxu1 %v1090_v29 }
  0x2a   : > { %962 = vmatpush3.bf16.msra.mxu0 %v1091_v30 }
  0x2b   : > { %1014 = vmatpush3.bf16.msra.mxu1 %v1092_v31 }
  0x2d   : > { %604 = vmatmul.mubr.bf16.vlgmr.msra.gmra.mxu0 %v1093_v32 }
  0x2e   : > { %684 = vmatmul.mubr.bf16.vlgmr.msra.gmra.mxu1 %v1096_v34  ;;  %611 = vmatprep.mubr.bf16.mxu0 %v1099_v36 }
  0x2f   : > { %691 = vmatprep.mubr.bf16.mxu1 %v1101_v37 }
  0x35   : > { %612 = vmatmul.mubr.bf16.gmra.mxu0 %v1103_v38 }
  0x36   : > { %692 = vmatmul.mubr.bf16.gmra.mxu1 %v1104_v39  ;;  %619 = vmatprep.mubr.bf16.mxu0 %v1105_v40 }
  0x37   : > { %699 = vmatprep.mubr.bf16.mxu1 %v1107_v41 }
  0x3d   : > { %620 = vmatmul.mubr.bf16.gmra.mxu0 %v1109_v42 }
  0x3e   : > { %700 = vmatmul.mubr.bf16.gmra.mxu1 %v1110_v43  ;;  %627 = vmatprep.mubr.bf16.mxu0 %v1111_v44 }
  0x3f   : > { %707 = vmatprep.mubr.bf16.mxu1 %v1113_v45 }
  0x45   : > { %628 = vmatmul.mubr.bf16.gmra.mxu0 %v1115_v46 }
  0x46   : > { %708 = vmatmul.mubr.bf16.gmra.mxu1 %v1116_v47  ;;  %635 = vmatprep.mubr.bf16.mxu0 %v1117_v48 }
  0x47   : > { %715 = vmatprep.mubr.bf16.mxu1 %v1119_v49 }
  0x4d   : > { %636 = vmatmul.mubr.bf16.gmra.mxu0 %v1121_v52 }
  0x4e   : > { %716 = vmatmul.mubr.bf16.gmra.mxu1 %v1122_v53  ;;  %643 = vmatprep.mubr.bf16.mxu0 %v888_v54 }
  0x4f   : > { %723 = vmatprep.mubr.bf16.mxu1 %v890_v55 }
  0x55   : > { %644 = vmatmul.mubr.bf16.gmra.mxu0 %v887_v56 }
  0x56   : > { %724 = vmatmul.mubr.bf16.gmra.mxu1 %v889_v57 }
  0xed   : > { %v963_v58 = vpop.f32.mrf.mxu0 }
  0xee   : > { %v1015_v59 = vpop.f32.mrf.mxu1 }
  0xef   : > { %v964_v61 = vpop.f32.mrf.mxu0 }
  0xf0   : > { %v965_v62 = vadd.f32 %v964_v61, %v963_v58  ;;  %v1016_v63 = vpop.f32.mrf.mxu1 }
  0xf1   : > { %v966_v0 = vpop.f32.mrf.mxu0  ;;  %v1017_v2 = vadd.f32 %v1016_v63, %v1015_v59 }
  0xf2   : > { %v606_v1 = vadd.f32 %v965_v62, %v1296_v60  ;;  %v1018_v3 = vpop.f32.mrf.mxu1 }
  0xf3   : > { %v967_v4 = vpop.f32.mrf.mxu0 }
  0xf4   : > { %v686_v5 = vadd.f32 %v1017_v2, %v606_v1  ;;  %v968_v6 = vadd.f32 %v967_v4, %v966_v0  ;;  %v1019_v7 = vpop.f32.mrf.mxu1 }
  0xf5   : > { %v969_v8 = vpop.f32.mrf.mxu0  ;;  %v1020_v11 = vadd.f32 %v1019_v7, %v1018_v3 }
  0xf6   : > { %v731_v9 = vmax.f32 %v686_v5, 0.0  ;;  %v609_v10 = vadd.f32 %v968_v6, %v1296_v60  ;;  %v1021_v12 = vpop.f32.mrf.mxu1 }
  0xf7   : > { %v970_v13 = vpop.f32.mrf.mxu0 }
  0xf8   : > { %v936_v14 = vpack.c.bf16 %v731_v9, %v731_v9  ;;  %v689_v15 = vadd.f32 %v1020_v11, %v609_v10  ;;  %v971_v16 = vadd.f32 %v970_v13, %v969_v8  ;;  %v1022_v17 = vpop.f32.mrf.mxu1 }
  0xf9   : > { %v972_v18 = vpop.f32.mrf.mxu0  ;;  %v1023_v21 = vadd.f32 %v1022_v17, %v1021_v12 }
  0xfa   : > { %788 = vst.msk [vmem:[%s1304_s10] sm:$0xf] %vm787_vm0, %v936_v14  ;;  %v732_v19 = vmax.f32 %v689_v15, 0.0  ;;  %v614_v20 = vadd.f32 %v971_v16, %v1296_v60  ;;  %v1024_v22 = vpop.f32.mrf.mxu1 }
  0xfb   : > { %v973_v23 = vpop.f32.mrf.mxu0 }
  0xfc   : > { %v937_v24 = vpack.c.bf16 %v732_v19, %v732_v19  ;;  %v694_v25 = vadd.f32 %v1023_v21, %v614_v20  ;;  %v974_v26 = vadd.f32 %v973_v23, %v972_v18  ;;  %v1025_v27 = vpop.f32.mrf.mxu1 }
  0xfd   : > { %v975_v28 = vpop.f32.mrf.mxu0  ;;  %v1026_v31 = vadd.f32 %v1025_v27, %v1024_v22 }
  0xfe   : > { %789 = vst.msk [vmem:[%s1304_s10 + $0x4] sm:$0xf] %vm787_vm0, %v937_v24  ;;  %v733_v29 = vmax.f32 %v694_v25, 0.0  ;;  %v617_v30 = vadd.f32 %v974_v26, %v1296_v60  ;;  %v1027_v32 = vpop.f32.mrf.mxu1 }
  0xff   : > { %v976_v33 = vpop.f32.mrf.mxu0 }
 0x100   : > { %v938_v34 = vpack.c.bf16 %v733_v29, %v733_v29  ;;  %v697_v35 = vadd.f32 %v1026_v31, %v617_v30  ;;  %v977_v36 = vadd.f32 %v976_v33, %v975_v28  ;;  %v1028_v37 = vpop.f32.mrf.mxu1 }
 0x101   : > { %v978_v38 = vpop.f32.mrf.mxu0  ;;  %v1029_v41 = vadd.f32 %v1028_v37, %v1027_v32 }
 0x102   : > { %790 = vst.msk [vmem:[%s1304_s10 + $0x8] sm:$0xf] %vm787_vm0, %v938_v34  ;;  %v734_v39 = vmax.f32 %v697_v35, 0.0  ;;  %v622_v40 = vadd.f32 %v977_v36, %v1296_v60  ;;  %v1030_v42 = vpop.f32.mrf.mxu1 }
 0x103   : > { %v979_v43 = vpop.f32.mrf.mxu0 }
 0x104   : > { %v939_v44 = vpack.c.bf16 %v734_v39, %v734_v39  ;;  %v702_v45 = vadd.f32 %v1029_v41, %v622_v40  ;;  %v980_v46 = vadd.f32 %v979_v43, %v978_v38  ;;  %v1031_v47 = vpop.f32.mrf.mxu1 }
 0x105   : > { %v981_v48 = vpop.f32.mrf.mxu0  ;;  %v1032_v51 = vadd.f32 %v1031_v47, %v1030_v42 }
 0x106   : > { %791 = vst.msk [vmem:[%s1304_s10 + $0xc] sm:$0xf] %vm787_vm0, %v939_v44  ;;  %v735_v49 = vmax.f32 %v702_v45, 0.0  ;;  %v625_v50 = vadd.f32 %v980_v46, %v1296_v60  ;;  %v1033_v52 = vpop.f32.mrf.mxu1  ;;  %v801_v45 = vld [vmem:[%s1304_s10 + $0x28] sm:$0x1] }
 0x107   : > { %v982_v53 = vpop.f32.mrf.mxu0 }
 0x108   : > { %v940_v54 = vpack.c.bf16 %v735_v49, %v735_v49  ;;  %v705_v55 = vadd.f32 %v1032_v51, %v625_v50  ;;  %v983_v56 = vadd.f32 %v982_v53, %v981_v48  ;;  %v1034_v57 = vpop.f32.mrf.mxu1 }
 0x109   : > { %v984_v58 = vpop.f32.mrf.mxu0  ;;  %v1035_v62 = vadd.f32 %v1034_v57, %v1033_v52 }
 0x10a   : > { %792 = vst.msk [vmem:[%s1304_s10 + $0x10] sm:$0xf] %vm787_vm0, %v940_v54  ;;  %v736_v59 = vmax.f32 %v705_v55, 0.0  ;;  %v630_v61 = vadd.f32 %v983_v56, %v1296_v60  ;;  %v1036_v63 = vpop.f32.mrf.mxu1 }
 0x10b   : > { %v985_v0 = vpop.f32.mrf.mxu0 }
 0x10c   : > { %v941_v1 = vpack.c.bf16 %v736_v59, %v736_v59  ;;  %v710_v2 = vadd.f32 %v1035_v62, %v630_v61  ;;  %v986_v3 = vadd.f32 %v985_v0, %v984_v58  ;;  %v1037_v4 = vpop.f32.mrf.mxu1 }
 0x10d   : > { %v987_v5 = vpop.f32.mrf.mxu0  ;;  %v1038_v8 = vadd.f32 %v1037_v4, %v1036_v63 }
 0x10e   : > { %793 = vst.msk [vmem:[%s1304_s10 + $0x14] sm:$0xf] %vm787_vm0, %v941_v1  ;;  %v737_v6 = vmax.f32 %v710_v2, 0.0  ;;  %v633_v7 = vadd.f32 %v986_v3, %v1296_v60  ;;  %v1039_v9 = vpop.f32.mrf.mxu1 }
 0x10f   : > { %v988_v10 = vpop.f32.mrf.mxu0 }
 0x110   : > { %v942_v11 = vpack.c.bf16 %v737_v6, %v737_v6  ;;  %v713_v12 = vadd.f32 %v1038_v8, %v633_v7  ;;  %v989_v13 = vadd.f32 %v988_v10, %v987_v5  ;;  %v1040_v14 = vpop.f32.mrf.mxu1 }
 0x111   : > { %v990_v15 = vpop.f32.mrf.mxu0  ;;  %v1041_v18 = vadd.f32 %v1040_v14, %v1039_v9 }
 0x112   : > { %794 = vst.msk [vmem:[%s1304_s10 + $0x18] sm:$0xf] %vm787_vm0, %v942_v11  ;;  %v738_v16 = vmax.f32 %v713_v12, 0.0  ;;  %v638_v17 = vadd.f32 %v989_v13, %v1296_v60  ;;  %v1042_v19 = vpop.f32.mrf.mxu1 }
 0x113   : > { %v991_v20 = vpop.f32.mrf.mxu0 }
 0x114   : > { %v943_v21 = vpack.c.bf16 %v738_v16, %v738_v16  ;;  %v718_v22 = vadd.f32 %v1041_v18, %v638_v17  ;;  %v992_v23 = vadd.f32 %v991_v20, %v990_v15  ;;  %v1043_v24 = vpop.f32.mrf.mxu1 }
 0x115   : > { %v993_v25 = vpop.f32.mrf.mxu0  ;;  %v1044_v28 = vadd.f32 %v1043_v24, %v1042_v19 }
 0x116   : > { %795 = vst.msk [vmem:[%s1304_s10 + $0x1c] sm:$0xf] %vm787_vm0, %v943_v21  ;;  %v739_v26 = vmax.f32 %v718_v22, 0.0  ;;  %v641_v27 = vadd.f32 %v992_v23, %v1296_v60  ;;  %v1045_v29 = vpop.f32.mrf.mxu1 }
 0x117   : > { %v994_v30 = vpop.f32.mrf.mxu0 }
 0x118   : > { %v944_v31 = vpack.c.bf16 %v739_v26, %v739_v26  ;;  %v721_v32 = vadd.f32 %v1044_v28, %v641_v27  ;;  %v995_v33 = vadd.f32 %v994_v30, %v993_v25  ;;  %v1046_v34 = vpop.f32.mrf.mxu1 }
 0x119   : > { %v996_v35 = vpop.f32.mrf.mxu0  ;;  %v1047_v38 = vadd.f32 %v1046_v34, %v1045_v29 }
 0x11a   : > { %796 = vst.msk [vmem:[%s1304_s10 + $0x20] sm:$0xf] %vm787_vm0, %v944_v31  ;;  %v740_v36 = vmax.f32 %v721_v32, 0.0  ;;  %v646_v37 = vadd.f32 %v995_v33, %v1296_v60  ;;  %v1048_v39 = vpop.f32.mrf.mxu1 }
 0x11b   : > { %v997_v40 = vpop.f32.mrf.mxu0 }
 0x11c   : > { %v945_v41 = vpack.c.bf16 %v740_v36, %v740_v36  ;;  %v726_v42 = vadd.f32 %v1047_v38, %v646_v37  ;;  %v1049_v43 = vpop.f32.mrf.mxu1 }
 0x11e   : > { %797 = vst.msk [vmem:[%s1304_s10 + $0x24] sm:$0xf] %vm787_vm0, %v945_v41  ;;  %v741_v44 = vmax.f32 %v726_v42, 0.0 }
 0x120   : > { %v946_v46 = vpack.c.bf16 %v741_v44, %v741_v44 }
 0x122   : > { %v802_v47 = vsel %vm800_vm3, %v946_v46, %v801_v45 }
 0x123   : > { %803 = vst [vmem:[%s1304_s10 + $0x28] sm:$0x1] %v802_v47 }
 0x124 PF: > { %s13_s12 = sadd.s32 1, %s1133_s12  }
 0x125   : > { %p10_p4 = scmp.ge.s32.totalorder %s13_s12, 4  }
 0x127   :  { %12 = sbr.rel (!%p10_p4) target bundleno = 1 (0x1), region = 62 }

// kernel: forward.6
= control target key start
LH: loop header
LB: loop body
LE: loop exit
PB: predicated region body
PF: predicated region fallthrough
CT: control target
= control target key end

     0   :  { %s1185_s12 = smov 0   ;;  %s1364_s0 = inlined_call_operand.vmem [shape: bf16[2,49,576], index: 0, kind: input, shape index: {}]   ;;  %s1365_s1 = inlined_call_operand.vmem [shape: bf16[576,64], index: 1, kind: input, shape index: {}]   ;;  %s1366_s2 = inlined_call_operand.vmem [shape: f32[1,64], index: 2, kind: input, shape index: {}]   ;;  %s1367_s3 = inlined_call_operand.vmem [shape: bf16[2,49,64], index: 3, kind: output, shape index: {}]  }
   0x1 LB: > { %s889_s13 = sadd.s32 4294967295, %s1163_s12   ;;  %p893_p0 = scmp.ge.s32.totalorder %s1163_s12, 1  ;;  %s1163_s12 = sphi %s1185_s12, %s13_s12  }
   0x2   : > { %p137_p1 = scmp.lt.s32.totalorder %s1163_s12, 3 }
   0x4   : > { %p138_p2 = pnand %p893_p0, %p137_p1 }
   0x5   : > { %p161_p3 = scmp.lt.s32.totalorder (!%p138_p2), %s889_s13, 1 }
   0x6   : > { %141 = sbr.rel (%p138_p2) target bundleno = 284 (0x11c), region = 32 }
   0xb   : > { %v1095_v0 = vld [vmem:[%s1365_s1 + $0x78] sm:$0xff]   ;;  %v1099_v4 = vld [vmem:[%s1365_s1 + $0x70] sm:$0xff]   ;;  %v1103_v8 = vld [vmem:[%s1365_s1 + $0x68] sm:$0xff]   ;;  %s1371_s13 = smov (!%p161_p3, %s889_s13), 1  ;;  %vm580_vm0 = vcmask 523264   ;;  %vm828_vm1 = vcmask 516096  }
   0xc   : > { %v1096_v1 = vld [vmem:[%s1365_s1 + $0xf8] sm:$0xff]   ;;  %973 = vmatprep.subr.bf16.mxu0 %v1095_v0  ;;  %v1100_v5 = vld [vmem:[%s1365_s1 + $0xf0] sm:$0xff]   ;;  %v1104_v9 = vld [vmem:[%s1365_s1 + $0xe8] sm:$0xff]   ;;  %s1085_s16 = smul.u32 140, %s1371_s13  ;;  %vm829_vm2 = vsmask.f32 256 }
   0xd   : > { %v1097_v2 = vld [vmem:[%s1365_s1 + $0x38] sm:$0xff]   ;;  %1013 = vmatprep.subr.bf16.mxu1 %v1096_v1  ;;  %v1101_v6 = vld [vmem:[%s1365_s1 + $0x30] sm:$0xff]   ;;  %v1105_v10 = vld [vmem:[%s1365_s1 + $0x28] sm:$0xff]   ;;  %s1086_s17 = smul.u32 28, %s1371_s13  ;;  %vm821_vm3 = vcmask 519168  }
   0xe   : > { %v1098_v3 = vld [vmem:[%s1365_s1 + $0xb8] sm:$0xff]   ;;  %974 = vmatpush3.bf16.msra.mxu0 %v1097_v2  ;;  %v1102_v7 = vld [vmem:[%s1365_s1 + $0xb0] sm:$0xff]   ;;  %v1106_v11 = vld [vmem:[%s1365_s1 + $0xa8] sm:$0xff]   ;;  %s1293_s27 = scalar_lea.vmem %s1364_s0, %s1085_s16 }
   0xf   : > { %1014 = vmatpush3.bf16.msra.mxu1 %v1098_v3  ;;  %975 = vmatprep.subr.bf16.mxu0 %v1099_v4  ;;  %v1107_v12 = vld [vmem:[%s1365_s1 + $0x60] sm:$0xff]   ;;  %v1111_v16 = vld [vmem:[%s1365_s1 + $0x58] sm:$0xff]   ;;  %v1115_v20 = vld [vmem:[%s1365_s1 + $0x50] sm:$0xff]   ;;  %s1338_s20 = scalar_lea.vmem %s1367_s3, %s1086_s17 }
  0x10   : > { %1015 = vmatprep.subr.bf16.mxu1 %v1100_v5  ;;  %v1108_v13 = vld [vmem:[%s1365_s1 + $0xe0] sm:$0xff]   ;;  %v1112_v17 = vld [vmem:[%s1365_s1 + $0xd8] sm:$0xff]   ;;  %v1116_v21 = vld [vmem:[%s1365_s1 + $0xd0] sm:$0xff]  }
  0x11   : > { %v1109_v14 = vld [vmem:[%s1365_s1 + $0x20] sm:$0xff]   ;;  %v1113_v18 = vld [vmem:[%s1365_s1 + $0x18] sm:$0xff]   ;;  %v1117_v22 = vld [vmem:[%s1365_s1 + $0x10] sm:$0xff]  }
  0x12   : > { %976 = vmatpush3.bf16.msra.mxu0 %v1101_v6  ;;  %v1110_v15 = vld [vmem:[%s1365_s1 + $0xa0] sm:$0xff]   ;;  %v1114_v19 = vld [vmem:[%s1365_s1 + $0x98] sm:$0xff]   ;;  %v1118_v23 = vld [vmem:[%s1365_s1 + $0x90] sm:$0xff]  }
  0x13   : > { %1016 = vmatpush3.bf16.msra.mxu1 %v1102_v7  ;;  %977 = vmatprep.subr.bf16.mxu0 %v1103_v8  ;;  %v1119_v24 = vld [vmem:[%s1365_s1 + $0x48] sm:$0xff]   ;;  %v1123_v28 = vld [vmem:[%s1365_s1 + $0x40] sm:$0xff]   ;;  %v1133_v36 = vld [vmem:[%s1365_s1 + $0x118] sm:$0xff]  }
  0x14   : > { %1017 = vmatprep.subr.bf16.mxu1 %v1104_v9  ;;  %v1120_v25 = vld [vmem:[%s1365_s1 + $0xc8] sm:$0xff]   ;;  %v1124_v29 = vld [vmem:[%s1365_s1 + $0xc0] sm:$0xff]   ;;  %v1140_v39 = vld [vmem:[%s1365_s1 + $0x110] sm:$0xff]  }
  0x15   : > { %v1121_v26 = vld [vmem:[%s1365_s1 + $0x8] sm:$0xff]   ;;  %v1125_v30 = vld [vmem:[%s1365_s1] sm:$0xff]   ;;  %v1143_v43 = vld [vmem:[%s1293_s27 + $0x5c] ss:$20 sps:$4 sm:$0xff]  }
  0x16   : > { %978 = vmatpush3.bf16.msra.mxu0 %v1105_v10  ;;  %v1122_v27 = vld [vmem:[%s1365_s1 + $0x88] sm:$0xff]   ;;  %v1126_v31 = vld [vmem:[%s1365_s1 + $0x80] sm:$0xff]   ;;  %v190_v46 = vld [vmem:[%s1293_s27 + $0x78] sm:$0x11] }
  0x17   : > { %1018 = vmatpush3.bf16.msra.mxu1 %v1106_v11  ;;  %979 = vmatprep.subr.bf16.mxu0 %v1107_v12  ;;  %v1127_v32 = vld [vmem:[%s1293_s27] ss:$20 sps:$4 sm:$0xff]   ;;  %v1129_v33 = vld [vmem:[%s1293_s27 + $0x4] ss:$20 sps:$4 sm:$0xff]   ;;  %v1130_v34 = vld [vmem:[%s1293_s27 + $0x8] ss:$20 sps:$4 sm:$0xff]   ;;  %v913_v50 = vcombine.high %v190_v46, %v190_v46  ;;  %v912_v52 = vcombine.low %v190_v46, %v190_v46 }
  0x18   : > { %1019 = vmatprep.subr.bf16.mxu1 %v1108_v13  ;;  %v1132_v35 = vld [vmem:[%s1293_s27 + $0xc] ss:$20 sps:$4 sm:$0xff]   ;;  %625 = vmatprep.mubr.bf16.mxu0 %v1129_v33  ;;  %v1136_v38 = vld [vmem:[%s1293_s27 + $0x34] ss:$20 sps:$4 sm:$0xff]   ;;  %v1139_v41 = vld [vmem:[%s1293_s27 + $0x30] ss:$20 sps:$4 sm:$0xff]  }
  0x19   : > { %689 = vmatprep.mubr.bf16.mxu1 %v1132_v35  ;;  %v1134_v37 = vld [vmem:[%s1293_s27 + $0x2c] ss:$20 sps:$4 sm:$0xff]   ;;  %v1138_v40 = vld [vmem:[%s1293_s27 + $0x28] ss:$20 sps:$4 sm:$0xff]   ;;  %v1145_v48 = vld [vmem:[%s1293_s27 + $0x50] ss:$20 sps:$4 sm:$0xff]  }
  0x1a   : > { %980 = vmatpush3.bf16.msra.mxu0 %v1109_v14  ;;  %v1141_v42 = vld [vmem:[%s1293_s27 + $0x54] ss:$20 sps:$4 sm:$0xff]   ;;  %v1152_v45 = vld [vmem:[%s1365_s1 + $0x100] sm:$0xff]   ;;  %v1146_v49 = vld [vmem:[%s1293_s27 + $0x58] ss:$20 sps:$4 sm:$0xff]  }
  0x1b   : > { %1020 = vmatpush3.bf16.msra.mxu1 %v1110_v15  ;;  %981 = vmatprep.subr.bf16.mxu0 %v1111_v16  ;;  %v1147_v44 = vld [vmem:[%s1365_s1 + $0x108] sm:$0xff]   ;;  %v191_v47 = vld [vmem:[%s1293_s27 + $0x80] sm:$0x11]  ;;  %vm1341_vm4 = vmand %vm828_vm1, %vm829_vm2 }
  0x1c   : > { %1021 = vmatprep.subr.bf16.mxu1 %v1112_v17  ;;  %v915_v51 = vcombine.high %v191_v47, %v191_v47  ;;  %v914_v53 = vcombine.low %v191_v47, %v191_v47  ;;  %v1153_v54 = vld [vmem:[%s1293_s27 + $0x10] ss:$20 sps:$4 sm:$0xff]   ;;  %v1154_v55 = vld [vmem:[%s1293_s27 + $0x60] ss:$20 sps:$4 sm:$0xff]   ;;  %v1155_v56 = vld [vmem:[%s1293_s27 + $0x38] ss:$20 sps:$4 sm:$0xff]  }
  0x1d   : > { %v1156_v57 = vld [vmem:[%s1293_s27 + $0x88] ss:$0 sps:$4 sm:$0x11]  }
  0x1e   : > { %982 = vmatpush3.bf16.msra.mxu0 %v1113_v18 }
  0x1f   : > { %1022 = vmatpush3.bf16.msra.mxu1 %v1114_v19  ;;  %983 = vmatprep.subr.bf16.mxu0 %v1115_v20 }
  0x20   : > { %1023 = vmatprep.subr.bf16.mxu1 %v1116_v21  ;;  %v896_v21 = vld [vmem:[%s1366_s2] ss:$0 sm:$0xff] }
  0x22   : > { %984 = vmatpush3.bf16.msra.mxu0 %v1117_v22 }
  0x23   : > { %1024 = vmatpush3.bf16.msra.mxu1 %v1118_v23  ;;  %985 = vmatprep.subr.bf16.mxu0 %v1119_v24 }
  0x24   : > { %1025 = vmatprep.subr.bf16.mxu1 %v1120_v25 }
  0x26   : > { %986 = vmatpush3.bf16.msra.mxu0 %v1121_v26 }
  0x27   : > { %1026 = vmatpush3.bf16.msra.mxu1 %v1122_v27  ;;  %987 = vmatprep.subr.bf16.mxu0 %v1123_v28 }
  0x28   : > { %1027 = vmatprep.subr.bf16.mxu1 %v1124_v29 }
  0x2a   : > { %988 = vmatpush3.bf16.msra.mxu0 %v1125_v30 }
  0x2b   : > { %1028 = vmatpush3.bf16.msra.mxu1 %v1126_v31  ;;  %1061 = vmatprep.subr.bf16.mxu0 %v1133_v36 }
  0x2c   : > { %1077 = vmatprep.subr.bf16.mxu1 %v1133_v36 }
  0x2d   : > { %626 = vmatmul.mubr.bf16.vlgmr.msra.gmra.mxu0 %v1127_v32 }
  0x2e   : > { %690 = vmatmul.mubr.bf16.vlgmr.msra.gmra.mxu1 %v1130_v34  ;;  %1062 = vmatpush3.bf16.msra.mxu0 %v1133_v36 }
  0x2f   : > { %1081 = vmatpush3.bf16.msra.mxu1 %v1133_v36  ;;  %633 = vmatprep.mubr.bf16.mxu0 %v1134_v37 }
  0x30   : > { %697 = vmatprep.mubr.bf16.mxu1 %v1136_v38  ;;  %1063 = vmatprep.subr.bf16.mxu0 %v1140_v39 }
  0x31   : > { %1078 = vmatprep.subr.bf16.mxu1 %v1140_v39 }
  0x32   : > { %1064 = vmatpush3.bf16.msra.mxu0 %v1140_v39 }
  0x33   : > { %1082 = vmatpush3.bf16.msra.mxu1 %v1140_v39  ;;  %1065 = vmatprep.subr.bf16.mxu0 %v1147_v44 }
  0x34   : > { %1079 = vmatprep.subr.bf16.mxu1 %v1147_v44 }
  0x35   : > { %634 = vmatmul.mubr.bf16.gmra.mxu0 %v1138_v40 }
  0x36   : > { %698 = vmatmul.mubr.bf16.gmra.mxu1 %v1139_v41  ;;  %641 = vmatprep.mubr.bf16.mxu0 %v1141_v42 }
  0x37   : > { %705 = vmatprep.mubr.bf16.mxu1 %v1143_v43  ;;  %1066 = vmatpush3.bf16.msra.mxu0 %v1147_v44 }
  0x38   : > { %1083 = vmatpush3.bf16.msra.mxu1 %v1147_v44  ;;  %1067 = vmatprep.subr.bf16.mxu0 %v1152_v45 }
  0x39   : > { %1080 = vmatprep.subr.bf16.mxu1 %v1152_v45 }
  0x3b   : > { %1068 = vmatpush3.bf16.msra.mxu0 %v1152_v45 }
  0x3c   : > { %1084 = vmatpush3.bf16.msra.mxu1 %v1152_v45 }
  0x3d   : > { %642 = vmatmul.mubr.bf16.gmra.mxu0 %v1145_v48 }
  0x3e   : > { %706 = vmatmul.mubr.bf16.gmra.mxu1 %v1146_v49  ;;  %649 = vmatprep.mubr.bf16.mxu0 %v913_v50 }
  0x3f   : > { %713 = vmatprep.mubr.bf16.mxu1 %v915_v51 }
  0x45   : > { %650 = vmatmul.mubr.bf16.gmra.mxu0 %v912_v52 }
  0x46   : > { %714 = vmatmul.mubr.bf16.gmra.mxu1 %v914_v53  ;;  %1069 = vmatprep.mubr.msk.bf16.mxu0 %vm580_vm0, %v1153_v54 }
  0x47   : > { %1073 = vmatprep.mubr.msk.bf16.mxu1 %vm580_vm0, %v1154_v55 }
  0x4d   : > { %1070 = vmatmul.mubr.msk.bf16.vlgmr.msra.gmra.mxu0 %vm580_vm0, %v1155_v56 }
  0x4e   : > { %1074 = vmatmul.mubr.msk.bf16.vlgmr.msra.gmra.mxu1 %vm580_vm0, %v1156_v57 }
  0xed   : > { %v989_v58 = vpop.f32.mrf.mxu0 }
  0xee   : > { %v1029_v59 = vpop.f32.mrf.mxu1 }
  0xef   : > { %v990_v60 = vpop.f32.mrf.mxu0 }
  0xf0   : > { %v1030_v61 = vpop.f32.mrf.mxu1  ;;  %v991_v19 = vadd.f32 %v990_v60, %v989_v58 }
  0xf1   : > { %v992_v62 = vpop.f32.mrf.mxu0  ;;  %v1031_v39 = vadd.f32 %v1030_v61, %v1029_v59 }
  0xf2   : > { %v1032_v63 = vpop.f32.mrf.mxu1  ;;  %v628_v29 = vadd.f32 %v991_v19, %v896_v21 }
  0xf3   : > { %v993_v0 = vpop.f32.mrf.mxu0 }
  0xf4   : > { %v1033_v1 = vpop.f32.mrf.mxu1  ;;  %v994_v31 = vadd.f32 %v993_v0, %v992_v62  ;;  %v692_v50 = vadd.f32 %v1031_v39, %v628_v29 }
  0xf5   : > { %v995_v2 = vpop.f32.mrf.mxu0  ;;  %v1034_v55 = vadd.f32 %v1033_v1, %v1032_v63 }
  0xf6   : > { %v1035_v3 = vpop.f32.mrf.mxu1  ;;  %v631_v46 = vadd.f32 %v994_v31, %v896_v21 }
  0xf7   : > { %v996_v4 = vpop.f32.mrf.mxu0 }
  0xf8   : > { %v1036_v5 = vpop.f32.mrf.mxu1  ;;  %v997_v17 = vadd.f32 %v996_v4, %v995_v2  ;;  %v831_v4 = vld [vmem:[%s1338_s20 + $0x18] sm:$0x1] }
  0xf9   : > { %v998_v6 = vpop.f32.mrf.mxu0  ;;  %v1037_v32 = vadd.f32 %v1036_v5, %v1035_v3 }
  0xfa   : > { %v1038_v7 = vpop.f32.mrf.mxu1  ;;  %v636_v25 = vadd.f32 %v997_v17, %v896_v21 }
  0xfb   : > { %v999_v8 = vpop.f32.mrf.mxu0 }
  0xfc   : > { %v1039_v9 = vpop.f32.mrf.mxu1  ;;  %v1000_v26 = vadd.f32 %v999_v8, %v998_v6  ;;  %v700_v42 = vadd.f32 %v1037_v32, %v636_v25  ;;  %v695_v6 = vadd.f32 %v1034_v55, %v631_v46 }
  0xfd   : > { %v1001_v10 = vpop.f32.mrf.mxu0  ;;  %v1040_v47 = vadd.f32 %v1039_v9, %v1038_v7 }
  0xfe   : > { %v1041_v11 = vpop.f32.mrf.mxu1  ;;  %v639_v40 = vadd.f32 %v1000_v26, %v896_v21 }
  0xff   : > { %v1002_v12 = vpop.f32.mrf.mxu0 }
 0x100   : > { %v1042_v13 = vpop.f32.mrf.mxu1  ;;  %v1003_v23 = vadd.f32 %v1002_v12, %v1001_v10  ;;  %v703_v59 = vadd.f32 %v1040_v47, %v639_v40 }
 0x101   : > { %v1004_v14 = vpop.f32.mrf.mxu0  ;;  %v1043_v44 = vadd.f32 %v1042_v13, %v1041_v11 }
 0x102   : > { %v1044_v15 = vpop.f32.mrf.mxu1  ;;  %v644_v36 = vadd.f32 %v1003_v23, %v896_v21 }
 0x103   : > { %v1005_v16 = vpop.f32.mrf.mxu0 }
 0x104   : > { %v1045_v18 = vpop.f32.mrf.mxu1  ;;  %v1006_v37 = vadd.f32 %v1005_v16, %v1004_v14  ;;  %v708_v54 = vadd.f32 %v1043_v44, %v644_v36 }
 0x105   : > { %v1007_v20 = vpop.f32.mrf.mxu0  ;;  %v1046_v60 = vadd.f32 %v1045_v18, %v1044_v15 }
 0x106   : > { %v1047_v22 = vpop.f32.mrf.mxu1  ;;  %v647_v51 = vadd.f32 %v1006_v37, %v896_v21 }
 0x107   : > { %v1008_v24 = vpop.f32.mrf.mxu0 }
 0x108   : > { %v1009_v27 = vadd.f32 %v1008_v24, %v1007_v20  ;;  %v1048_v28 = vpop.f32.mrf.mxu1  ;;  %v711_v10 = vadd.f32 %v1046_v60, %v647_v51 }
 0x109   : > { %v1010_v30 = vpop.f32.mrf.mxu0  ;;  %v1049_v34 = vadd.f32 %v1048_v28, %v1047_v22 }
 0x10a   : > { %v652_v33 = vadd.f32 %v1009_v27, %v896_v21  ;;  %v1050_v35 = vpop.f32.mrf.mxu1 }
 0x10b   : > { %v1011_v38 = vpop.f32.mrf.mxu0 }
 0x10c   : > { %v1051_v41 = vpop.f32.mrf.mxu1  ;;  %v716_v43 = vadd.f32 %v1049_v34, %v652_v33 }
 0x10d   : > { %v1071_v45 = vpop.f32.mrf.mxu0 }
 0x10e   : > { %v764_v48 = vadd.f32 %v1071_v45, %v700_v42  ;;  %v1075_v49 = vpop.f32.mrf.mxu1 }
 0x10f   : > { %v780_v52 = vadd.f32 %v1075_v49, %v716_v43  ;;  %v755_v53 = vpop.f32.mrf.mxu0 }
 0x110   : > { %v787_v56 = vmax.f32 %v764_v48, 0.0  ;;  %v756_v57 = vadd.f32 %v755_v53, %v692_v50  ;;  %v771_v58 = vpop.f32.mrf.mxu1 }
 0x111   : > { %v791_v61 = vmax.f32 %v780_v52, 0.0  ;;  %v772_v62 = vadd.f32 %v771_v58, %v708_v54  ;;  %v1072_v0 = vpop.f32.mrf.mxu0 }
 0x112   : > { %v968_v2 = vpack.c.bf16 %v787_v56, %v787_v56  ;;  %v785_v5 = vmax.f32 %v756_v57, 0.0  ;;  %v767_v63 = vadd.f32 %v1072_v0, %v703_v59  ;;  %v1076_v1 = vpop.f32.mrf.mxu1 }
 0x113   : > { %v972_v7 = vpack.c.bf16 %v791_v61, %v791_v61  ;;  %v789_v8 = vmax.f32 %v772_v62, 0.0  ;;  %v758_v9 = vpop.f32.mrf.mxu0 }
 0x114   : > { %824 = vst.msk [vmem:[%s1338_s20 + $0x8] sm:$0xf] %vm821_vm3, %v968_v2  ;;  %v966_v11 = vpack.c.bf16 %v785_v5, %v785_v5  ;;  %v788_v12 = vmax.f32 %v767_v63, 0.0  ;;  %v759_v13 = vadd.f32 %v758_v9, %v695_v6  ;;  %v774_v14 = vpop.f32.mrf.mxu1 }
 0x115   : > { %v832_v15 = vsel %vm1341_vm4, %v972_v7, %v831_v4  ;;  %v970_v16 = vpack.c.bf16 %v789_v8, %v789_v8  ;;  %v775_v17 = vadd.f32 %v774_v14, %v711_v10 }
 0x116   : > { %833 = vst [vmem:[%s1338_s20 + $0x18] sm:$0x1] %v832_v15  ;;  %822 = vst.msk [vmem:[%s1338_s20] sm:$0xf] %vm821_vm3, %v966_v11  ;;  %v969_v18 = vpack.c.bf16 %v788_v12, %v788_v12  ;;  %v786_v19 = vmax.f32 %v759_v13, 0.0 }
 0x117   : > { %826 = vst.msk [vmem:[%s1338_s20 + $0x10] sm:$0xf] %vm821_vm3, %v970_v16  ;;  %v790_v20 = vmax.f32 %v775_v17, 0.0 }
 0x118   : > { %825 = vst.msk [vmem:[%s1338_s20 + $0xc] sm:$0xf] %vm821_vm3, %v969_v18  ;;  %v967_v21 = vpack.c.bf16 %v786_v19, %v786_v19 }
 0x119   : > { %v971_v22 = vpack.c.bf16 %v790_v20, %v790_v20 }
 0x11a   : > { %823 = vst.msk [vmem:[%s1338_s20 + $0x4] sm:$0xf] %vm821_vm3, %v967_v21 }
 0x11b   : > { %827 = vst.msk [vmem:[%s1338_s20 + $0x14] sm:$0xf] %vm821_vm3, %v971_v22 }
 0x11c PF: > { %s13_s12 = sadd.s32 1, %s1163_s12  }
 0x11d   : > { %p10_p4 = scmp.ge.s32.totalorder %s13_s12, 4  }
 0x11f   :  { %12 = sbr.rel (!%p10_p4) target bundleno = 1 (0x1), region = 62 }

// kernel: forward.7
= control target key start
LH: loop header
LB: loop body
LE: loop exit
PB: predicated region body
PF: predicated region fallthrough
CT: control target
= control target key end

     0   :  { %10 = vsyncpa [#allocation3], 0  ;;  %s11637_s0 = inlined_call_operand.vmem [shape: bf16[2,1,3136], index: 0, kind: input, shape index: {}]   ;;  %s11638_s1 = inlined_call_operand.vmem [shape: bf16[3136,512], index: 1, kind: input, shape index: {}]   ;;  %s11639_s2 = inlined_call_operand.vmem [shape: f32[1,512], index: 2, kind: input, shape index: {}]   ;;  %s11640_s3 = inlined_call_operand.vmem [shape: bf16[512,128], index: 3, kind: input, shape index: {}]   ;;  %s11641_s4 = inlined_call_operand.vmem [shape: f32[1,128], index: 4, kind: input, shape index: {}]   ;;  %s11642_s5 = inlined_call_operand.hbm [shape: f32[2,1,128], index: 5, kind: output, shape index: {}]  }
   0x1   :  { %12 = vsyncpa [#allocation3 + $0x1], 0  ;;  %s8842_s18 = smov 0   ;;  %s8844_s19 = smov 0  }
   0x2   :  { %s8846_s20 = smov 0   ;;  %s8848_s21 = smov 0  }
   0x3 LB: > { %s8863_s22 = sadd.s32 4294967295, %s8807_s21   ;;  %s6623_s23 = sadd.s32 4294967294, %s8807_s21   ;;  %s8807_s21 = sphi %s8848_s21, %s11648_s21   ;;  %s8803_s20 = sphi %s8846_s20, %s11647_s20   ;;  %s8799_s19 = sphi %s8844_s19, %s11646_s19   ;;  %s8795_s18 = sphi %s8842_s18, %s11645_s18  }
   0x4   : > { %s8867_s24 = sadd.s32 1, %s8807_s21   ;;  %s135_s25 = sadd.s32 1, %s8803_s20 }
   0x5   : > { %s132_s26 = ssub.s32 %s8807_s21, %s8867_s24  ;;  %p145_p0 = scmp.ne.s32.totalorder %s8803_s20, %s8799_s19 }
   0x6   : > { %p133_p1 = scmp.eq.s32.totalorder %s132_s26, 0  ;;  %p146_p2 = scmp.eq.s32.totalorder %s8863_s22, 1 }
   0x7   : > { %p151_p3 = scmp.ne.s32.totalorder %s8799_s19, %s8795_s18  ;;  %p152_p4 = scmp.eq.s32.totalorder %s6623_s23, 1 }
   0x8   : > { %s8878_s27 = scalar_select %p133_p1, %s8803_s20, %s135_s25  }
   0x9   : > { %p8880_p5 = por %p146_p2, %p145_p0  ;;  %p8884_p6 = por %p152_p4, %p151_p3 }
   0xa   : > { %p6626_p7 = scmp.ge.s32.totalorder %s8807_s21, 1  ;;  %p189_p8 = scmp.lt.s32.totalorder %s8807_s21, 3 }
   0xc   : > { %p190_p9 = pnand %p6626_p7, %p189_p8 }
   0xd   : > { %p215_p10 = scmp.lt.s32.totalorder (!%p190_p9), %s8863_s22, 1  ;;  %s7446_s16 = sshll.u32 (!%p190_p9), %s8863_s22, 4 }
   0xe   : > { %193 = sbr.rel (%p190_p9) target bundleno = 1220 (0x4c4), region = 40  ;;  %s11602_s6 = scalar_lea.hbm (!%p190_p9), %s11642_s5, %s7446_s16 }
  0x13   : > { %v7535_v0 = vld [vmem:[%s11638_s1 + $0xe4] ss:$16 sps:$4 sm:$0xff]   ;;  %v7539_v2 = vld [vmem:[%s11638_s1 + $0xe0] ss:$16 sps:$4 sm:$0xff]   ;;  %s216_s13 = scalar_select %p215_p10, %s8863_s22, 1  ;;  %v1017_v38 = vlaneseq  ;;  %vm5139_vm0 = vcmask 523264  }
  0x14   : > { %v7537_v1 = vld [vmem:[%s11638_s1 + $0x2e4] ss:$16 sps:$4 sm:$0xff]   ;;  %5143 = vmatprep.subr.bf16.mxu0 %v7535_v0  ;;  %v7540_v3 = vld [vmem:[%s11638_s1 + $0x2e0] ss:$16 sps:$4 sm:$0xff]   ;;  %v8809_v36 = vmov 1966171168  }
  0x15   : > { %5184 = vmatprep.subr.bf16.mxu1 %v7537_v1  ;;  %v7541_v4 = vld [vmem:[%s11638_s1 + $0xc4] ss:$16 sps:$4 sm:$0xff]   ;;  %5144 = vmatpush1.bf16.msra.mxu0 %v7539_v2  ;;  %v7545_v6 = vld [vmem:[%s11638_s1 + $0xc0] ss:$16 sps:$4 sm:$0xff]   ;;  %v1015_v37 = vunpack.c.l.s4 %v8809_v36  ;;  %s7493_s26 = smul.u32 25, %s216_s13  ;;  %v9009_v43 = vshrl.u32 %v1017_v38, 7 }
  0x16   : > { %5185 = vmatpush1.bf16.msra.mxu1 %v7540_v3  ;;  %v7543_v5 = vld [vmem:[%s11638_s1 + $0x2c4] ss:$16 sps:$4 sm:$0xff]   ;;  %5145 = vmatprep.subr.bf16.mxu0 %v7541_v4  ;;  %v7546_v7 = vld [vmem:[%s11638_s1 + $0x2c0] ss:$16 sps:$4 sm:$0xff]   ;;  %s213_s13 = sand.u32 1, %s8799_s19   ;;  %s8811_s22 = smov [#allocation2]  }
  0x17   : > { %5186 = vmatprep.subr.bf16.mxu1 %v7543_v5  ;;  %v7547_v8 = vld [vmem:[%s11638_s1 + $0xa4] ss:$16 sps:$4 sm:$0xff]   ;;  %v7551_v10 = vld [vmem:[%s11638_s1 + $0xa0] ss:$16 sps:$4 sm:$0xff]   ;;  %v1016_v42 = vunpack.c.0.s8 %v1015_v37  ;;  %s9029_s17 = scalar_lea.vmem %s11637_s0, %s7493_s26  ;;  %s214_s23 = scalar_lea.vmem [#allocation2], %s213_s13 }
  0x18   : > { %v7549_v9 = vld [vmem:[%s11638_s1 + $0x2a4] ss:$16 sps:$4 sm:$0xff]   ;;  %v7552_v11 = vld [vmem:[%s11638_s1 + $0x2a0] ss:$16 sps:$4 sm:$0xff]   ;;  %s6568_s25 = sshll.u32 %s214_s23, 4  ;;  %s6556_s7 = scalar_lea.sflag [#allocation3], %s213_s13  ;;  %s6569_s25 = int_to_ptr.vmem [resolvable:$true] %s6568_s25 }
  0x19   : > { %5146 = vmatpush1.bf16.msra.mxu0 %v7545_v6  ;;  %v7553_v12 = vld [vmem:[%s11638_s1 + $0x84] ss:$16 sps:$4 sm:$0xff]   ;;  %v7557_v14 = vld [vmem:[%s11638_s1 + $0x80] ss:$16 sps:$4 sm:$0xff]   ;;  %v9032_v49 = vsub.s32 %v1016_v42, %v9009_v43  ;;  %s8747_s26 = scalar_lea.vmem %s6569_s25, 16  ;;  %s8751_s8 = sshll.u32 %s8811_s22, 4  ;;  %s8752_s8 = int_to_ptr.vmem [resolvable:$false] %s8751_s8 }
  0x1a   : > { %5187 = vmatpush1.bf16.msra.mxu1 %v7546_v7  ;;  %5147 = vmatprep.subr.bf16.mxu0 %v7547_v8  ;;  %v7555_v13 = vld [vmem:[%s11638_s1 + $0x284] ss:$16 sps:$4 sm:$0xff]   ;;  %v7558_v15 = vld [vmem:[%s11638_s1 + $0x280] ss:$16 sps:$4 sm:$0xff]   ;;  %p8748_p11 = scmp.ne.s32.totalorder %s6569_s25, %s8747_s26  ;;  %s8753_s9 = scalar_lea.vmem %s8752_s8, 32 }
  0x1b   : > { %5188 = vmatprep.subr.bf16.mxu1 %v7549_v9  ;;  %v7559_v16 = vld [vmem:[%s11638_s1 + $0x64] ss:$16 sps:$4 sm:$0xff]   ;;  %v7563_v18 = vld [vmem:[%s11638_s1 + $0x60] ss:$16 sps:$4 sm:$0xff]   ;;  %p8754_p0 = scmp.lt.s32.totalorder %s6569_s25, %s8752_s8  ;;  %p8755_p1 = scmp.lt.s32.totalorder %s8753_s9, %s8747_s26 }
  0x1c   : > { %v7561_v17 = vld [vmem:[%s11638_s1 + $0x264] ss:$16 sps:$4 sm:$0xff]   ;;  %v7564_v19 = vld [vmem:[%s11638_s1 + $0x260] ss:$16 sps:$4 sm:$0xff]   ;;  %p8749_p12 = pnand %p8748_p11, %p8880_p5 }
  0x1d   : > { %5148 = vmatpush1.bf16.msra.mxu0 %v7551_v10  ;;  %v7565_v20 = vld [vmem:[%s11638_s1 + $0x44] ss:$16 sps:$4 sm:$0xff]   ;;  %v7569_v22 = vld [vmem:[%s11638_s1 + $0x40] ss:$16 sps:$4 sm:$0xff]   ;;  %p8756_p2 = por %p8755_p1, %p8754_p0 }
  0x1e   : > { %5189 = vmatpush1.bf16.msra.mxu1 %v7552_v11  ;;  %5149 = vmatprep.subr.bf16.mxu0 %v7553_v12  ;;  %v7567_v21 = vld [vmem:[%s11638_s1 + $0x244] ss:$16 sps:$4 sm:$0xff]   ;;  %v7570_v23 = vld [vmem:[%s11638_s1 + $0x240] ss:$16 sps:$4 sm:$0xff]   ;;  %p8750_p13 = pneg %p8749_p12 }
  0x1f   : > { %5190 = vmatprep.subr.bf16.mxu1 %v7555_v13  ;;  %v7571_v24 = vld [vmem:[%s11638_s1 + $0x24] ss:$16 sps:$4 sm:$0xff]   ;;  %v7575_v26 = vld [vmem:[%s11638_s1 + $0x20] ss:$16 sps:$4 sm:$0xff]  }
  0x20   : > { %v7573_v25 = vld [vmem:[%s11638_s1 + $0x224] ss:$16 sps:$4 sm:$0xff]   ;;  %v7576_v27 = vld [vmem:[%s11638_s1 + $0x220] ss:$16 sps:$4 sm:$0xff]   ;;  %p8757_p3 = pnand %p8756_p2, %p8750_p13 }
  0x21   : > { %5150 = vmatpush1.bf16.msra.mxu0 %v7557_v14  ;;  %v7577_v28 = vld [vmem:[%s11638_s1 + $0x4] ss:$16 sps:$4 sm:$0xff]   ;;  %v7581_v30 = vld [vmem:[%s11638_s1] ss:$16 sps:$4 sm:$0xff]  }
  0x22   : > { %5191 = vmatpush1.bf16.msra.mxu1 %v7558_v15  ;;  %5151 = vmatprep.subr.bf16.mxu0 %v7559_v16  ;;  %v7579_v29 = vld [vmem:[%s11638_s1 + $0x204] ss:$16 sps:$4 sm:$0xff]   ;;  %v7582_v31 = vld [vmem:[%s11638_s1 + $0x200] ss:$16 sps:$4 sm:$0xff]  }
  0x23   : > { %5192 = vmatprep.subr.bf16.mxu1 %v7561_v17  ;;  %v7583_v32 = vld [vmem:[%s11638_s1 + $0x1e4] ss:$16 sps:$4 sm:$0xff]   ;;  %v7587_v34 = vld [vmem:[%s11638_s1 + $0x1e0] ss:$16 sps:$4 sm:$0xff]  }
  0x24   : > { %v7585_v33 = vld [vmem:[%s11638_s1 + $0x3e4] ss:$16 sps:$4 sm:$0xff]   ;;  %v7588_v35 = vld [vmem:[%s11638_s1 + $0x3e0] ss:$16 sps:$4 sm:$0xff]  }
  0x25   : > { %5152 = vmatpush1.bf16.msra.mxu0 %v7563_v18  ;;  %v7589_v39 = vld [vmem:[%s11638_s1 + $0x1c4] ss:$16 sps:$4 sm:$0xff]   ;;  %v7593_v41 = vld [vmem:[%s11638_s1 + $0x1c0] ss:$16 sps:$4 sm:$0xff]  }
  0x26   : > { %5193 = vmatpush1.bf16.msra.mxu1 %v7564_v19  ;;  %5153 = vmatprep.subr.bf16.mxu0 %v7565_v20  ;;  %v7591_v40 = vld [vmem:[%s11638_s1 + $0x3c4] ss:$16 sps:$4 sm:$0xff]   ;;  %v7594_v44 = vld [vmem:[%s11638_s1 + $0x3c0] ss:$16 sps:$4 sm:$0xff]  }
  0x27   : > { %5194 = vmatprep.subr.bf16.mxu1 %v7567_v21  ;;  %v7595_v45 = vld [vmem:[%s11638_s1 + $0x1a4] ss:$16 sps:$4 sm:$0xff]   ;;  %v7599_v47 = vld [vmem:[%s11638_s1 + $0x1a0] ss:$16 sps:$4 sm:$0xff]  }
  0x28   : > { %v7597_v46 = vld [vmem:[%s11638_s1 + $0x3a4] ss:$16 sps:$4 sm:$0xff]   ;;  %v7600_v48 = vld [vmem:[%s11638_s1 + $0x3a0] ss:$16 sps:$4 sm:$0xff]  }
  0x29   : > { %5154 = vmatpush1.bf16.msra.mxu0 %v7569_v22  ;;  %v7601_v50 = vld [vmem:[%s11638_s1 + $0x184] ss:$16 sps:$4 sm:$0xff]   ;;  %v7605_v53 = vld [vmem:[%s11638_s1 + $0x180] ss:$16 sps:$4 sm:$0xff]  }
  0x2a   : > { %5195 = vmatpush1.bf16.msra.mxu1 %v7570_v23  ;;  %5155 = vmatprep.subr.bf16.mxu0 %v7571_v24  ;;  %v7603_v51 = vld [vmem:[%s11638_s1 + $0x384] ss:$16 sps:$4 sm:$0xff]   ;;  %v7606_v55 = vld [vmem:[%s11638_s1 + $0x380] ss:$16 sps:$4 sm:$0xff]  }
  0x2b   : > { %5196 = vmatprep.subr.bf16.mxu1 %v7573_v25  ;;  %v220_v52 = vld [vmem:[%s9029_s17] sm:$0xff] }
  0x2c   : > { %v1020_v54 = vrot.slane %v220_v52, %v9032_v49  ;;  %v7607_v56 = vld [vmem:[%s11638_s1 + $0x164] ss:$16 sps:$4 sm:$0xff]   ;;  %v7611_v59 = vld [vmem:[%s11638_s1 + $0x160] ss:$16 sps:$4 sm:$0xff]   ;;  %v1013_v1 = vcombine.high %v220_v52, %v220_v52 }
  0x2d   : > { %5156 = vmatpush1.bf16.msra.mxu0 %v7575_v26  ;;  %v7609_v57 = vld [vmem:[%s11638_s1 + $0x364] ss:$16 sps:$4 sm:$0xff]   ;;  %v7612_v61 = vld [vmem:[%s11638_s1 + $0x360] ss:$16 sps:$4 sm:$0xff]  }
  0x2e   : > { %5197 = vmatpush1.bf16.msra.mxu1 %v7576_v27  ;;  %5157 = vmatprep.subr.bf16.mxu0 %v7577_v28  ;;  %v1028_v58 = vcombine.high %v1020_v54, %v1020_v54  ;;  %v7613_v62 = vld [vmem:[%s11638_s1 + $0x144] ss:$16 sps:$4 sm:$0xff]   ;;  %v7617_v2 = vld [vmem:[%s11638_s1 + $0x140] ss:$16 sps:$4 sm:$0xff]   ;;  %v9088_v6 = vrot.slane %v1013_v1, %v9032_v49  ;;  %v9108_v13 = vrot.slane %v1020_v54, %v9032_v49 }
  0x2f   : > { %5198 = vmatprep.subr.bf16.mxu1 %v7579_v29  ;;  %v7615_v63 = vld [vmem:[%s11638_s1 + $0x344] ss:$16 sps:$4 sm:$0xff]   ;;  %v7618_v3 = vld [vmem:[%s11638_s1 + $0x340] ss:$16 sps:$4 sm:$0xff]  }
  0x30   : > { %v9058_v60 = vrot.slane %v1028_v58, %v9032_v49  ;;  %v7619_v4 = vld [vmem:[%s11638_s1 + $0x124] ss:$16 sps:$4 sm:$0xff]   ;;  %v7623_v7 = vld [vmem:[%s11638_s1 + $0x120] ss:$16 sps:$4 sm:$0xff]   ;;  %v1029_v11 = vcombine.high %v9088_v6, %v9088_v6  ;;  %v9124_v18 = vcombine.high %v9108_v13, %v9108_v13 }
  0x31   : > { %5158 = vmatpush1.bf16.msra.mxu0 %v7581_v30  ;;  %v7621_v5 = vld [vmem:[%s11638_s1 + $0x324] ss:$16 sps:$4 sm:$0xff]   ;;  %v7624_v8 = vld [vmem:[%s11638_s1 + $0x320] ss:$16 sps:$4 sm:$0xff]  }
  0x32   : > { %5199 = vmatpush1.bf16.msra.mxu1 %v7582_v31  ;;  %5159 = vmatprep.subr.bf16.mxu0 %v7583_v32  ;;  %v9071_v0 = vcombine.high %v9058_v60, %v9058_v60  ;;  %v7625_v9 = vld [vmem:[%s11638_s1 + $0x104] ss:$16 sps:$4 sm:$0xff]   ;;  %v7629_v12 = vld [vmem:[%s11638_s1 + $0x100] ss:$16 sps:$4 sm:$0xff]   ;;  %v9120_v17 = vrot.slane %v1029_v11, %v9032_v49 }
  0x33   : > { %5200 = vmatprep.subr.bf16.mxu1 %v7585_v33  ;;  %5175 = vmatprep.mubr.bf16.mxu0 %v9058_v60  ;;  %v7627_v10 = vld [vmem:[%s11638_s1 + $0x304] ss:$16 sps:$4 sm:$0xff]   ;;  %v7630_v14 = vld [vmem:[%s11638_s1 + $0x300] ss:$16 sps:$4 sm:$0xff]  }
  0x34   : > { %5216 = vmatprep.mubr.bf16.mxu1 %v9071_v0  ;;  %v7633_v15 = vld [vmem:[%s11638_s1 + $0x4e4] ss:$16 sps:$4 sm:$0xff]   ;;  %v7631_v19 = vld [vmem:[%s11638_s1 + $0x4e0] ss:$16 sps:$4 sm:$0xff]   ;;  %v9140_v23 = vcombine.high %v9120_v17, %v9120_v17 }
  0x35   : > { %5160 = vmatpush2.bf16.msra.mxu0 %v7587_v34  ;;  %v7636_v16 = vld [vmem:[%s11638_s1 + $0x6e4] ss:$16 sps:$4 sm:$0xff]   ;;  %v7634_v20 = vld [vmem:[%s11638_s1 + $0x6e0] ss:$16 sps:$4 sm:$0xff]  }
  0x36   : > { %5201 = vmatpush2.bf16.msra.mxu1 %v7588_v35  ;;  %5161 = vmatprep.subr.bf16.mxu0 %v7589_v39  ;;  %v7639_v21 = vld [vmem:[%s11638_s1 + $0x4c4] ss:$16 sps:$4 sm:$0xff]   ;;  %v7637_v24 = vld [vmem:[%s11638_s1 + $0x4c0] ss:$16 sps:$4 sm:$0xff]  }
  0x37   : > { %5202 = vmatprep.subr.bf16.mxu1 %v7591_v40  ;;  %v7642_v22 = vld [vmem:[%s11638_s1 + $0x6c4] ss:$16 sps:$4 sm:$0xff]   ;;  %v7640_v25 = vld [vmem:[%s11638_s1 + $0x6c0] ss:$16 sps:$4 sm:$0xff]  }
  0x38   : > { %v7645_v26 = vld [vmem:[%s11638_s1 + $0x4a4] ss:$16 sps:$4 sm:$0xff]   ;;  %v7643_v28 = vld [vmem:[%s11638_s1 + $0x4a0] ss:$16 sps:$4 sm:$0xff]  }
  0x39   : > { %5162 = vmatpush2.bf16.msra.mxu0 %v7593_v41  ;;  %v7648_v27 = vld [vmem:[%s11638_s1 + $0x6a4] ss:$16 sps:$4 sm:$0xff]   ;;  %v7646_v29 = vld [vmem:[%s11638_s1 + $0x6a0] ss:$16 sps:$4 sm:$0xff]  }
  0x3a   : > { %5203 = vmatpush2.bf16.msra.mxu1 %v7594_v44  ;;  %5163 = vmatprep.subr.bf16.mxu0 %v7595_v45  ;;  %v7651_v30 = vld [vmem:[%s11638_s1 + $0x484] ss:$16 sps:$4 sm:$0xff]   ;;  %v7649_v32 = vld [vmem:[%s11638_s1 + $0x480] ss:$16 sps:$4 sm:$0xff]  }
  0x3b   : > { %5204 = vmatprep.subr.bf16.mxu1 %v7597_v46  ;;  %v7654_v31 = vld [vmem:[%s11638_s1 + $0x684] ss:$16 sps:$4 sm:$0xff]   ;;  %v7652_v33 = vld [vmem:[%s11638_s1 + $0x680] ss:$16 sps:$4 sm:$0xff]  }
  0x3c   : > { %v7657_v34 = vld [vmem:[%s11638_s1 + $0x464] ss:$16 sps:$4 sm:$0xff]   ;;  %v7655_v36 = vld [vmem:[%s11638_s1 + $0x460] ss:$16 sps:$4 sm:$0xff]  }
  0x3d   : > { %5164 = vmatpush2.bf16.msra.mxu0 %v7599_v47  ;;  %v7660_v35 = vld [vmem:[%s11638_s1 + $0x664] ss:$16 sps:$4 sm:$0xff]   ;;  %v7658_v37 = vld [vmem:[%s11638_s1 + $0x660] ss:$16 sps:$4 sm:$0xff]  }
  0x3e   : > { %5205 = vmatpush2.bf16.msra.mxu1 %v7600_v48  ;;  %5165 = vmatprep.subr.bf16.mxu0 %v7601_v50  ;;  %v7663_v38 = vld [vmem:[%s11638_s1 + $0x444] ss:$16 sps:$4 sm:$0xff]   ;;  %v7661_v40 = vld [vmem:[%s11638_s1 + $0x440] ss:$16 sps:$4 sm:$0xff]  }
  0x3f   : > { %5206 = vmatprep.subr.bf16.mxu1 %v7603_v51  ;;  %v7666_v39 = vld [vmem:[%s11638_s1 + $0x644] ss:$16 sps:$4 sm:$0xff]   ;;  %v7664_v41 = vld [vmem:[%s11638_s1 + $0x640] ss:$16 sps:$4 sm:$0xff]  }
  0x40   : > { %v7669_v42 = vld [vmem:[%s11638_s1 + $0x424] ss:$16 sps:$4 sm:$0xff]   ;;  %v7667_v45 = vld [vmem:[%s11638_s1 + $0x420] ss:$16 sps:$4 sm:$0xff]  }
  0x41   : > { %5166 = vmatpush2.bf16.msra.mxu0 %v7605_v53  ;;  %v7672_v44 = vld [vmem:[%s11638_s1 + $0x624] ss:$16 sps:$4 sm:$0xff]   ;;  %v7670_v46 = vld [vmem:[%s11638_s1 + $0x620] ss:$16 sps:$4 sm:$0xff]  }
  0x42   : > { %5207 = vmatpush2.bf16.msra.mxu1 %v7606_v55  ;;  %5167 = vmatprep.subr.bf16.mxu0 %v7607_v56  ;;  %v7675_v47 = vld [vmem:[%s11638_s1 + $0x404] ss:$16 sps:$4 sm:$0xff]   ;;  %v7673_v50 = vld [vmem:[%s11638_s1 + $0x400] ss:$16 sps:$4 sm:$0xff]  }
  0x43   : > { %5208 = vmatprep.subr.bf16.mxu1 %v7609_v57  ;;  %v7678_v48 = vld [vmem:[%s11638_s1 + $0x604] ss:$16 sps:$4 sm:$0xff]   ;;  %v7676_v51 = vld [vmem:[%s11638_s1 + $0x600] ss:$16 sps:$4 sm:$0xff]  }
  0x44   : > { %v7681_v52 = vld [vmem:[%s11638_s1 + $0x5e4] ss:$16 sps:$4 sm:$0xff]   ;;  %v7679_v54 = vld [vmem:[%s11638_s1 + $0x5e0] ss:$16 sps:$4 sm:$0xff]  }
  0x45   : > { %5168 = vmatpush2.bf16.msra.mxu0 %v7611_v59  ;;  %v7684_v53 = vld [vmem:[%s11638_s1 + $0x7e4] ss:$16 sps:$4 sm:$0xff]   ;;  %v7682_v55 = vld [vmem:[%s11638_s1 + $0x7e0] ss:$16 sps:$4 sm:$0xff]  }
  0x46   : > { %5209 = vmatpush2.bf16.msra.mxu1 %v7612_v61  ;;  %5169 = vmatprep.subr.bf16.mxu0 %v7613_v62  ;;  %v7687_v56 = vld [vmem:[%s11638_s1 + $0x5c4] ss:$16 sps:$4 sm:$0xff]   ;;  %v7685_v58 = vld [vmem:[%s11638_s1 + $0x5c0] ss:$16 sps:$4 sm:$0xff]  }
  0x47   : > { %5210 = vmatprep.subr.bf16.mxu1 %v7615_v63  ;;  %v7690_v57 = vld [vmem:[%s11638_s1 + $0x7c4] ss:$16 sps:$4 sm:$0xff]   ;;  %v7688_v59 = vld [vmem:[%s11638_s1 + $0x7c0] ss:$16 sps:$4 sm:$0xff]  }
  0x48   : > { %v7693_v61 = vld [vmem:[%s11638_s1 + $0x5a4] ss:$16 sps:$4 sm:$0xff]   ;;  %v7691_v63 = vld [vmem:[%s11638_s1 + $0x5a0] ss:$16 sps:$4 sm:$0xff]  }
  0x49   : > { %5170 = vmatpush2.bf16.msra.mxu0 %v7617_v2  ;;  %v7696_v62 = vld [vmem:[%s11638_s1 + $0x7a4] ss:$16 sps:$4 sm:$0xff]   ;;  %v7694_v1 = vld [vmem:[%s11638_s1 + $0x7a0] ss:$16 sps:$4 sm:$0xff]  }
  0x4a   : > { %5211 = vmatpush2.bf16.msra.mxu1 %v7618_v3  ;;  %5171 = vmatprep.subr.bf16.mxu0 %v7619_v4  ;;  %v7699_v2 = vld [vmem:[%s11638_s1 + $0x584] ss:$16 sps:$4 sm:$0xff]   ;;  %v7697_v4 = vld [vmem:[%s11638_s1 + $0x580] ss:$16 sps:$4 sm:$0xff]  }
  0x4b   : > { %5212 = vmatprep.subr.bf16.mxu1 %v7621_v5  ;;  %v7702_v3 = vld [vmem:[%s11638_s1 + $0x784] ss:$16 sps:$4 sm:$0xff]   ;;  %v7700_v5 = vld [vmem:[%s11638_s1 + $0x780] ss:$16 sps:$4 sm:$0xff]  }
  0x4c   : > { %v7711_v11 = vld [vmem:[%s11638_s1 + $0x544] ss:$16 sps:$4 sm:$0xff]  }
  0x4d   : > { %5172 = vmatpush2.bf16.msra.mxu0 %v7623_v7  ;;  %v7705_v7 = vld [vmem:[%s11638_s1 + $0x564] ss:$16 sps:$4 sm:$0xff]  }
  0x4e   : > { %5213 = vmatpush2.bf16.msra.mxu1 %v7624_v8  ;;  %5173 = vmatprep.subr.bf16.mxu0 %v7625_v9  ;;  %v7708_v8 = vld [vmem:[%s11638_s1 + $0x764] ss:$16 sps:$4 sm:$0xff]   ;;  %v7703_v9 = vld [vmem:[%s11638_s1 + $0x560] ss:$16 sps:$4 sm:$0xff]  }
  0x4f   : > { %5214 = vmatprep.subr.bf16.mxu1 %v7627_v10  ;;  %v7706_v10 = vld [vmem:[%s11638_s1 + $0x760] ss:$16 sps:$4 sm:$0xff]  }
  0x51   : > { %5174 = vmatpush2.bf16.msra.mxu0 %v7629_v12  ;;  %v7714_v12 = vld [vmem:[%s11638_s1 + $0x744] ss:$16 sps:$4 sm:$0xff]  }
  0x52   : > { %5215 = vmatpush2.bf16.msra.mxu1 %v7630_v14  ;;  %5225 = vmatprep.subr.bf16.mxu0 %v7633_v15  ;;  %v7709_v14 = vld [vmem:[%s11638_s1 + $0x540] ss:$16 sps:$4 sm:$0xff]  }
  0x53   : > { %5266 = vmatprep.subr.bf16.mxu1 %v7636_v16  ;;  %v7712_v15 = vld [vmem:[%s11638_s1 + $0x740] ss:$16 sps:$4 sm:$0xff]   ;;  %v7717_v16 = vld [vmem:[%s11638_s1 + $0x524] ss:$16 sps:$4 sm:$0xff]  }
  0x54   : > { %5176 = vmatmul.mubr.bf16.vlgmr.msra.gmra.mxu0 %v9108_v13 }
  0x55   : > { %5217 = vmatmul.mubr.bf16.vlgmr.msra.gmra.mxu1 %v9124_v18  ;;  %5226 = vmatpush1.bf16.msra.mxu0 %v7631_v19  ;;  %v7720_v19 = vld [vmem:[%s11638_s1 + $0x724] ss:$16 sps:$4 sm:$0xff]  }
  0x56   : > { %5267 = vmatpush1.bf16.msra.mxu1 %v7634_v20  ;;  %5227 = vmatprep.subr.bf16.mxu0 %v7639_v21  ;;  %v7715_v20 = vld [vmem:[%s11638_s1 + $0x520] ss:$16 sps:$4 sm:$0xff]  }
  0x57   : > { %5268 = vmatprep.subr.bf16.mxu1 %v7642_v22  ;;  %5257 = vmatprep.mubr.bf16.mxu0 %v9120_v17  ;;  %v7718_v21 = vld [vmem:[%s11638_s1 + $0x720] ss:$16 sps:$4 sm:$0xff]   ;;  %v7723_v22 = vld [vmem:[%s11638_s1 + $0x504] ss:$16 sps:$4 sm:$0xff]  }
  0x58   : > { %5298 = vmatprep.mubr.bf16.mxu1 %v9140_v23 }
  0x59   : > { %5228 = vmatpush1.bf16.msra.mxu0 %v7637_v24  ;;  %v7726_v24 = vld [vmem:[%s11638_s1 + $0x704] ss:$16 sps:$4 sm:$0xff]  }
  0x5a   : > { %5269 = vmatpush1.bf16.msra.mxu1 %v7640_v25  ;;  %5229 = vmatprep.subr.bf16.mxu0 %v7645_v26  ;;  %v7721_v25 = vld [vmem:[%s11638_s1 + $0x500] ss:$16 sps:$4 sm:$0xff]   ;;  %v9319_v26 = vrot.slane %v9088_v6, %v9032_v49 }
  0x5b   : > { %5270 = vmatprep.subr.bf16.mxu1 %v7648_v27  ;;  %v7724_v27 = vld [vmem:[%s11638_s1 + $0x700] ss:$16 sps:$4 sm:$0xff]  }
  0x5c   : > { %v9332_v6 = vcombine.high %v9319_v26, %v9319_v26 }
  0x5d   : > { %5230 = vmatpush1.bf16.msra.mxu0 %v7643_v28  ;;  %v7730_v28 = vld [vmem:[%s11638_s1 + $0x8e4] ss:$16 sps:$4 sm:$0xff]  }
  0x5e   : > { %5271 = vmatpush1.bf16.msra.mxu1 %v7646_v29  ;;  %5231 = vmatprep.subr.bf16.mxu0 %v7651_v30  ;;  %v7733_v29 = vld [vmem:[%s11638_s1 + $0xae4] ss:$16 sps:$4 sm:$0xff]   ;;  %v7728_v30 = vld [vmem:[%s11638_s1 + $0x8e0] ss:$16 sps:$4 sm:$0xff]  }
  0x5f   : > { %5272 = vmatprep.subr.bf16.mxu1 %v7654_v31  ;;  %v7731_v31 = vld [vmem:[%s11638_s1 + $0xae0] ss:$16 sps:$4 sm:$0xff]  }
  0x61   : > { %5232 = vmatpush1.bf16.msra.mxu0 %v7649_v32  ;;  %v9341_v32 = vld [vmem:[%s9029_s17 + $0x8] sm:$0xff] }
  0x62   : > { %5273 = vmatpush1.bf16.msra.mxu1 %v7652_v33  ;;  %5233 = vmatprep.subr.bf16.mxu0 %v7657_v34  ;;  %v7736_v33 = vld [vmem:[%s11638_s1 + $0x8c4] ss:$16 sps:$4 sm:$0xff]  }
  0x63   : > { %5274 = vmatprep.subr.bf16.mxu1 %v7660_v35  ;;  %v7739_v34 = vld [vmem:[%s11638_s1 + $0xac4] ss:$16 sps:$4 sm:$0xff]   ;;  %v9351_v35 = vrot.slane %v9341_v32, %v9032_v49 }
  0x65   : > { %5234 = vmatpush1.bf16.msra.mxu0 %v7655_v36  ;;  %v1077_v36 = vcombine.high %v9351_v35, %v9351_v35 }
  0x66   : > { %5275 = vmatpush1.bf16.msra.mxu1 %v7658_v37  ;;  %5235 = vmatprep.subr.bf16.mxu0 %v7663_v38  ;;  %v7734_v37 = vld [vmem:[%s11638_s1 + $0x8c0] ss:$16 sps:$4 sm:$0xff]  }
  0x67   : > { %5276 = vmatprep.subr.bf16.mxu1 %v7666_v39  ;;  %v7737_v38 = vld [vmem:[%s11638_s1 + $0xac0] ss:$16 sps:$4 sm:$0xff]   ;;  %v7742_v39 = vld [vmem:[%s11638_s1 + $0x8a4] ss:$16 sps:$4 sm:$0xff]  }
  0x69   : > { %5236 = vmatpush1.bf16.msra.mxu0 %v7661_v40  ;;  %v7745_v40 = vld [vmem:[%s11638_s1 + $0xaa4] ss:$16 sps:$4 sm:$0xff]  }
  0x6a   : > { %5277 = vmatpush1.bf16.msra.mxu1 %v7664_v41  ;;  %5237 = vmatprep.subr.bf16.mxu0 %v7669_v42  ;;  %v9370_v41 = vrot.slane %v1077_v36, %v9032_v49  ;;  %v7806_v36 = vld [vmem:[%s11638_s1 + $0x940] ss:$16 sps:$4 sm:$0xff]  }
  0x6b   : > { %5278 = vmatprep.subr.bf16.mxu1 %v7672_v44  ;;  %v7740_v44 = vld [vmem:[%s11638_s1 + $0x8a0] ss:$16 sps:$4 sm:$0xff]  }
  0x6c   : > { %v9375_v42 = vcombine.high %v9370_v41, %v9370_v41 }
  0x6d   : > { %5238 = vmatpush1.bf16.msra.mxu0 %v7667_v45  ;;  %v7743_v45 = vld [vmem:[%s11638_s1 + $0xaa0] ss:$16 sps:$4 sm:$0xff]  }
  0x6e   : > { %5279 = vmatpush1.bf16.msra.mxu1 %v7670_v46  ;;  %5239 = vmatprep.subr.bf16.mxu0 %v7675_v47  ;;  %v7748_v46 = vld [vmem:[%s11638_s1 + $0x884] ss:$16 sps:$4 sm:$0xff]  }
  0x6f   : > { %5280 = vmatprep.subr.bf16.mxu1 %v7678_v48  ;;  %v7751_v47 = vld [vmem:[%s11638_s1 + $0xa84] ss:$16 sps:$4 sm:$0xff]   ;;  %v7746_v48 = vld [vmem:[%s11638_s1 + $0x880] ss:$16 sps:$4 sm:$0xff]  }
  0x71   : > { %5240 = vmatpush1.bf16.msra.mxu0 %v7673_v50  ;;  %v7749_v50 = vld [vmem:[%s11638_s1 + $0xa80] ss:$16 sps:$4 sm:$0xff]  }
  0x72   : > { %5281 = vmatpush1.bf16.msra.mxu1 %v7676_v51  ;;  %5241 = vmatprep.subr.bf16.mxu0 %v7681_v52  ;;  %v7754_v51 = vld [vmem:[%s11638_s1 + $0x864] ss:$16 sps:$4 sm:$0xff]  }
  0x73   : > { %5282 = vmatprep.subr.bf16.mxu1 %v7684_v53  ;;  %v7757_v52 = vld [vmem:[%s11638_s1 + $0xa64] ss:$16 sps:$4 sm:$0xff]   ;;  %v7752_v53 = vld [vmem:[%s11638_s1 + $0x860] ss:$16 sps:$4 sm:$0xff]  }
  0x75   : > { %5242 = vmatpush2.bf16.msra.mxu0 %v7679_v54  ;;  %v7755_v54 = vld [vmem:[%s11638_s1 + $0xa60] ss:$16 sps:$4 sm:$0xff]  }
  0x76   : > { %5283 = vmatpush2.bf16.msra.mxu1 %v7682_v55  ;;  %5243 = vmatprep.subr.bf16.mxu0 %v7687_v56  ;;  %v7760_v55 = vld [vmem:[%s11638_s1 + $0x844] ss:$16 sps:$4 sm:$0xff]  }
  0x77   : > { %5284 = vmatprep.subr.bf16.mxu1 %v7690_v57  ;;  %v7763_v56 = vld [vmem:[%s11638_s1 + $0xa44] ss:$16 sps:$4 sm:$0xff]   ;;  %v7758_v57 = vld [vmem:[%s11638_s1 + $0x840] ss:$16 sps:$4 sm:$0xff]  }
  0x79   : > { %5244 = vmatpush2.bf16.msra.mxu0 %v7685_v58  ;;  %v7761_v58 = vld [vmem:[%s11638_s1 + $0xa40] ss:$16 sps:$4 sm:$0xff]  }
  0x7a   : > { %5285 = vmatpush2.bf16.msra.mxu1 %v7688_v59  ;;  %5245 = vmatprep.subr.bf16.mxu0 %v7693_v61  ;;  %v7766_v59 = vld [vmem:[%s11638_s1 + $0x824] ss:$16 sps:$4 sm:$0xff]  }
  0x7b   : > { %5286 = vmatprep.subr.bf16.mxu1 %v7696_v62  ;;  %v7769_v61 = vld [vmem:[%s11638_s1 + $0xa24] ss:$16 sps:$4 sm:$0xff]   ;;  %v7764_v62 = vld [vmem:[%s11638_s1 + $0x820] ss:$16 sps:$4 sm:$0xff]  }
  0x7d   : > { %5246 = vmatpush2.bf16.msra.mxu0 %v7691_v63  ;;  %v7767_v63 = vld [vmem:[%s11638_s1 + $0xa20] ss:$16 sps:$4 sm:$0xff]  }
  0x7e   : > { %5287 = vmatpush2.bf16.msra.mxu1 %v7694_v1  ;;  %5247 = vmatprep.subr.bf16.mxu0 %v7699_v2  ;;  %v7772_v1 = vld [vmem:[%s11638_s1 + $0x804] ss:$16 sps:$4 sm:$0xff]  }
  0x7f   : > { %5288 = vmatprep.subr.bf16.mxu1 %v7702_v3  ;;  %v7775_v2 = vld [vmem:[%s11638_s1 + $0xa04] ss:$16 sps:$4 sm:$0xff]   ;;  %v7770_v3 = vld [vmem:[%s11638_s1 + $0x800] ss:$16 sps:$4 sm:$0xff]  }
  0x81   : > { %5248 = vmatpush2.bf16.msra.mxu0 %v7697_v4  ;;  %v7773_v4 = vld [vmem:[%s11638_s1 + $0xa00] ss:$16 sps:$4 sm:$0xff]  }
  0x82   : > { %5289 = vmatpush2.bf16.msra.mxu1 %v7700_v5  ;;  %5249 = vmatprep.subr.bf16.mxu0 %v7705_v7  ;;  %v7778_v5 = vld [vmem:[%s11638_s1 + $0x9e4] ss:$16 sps:$4 sm:$0xff]  }
  0x83   : > { %5290 = vmatprep.subr.bf16.mxu1 %v7708_v8  ;;  %v7781_v7 = vld [vmem:[%s11638_s1 + $0xbe4] ss:$16 sps:$4 sm:$0xff]   ;;  %v7776_v8 = vld [vmem:[%s11638_s1 + $0x9e0] ss:$16 sps:$4 sm:$0xff]  }
  0x85   : > { %5250 = vmatpush2.bf16.msra.mxu0 %v7703_v9  ;;  %v7779_v9 = vld [vmem:[%s11638_s1 + $0xbe0] ss:$16 sps:$4 sm:$0xff]  }
  0x86   : > { %5291 = vmatpush2.bf16.msra.mxu1 %v7706_v10  ;;  %5251 = vmatprep.subr.bf16.mxu0 %v7711_v11  ;;  %v7784_v10 = vld [vmem:[%s11638_s1 + $0x9c4] ss:$16 sps:$4 sm:$0xff]  }
  0x87   : > { %5292 = vmatprep.subr.bf16.mxu1 %v7714_v12  ;;  %v7787_v11 = vld [vmem:[%s11638_s1 + $0xbc4] ss:$16 sps:$4 sm:$0xff]   ;;  %v7782_v12 = vld [vmem:[%s11638_s1 + $0x9c0] ss:$16 sps:$4 sm:$0xff]  }
  0x89   : > { %5252 = vmatpush2.bf16.msra.mxu0 %v7709_v14  ;;  %v7785_v14 = vld [vmem:[%s11638_s1 + $0xbc0] ss:$16 sps:$4 sm:$0xff]  }
  0x8a   : > { %5293 = vmatpush2.bf16.msra.mxu1 %v7712_v15  ;;  %5253 = vmatprep.subr.bf16.mxu0 %v7717_v16  ;;  %v7790_v15 = vld [vmem:[%s11638_s1 + $0x9a4] ss:$16 sps:$4 sm:$0xff]  }
  0x8b   : > { %5294 = vmatprep.subr.bf16.mxu1 %v7720_v19  ;;  %v7793_v16 = vld [vmem:[%s11638_s1 + $0xba4] ss:$16 sps:$4 sm:$0xff]   ;;  %v7788_v19 = vld [vmem:[%s11638_s1 + $0x9a0] ss:$16 sps:$4 sm:$0xff]  }
  0x8d   : > { %5254 = vmatpush2.bf16.msra.mxu0 %v7715_v20  ;;  %v7791_v20 = vld [vmem:[%s11638_s1 + $0xba0] ss:$16 sps:$4 sm:$0xff]  }
  0x8e   : > { %5295 = vmatpush2.bf16.msra.mxu1 %v7718_v21  ;;  %5255 = vmatprep.subr.bf16.mxu0 %v7723_v22  ;;  %v7796_v21 = vld [vmem:[%s11638_s1 + $0x984] ss:$16 sps:$4 sm:$0xff]  }
  0x8f   : > { %5296 = vmatprep.subr.bf16.mxu1 %v7726_v24  ;;  %v7799_v22 = vld [vmem:[%s11638_s1 + $0xb84] ss:$16 sps:$4 sm:$0xff]   ;;  %v7794_v24 = vld [vmem:[%s11638_s1 + $0x980] ss:$16 sps:$4 sm:$0xff]  }
  0x91   : > { %5256 = vmatpush2.bf16.msra.mxu0 %v7721_v25  ;;  %v7797_v25 = vld [vmem:[%s11638_s1 + $0xb80] ss:$16 sps:$4 sm:$0xff]  }
  0x92   : > { %5297 = vmatpush2.bf16.msra.mxu1 %v7724_v27  ;;  %5307 = vmatprep.subr.bf16.mxu0 %v7730_v28  ;;  %v7802_v27 = vld [vmem:[%s11638_s1 + $0x964] ss:$16 sps:$4 sm:$0xff]  }
  0x93   : > { %5348 = vmatprep.subr.bf16.mxu1 %v7733_v29  ;;  %v7805_v28 = vld [vmem:[%s11638_s1 + $0xb64] ss:$16 sps:$4 sm:$0xff]   ;;  %v7800_v29 = vld [vmem:[%s11638_s1 + $0x960] ss:$16 sps:$4 sm:$0xff]  }
  0x94   : > { %5258 = vmatmul.mubr.bf16.vlgmr.msra.gmra.mxu0 %v9319_v26 }
  0x95   : > { %5299 = vmatmul.mubr.bf16.vlgmr.msra.gmra.mxu1 %v9332_v6  ;;  %5308 = vmatpush1.bf16.msra.mxu0 %v7728_v30  ;;  %v7803_v30 = vld [vmem:[%s11638_s1 + $0xb60] ss:$16 sps:$4 sm:$0xff]  }
  0x96   : > { %5349 = vmatpush1.bf16.msra.mxu1 %v7731_v31  ;;  %5309 = vmatprep.subr.bf16.mxu0 %v7736_v33  ;;  %v7808_v31 = vld [vmem:[%s11638_s1 + $0x944] ss:$16 sps:$4 sm:$0xff]  }
  0x97   : > { %5350 = vmatprep.subr.bf16.mxu1 %v7739_v34  ;;  %5339 = vmatprep.mubr.bf16.mxu0 %v9370_v41  ;;  %v7811_v33 = vld [vmem:[%s11638_s1 + $0xb44] ss:$16 sps:$4 sm:$0xff]   ;;  %v1062_v34 = vcombine.high %v9341_v32, %v9341_v32 }
  0x98   : > { %5380 = vmatprep.mubr.bf16.mxu1 %v9375_v42  ;;  %v7817_v32 = vld [vmem:[%s11638_s1 + $0xb24] ss:$16 sps:$4 sm:$0xff]  }
  0x99   : > { %5310 = vmatpush1.bf16.msra.mxu0 %v7734_v37  ;;  %v7809_v37 = vld [vmem:[%s11638_s1 + $0xb40] ss:$16 sps:$4 sm:$0xff]  }
  0x9a   : > { %5351 = vmatpush1.bf16.msra.mxu1 %v7737_v38  ;;  %5311 = vmatprep.subr.bf16.mxu0 %v7742_v39  ;;  %v7814_v38 = vld [vmem:[%s11638_s1 + $0x924] ss:$16 sps:$4 sm:$0xff]   ;;  %v9525_v39 = vrot.slane %v1062_v34, %v9032_v49  ;;  %v7875_v34 = vld [vmem:[%s11638_s1 + $0xfe0] ss:$16 sps:$4 sm:$0xff]  }
  0x9b   : > { %5352 = vmatprep.subr.bf16.mxu1 %v7745_v40  ;;  %v7812_v40 = vld [vmem:[%s11638_s1 + $0x920] ss:$16 sps:$4 sm:$0xff]  }
  0x9d   : > { %5312 = vmatpush1.bf16.msra.mxu0 %v7740_v44  ;;  %v7815_v44 = vld [vmem:[%s11638_s1 + $0xb20] ss:$16 sps:$4 sm:$0xff]  }
  0x9e   : > { %5353 = vmatpush1.bf16.msra.mxu1 %v7743_v45  ;;  %5313 = vmatprep.subr.bf16.mxu0 %v7748_v46  ;;  %v7820_v45 = vld [vmem:[%s11638_s1 + $0x904] ss:$16 sps:$4 sm:$0xff]  }
  0x9f   : > { %5354 = vmatprep.subr.bf16.mxu1 %v7751_v47  ;;  %v7823_v46 = vld [vmem:[%s11638_s1 + $0xb04] ss:$16 sps:$4 sm:$0xff]   ;;  %v1078_v47 = vcombine.high %v9525_v39, %v9525_v39 }
  0xa1   : > { %5314 = vmatpush1.bf16.msra.mxu0 %v7746_v48  ;;  %v7818_v48 = vld [vmem:[%s11638_s1 + $0x900] ss:$16 sps:$4 sm:$0xff]  }
  0xa2   : > { %5355 = vmatpush1.bf16.msra.mxu1 %v7749_v50  ;;  %5315 = vmatprep.subr.bf16.mxu0 %v7754_v51  ;;  %v9546_v50 = vrot.slane %v9351_v35, %v9032_v49  ;;  %v7821_v51 = vld [vmem:[%s11638_s1 + $0xb00] ss:$16 sps:$4 sm:$0xff]  }
  0xa3   : > { %5356 = vmatprep.subr.bf16.mxu1 %v7757_v52  ;;  %v7826_v52 = vld [vmem:[%s11638_s1 + $0xce4] ss:$16 sps:$4 sm:$0xff]  }
  0xa4   : > { %v9562_v35 = vcombine.high %v9546_v50, %v9546_v50 }
  0xa5   : > { %5316 = vmatpush1.bf16.msra.mxu0 %v7752_v53  ;;  %v7829_v53 = vld [vmem:[%s11638_s1 + $0xee4] ss:$16 sps:$4 sm:$0xff]  }
  0xa6   : > { %5357 = vmatpush1.bf16.msra.mxu1 %v7755_v54  ;;  %5317 = vmatprep.subr.bf16.mxu0 %v7760_v55  ;;  %v9558_v54 = vrot.slane %v1078_v47, %v9032_v49  ;;  %v7824_v55 = vld [vmem:[%s11638_s1 + $0xce0] ss:$16 sps:$4 sm:$0xff]   ;;  %v7892_v47 = vld [vmem:[%s11638_s1 + $0xd84] ss:$16 sps:$4 sm:$0xff]  }
  0xa7   : > { %5358 = vmatprep.subr.bf16.mxu1 %v7763_v56  ;;  %v7827_v56 = vld [vmem:[%s11638_s1 + $0xee0] ss:$16 sps:$4 sm:$0xff]  }
  0xa9   : > { %5318 = vmatpush1.bf16.msra.mxu0 %v7758_v57  ;;  %v7832_v57 = vld [vmem:[%s11638_s1 + $0xcc4] ss:$16 sps:$4 sm:$0xff]  }
  0xaa   : > { %5359 = vmatpush1.bf16.msra.mxu1 %v7761_v58  ;;  %5319 = vmatprep.subr.bf16.mxu0 %v7766_v59  ;;  %v7835_v58 = vld [vmem:[%s11638_s1 + $0xec4] ss:$16 sps:$4 sm:$0xff]   ;;  %v9578_v59 = vcombine.high %v9558_v54, %v9558_v54 }
  0xab   : > { %5360 = vmatprep.subr.bf16.mxu1 %v7769_v61  ;;  %v7830_v61 = vld [vmem:[%s11638_s1 + $0xcc0] ss:$16 sps:$4 sm:$0xff]  }
  0xad   : > { %5320 = vmatpush1.bf16.msra.mxu0 %v7764_v62  ;;  %v7833_v62 = vld [vmem:[%s11638_s1 + $0xec0] ss:$16 sps:$4 sm:$0xff]  }
  0xae   : > { %5361 = vmatpush1.bf16.msra.mxu1 %v7767_v63  ;;  %5321 = vmatprep.subr.bf16.mxu0 %v7772_v1  ;;  %v7838_v63 = vld [vmem:[%s11638_s1 + $0xca4] ss:$16 sps:$4 sm:$0xff]  }
  0xaf   : > { %5362 = vmatprep.subr.bf16.mxu1 %v7775_v2  ;;  %v7841_v1 = vld [vmem:[%s11638_s1 + $0xea4] ss:$16 sps:$4 sm:$0xff]   ;;  %v7836_v2 = vld [vmem:[%s11638_s1 + $0xca0] ss:$16 sps:$4 sm:$0xff]  }
  0xb1   : > { %5322 = vmatpush1.bf16.msra.mxu0 %v7770_v3  ;;  %v7839_v3 = vld [vmem:[%s11638_s1 + $0xea0] ss:$16 sps:$4 sm:$0xff]  }
  0xb2   : > { %5363 = vmatpush1.bf16.msra.mxu1 %v7773_v4  ;;  %5323 = vmatprep.subr.bf16.mxu0 %v7778_v5  ;;  %v7844_v4 = vld [vmem:[%s11638_s1 + $0xc84] ss:$16 sps:$4 sm:$0xff]  }
  0xb3   : > { %5364 = vmatprep.subr.bf16.mxu1 %v7781_v7  ;;  %v7847_v5 = vld [vmem:[%s11638_s1 + $0xe84] ss:$16 sps:$4 sm:$0xff]   ;;  %v7842_v7 = vld [vmem:[%s11638_s1 + $0xc80] ss:$16 sps:$4 sm:$0xff]  }
  0xb5   : > { %5324 = vmatpush2.bf16.msra.mxu0 %v7776_v8  ;;  %v7845_v8 = vld [vmem:[%s11638_s1 + $0xe80] ss:$16 sps:$4 sm:$0xff]  }
  0xb6   : > { %5365 = vmatpush2.bf16.msra.mxu1 %v7779_v9  ;;  %5325 = vmatprep.subr.bf16.mxu0 %v7784_v10  ;;  %v7850_v9 = vld [vmem:[%s11638_s1 + $0xc64] ss:$16 sps:$4 sm:$0xff]  }
  0xb7   : > { %5366 = vmatprep.subr.bf16.mxu1 %v7787_v11  ;;  %v7853_v10 = vld [vmem:[%s11638_s1 + $0xe64] ss:$16 sps:$4 sm:$0xff]   ;;  %v7848_v11 = vld [vmem:[%s11638_s1 + $0xc60] ss:$16 sps:$4 sm:$0xff]  }
  0xb9   : > { %5326 = vmatpush2.bf16.msra.mxu0 %v7782_v12  ;;  %v7851_v12 = vld [vmem:[%s11638_s1 + $0xe60] ss:$16 sps:$4 sm:$0xff]  }
  0xba   : > { %5367 = vmatpush2.bf16.msra.mxu1 %v7785_v14  ;;  %5327 = vmatprep.subr.bf16.mxu0 %v7790_v15  ;;  %v7856_v14 = vld [vmem:[%s11638_s1 + $0xc44] ss:$16 sps:$4 sm:$0xff]  }
  0xbb   : > { %5368 = vmatprep.subr.bf16.mxu1 %v7793_v16  ;;  %v7859_v15 = vld [vmem:[%s11638_s1 + $0xe44] ss:$16 sps:$4 sm:$0xff]   ;;  %v7854_v16 = vld [vmem:[%s11638_s1 + $0xc40] ss:$16 sps:$4 sm:$0xff]  }
  0xbd   : > { %5328 = vmatpush2.bf16.msra.mxu0 %v7788_v19  ;;  %v7857_v19 = vld [vmem:[%s11638_s1 + $0xe40] ss:$16 sps:$4 sm:$0xff]  }
  0xbe   : > { %5369 = vmatpush2.bf16.msra.mxu1 %v7791_v20  ;;  %5329 = vmatprep.subr.bf16.mxu0 %v7796_v21  ;;  %v7862_v20 = vld [vmem:[%s11638_s1 + $0xc24] ss:$16 sps:$4 sm:$0xff]  }
  0xbf   : > { %5370 = vmatprep.subr.bf16.mxu1 %v7799_v22  ;;  %v7865_v21 = vld [vmem:[%s11638_s1 + $0xe24] ss:$16 sps:$4 sm:$0xff]   ;;  %v7860_v22 = vld [vmem:[%s11638_s1 + $0xc20] ss:$16 sps:$4 sm:$0xff]  }
  0xc1   : > { %5330 = vmatpush2.bf16.msra.mxu0 %v7794_v24  ;;  %v7863_v24 = vld [vmem:[%s11638_s1 + $0xe20] ss:$16 sps:$4 sm:$0xff]  }
  0xc2   : > { %5371 = vmatpush2.bf16.msra.mxu1 %v7797_v25  ;;  %5331 = vmatprep.subr.bf16.mxu0 %v7802_v27  ;;  %v7868_v25 = vld [vmem:[%s11638_s1 + $0xc04] ss:$16 sps:$4 sm:$0xff]  }
  0xc3   : > { %5372 = vmatprep.subr.bf16.mxu1 %v7805_v28  ;;  %v7871_v27 = vld [vmem:[%s11638_s1 + $0xe04] ss:$16 sps:$4 sm:$0xff]   ;;  %v7866_v28 = vld [vmem:[%s11638_s1 + $0xc00] ss:$16 sps:$4 sm:$0xff]  }
  0xc5   : > { %5332 = vmatpush2.bf16.msra.mxu0 %v7800_v29  ;;  %v7869_v29 = vld [vmem:[%s11638_s1 + $0xe00] ss:$16 sps:$4 sm:$0xff]  }
  0xc6   : > { %5373 = vmatpush2.bf16.msra.mxu1 %v7803_v30  ;;  %5333 = vmatprep.subr.bf16.mxu0 %v7808_v31  ;;  %v7874_v30 = vld [vmem:[%s11638_s1 + $0xde4] ss:$16 sps:$4 sm:$0xff]  }
  0xc7   : > { %5374 = vmatprep.subr.bf16.mxu1 %v7811_v33  ;;  %v7877_v31 = vld [vmem:[%s11638_s1 + $0xfe4] ss:$16 sps:$4 sm:$0xff]   ;;  %v7872_v33 = vld [vmem:[%s11638_s1 + $0xde0] ss:$16 sps:$4 sm:$0xff]  }
  0xc9   : > { %5334 = vmatpush2.bf16.msra.mxu0 %v7806_v36  ;;  %v7880_v36 = vld [vmem:[%s11638_s1 + $0xdc4] ss:$16 sps:$4 sm:$0xff]  }
  0xca   : > { %5375 = vmatpush2.bf16.msra.mxu1 %v7809_v37  ;;  %5335 = vmatprep.subr.bf16.mxu0 %v7814_v38  ;;  %v7883_v37 = vld [vmem:[%s11638_s1 + $0xfc4] ss:$16 sps:$4 sm:$0xff]   ;;  %v7878_v38 = vld [vmem:[%s11638_s1 + $0xdc0] ss:$16 sps:$4 sm:$0xff]  }
  0xcb   : > { %5376 = vmatprep.subr.bf16.mxu1 %v7817_v32  ;;  %v7881_v32 = vld [vmem:[%s11638_s1 + $0xfc0] ss:$16 sps:$4 sm:$0xff]  }
  0xcd   : > { %5336 = vmatpush2.bf16.msra.mxu0 %v7812_v40  ;;  %v7886_v40 = vld [vmem:[%s11638_s1 + $0xda4] ss:$16 sps:$4 sm:$0xff]  }
  0xce   : > { %5377 = vmatpush2.bf16.msra.mxu1 %v7815_v44  ;;  %5337 = vmatprep.subr.bf16.mxu0 %v7820_v45  ;;  %v7889_v44 = vld [vmem:[%s11638_s1 + $0xfa4] ss:$16 sps:$4 sm:$0xff]   ;;  %v7884_v45 = vld [vmem:[%s11638_s1 + $0xda0] ss:$16 sps:$4 sm:$0xff]  }
  0xcf   : > { %5378 = vmatprep.subr.bf16.mxu1 %v7823_v46  ;;  %v7887_v46 = vld [vmem:[%s11638_s1 + $0xfa0] ss:$16 sps:$4 sm:$0xff]  }
  0xd1   : > { %5338 = vmatpush2.bf16.msra.mxu0 %v7818_v48  ;;  %v7895_v48 = vld [vmem:[%s11638_s1 + $0xf84] ss:$16 sps:$4 sm:$0xff]  }
  0xd2   : > { %5379 = vmatpush2.bf16.msra.mxu1 %v7821_v51  ;;  %5389 = vmatprep.subr.bf16.mxu0 %v7826_v52  ;;  %v7890_v51 = vld [vmem:[%s11638_s1 + $0xd80] ss:$16 sps:$4 sm:$0xff]  }
  0xd3   : > { %5430 = vmatprep.subr.bf16.mxu1 %v7829_v53  ;;  %v7893_v52 = vld [vmem:[%s11638_s1 + $0xf80] ss:$16 sps:$4 sm:$0xff]   ;;  %v7898_v53 = vld [vmem:[%s11638_s1 + $0xd64] ss:$16 sps:$4 sm:$0xff]  }
  0xd4   : > { %5340 = vmatmul.mubr.bf16.vlgmr.msra.gmra.mxu0 %v9546_v50 }
  0xd5   : > { %5381 = vmatmul.mubr.bf16.vlgmr.msra.gmra.mxu1 %v9562_v35  ;;  %5390 = vmatpush1.bf16.msra.mxu0 %v7824_v55  ;;  %v7901_v55 = vld [vmem:[%s11638_s1 + $0xf64] ss:$16 sps:$4 sm:$0xff]  }
  0xd6   : > { %5431 = vmatpush1.bf16.msra.mxu1 %v7827_v56  ;;  %5391 = vmatprep.subr.bf16.mxu0 %v7832_v57  ;;  %v7896_v56 = vld [vmem:[%s11638_s1 + $0xd60] ss:$16 sps:$4 sm:$0xff]  }
  0xd7   : > { %5432 = vmatprep.subr.bf16.mxu1 %v7835_v58  ;;  %5421 = vmatprep.mubr.bf16.mxu0 %v9558_v54  ;;  %v7899_v57 = vld [vmem:[%s11638_s1 + $0xf60] ss:$16 sps:$4 sm:$0xff]   ;;  %v7904_v58 = vld [vmem:[%s11638_s1 + $0xd44] ss:$16 sps:$4 sm:$0xff]  }
  0xd8   : > { %5462 = vmatprep.mubr.bf16.mxu1 %v9578_v59 }
  0xd9   : > { %5392 = vmatpush1.bf16.msra.mxu0 %v7830_v61  ;;  %v7907_v61 = vld [vmem:[%s11638_s1 + $0xf44] ss:$16 sps:$4 sm:$0xff]  }
  0xda   : > { %5433 = vmatpush1.bf16.msra.mxu1 %v7833_v62  ;;  %5393 = vmatprep.subr.bf16.mxu0 %v7838_v63  ;;  %v7902_v62 = vld [vmem:[%s11638_s1 + $0xd40] ss:$16 sps:$4 sm:$0xff]  }
  0xdb   : > { %5434 = vmatprep.subr.bf16.mxu1 %v7841_v1  ;;  %v7905_v63 = vld [vmem:[%s11638_s1 + $0xf40] ss:$16 sps:$4 sm:$0xff]  }
  0xdc   : > { %v9735_v1 = vld [vmem:[%s9029_s17 + $0x10] sm:$0xff] }
  0xdd   : > { %5394 = vmatpush1.bf16.msra.mxu0 %v7836_v2  ;;  %v7910_v2 = vld [vmem:[%s11638_s1 + $0xd24] ss:$16 sps:$4 sm:$0xff]  }
  0xde   : > { %5435 = vmatpush1.bf16.msra.mxu1 %v7839_v3  ;;  %5395 = vmatprep.subr.bf16.mxu0 %v7844_v4  ;;  %v7913_v3 = vld [vmem:[%s11638_s1 + $0xf24] ss:$16 sps:$4 sm:$0xff]   ;;  %v9745_v4 = vrot.slane %v9735_v1, %v9032_v49 }
  0xdf   : > { %5436 = vmatprep.subr.bf16.mxu1 %v7847_v5  ;;  %v7908_v5 = vld [vmem:[%s11638_s1 + $0xd20] ss:$16 sps:$4 sm:$0xff]  }
  0xe1   : > { %5396 = vmatpush1.bf16.msra.mxu0 %v7842_v7  ;;  %v7911_v7 = vld [vmem:[%s11638_s1 + $0xf20] ss:$16 sps:$4 sm:$0xff]  }
  0xe2   : > { %5437 = vmatpush1.bf16.msra.mxu1 %v7845_v8  ;;  %5397 = vmatprep.subr.bf16.mxu0 %v7850_v9  ;;  %v7916_v8 = vld [vmem:[%s11638_s1 + $0xd04] ss:$16 sps:$4 sm:$0xff]  }
  0xe3   : > { %5438 = vmatprep.subr.bf16.mxu1 %v7853_v10  ;;  %v7919_v9 = vld [vmem:[%s11638_s1 + $0xf04] ss:$16 sps:$4 sm:$0xff]   ;;  %v7914_v10 = vld [vmem:[%s11638_s1 + $0xd00] ss:$16 sps:$4 sm:$0xff]  }
  0xe5   : > { %5398 = vmatpush1.bf16.msra.mxu0 %v7848_v11  ;;  %v1126_v11 = vcombine.high %v9745_v4, %v9745_v4 }
  0xe6   : > { %5439 = vmatpush1.bf16.msra.mxu1 %v7851_v12  ;;  %5399 = vmatprep.subr.bf16.mxu0 %v7856_v14  ;;  %v7917_v12 = vld [vmem:[%s11638_s1 + $0xf00] ss:$16 sps:$4 sm:$0xff]  }
  0xe7   : > { %5440 = vmatprep.subr.bf16.mxu1 %v7859_v15  ;;  %v1008_v14 = vld [vmem:[%s11639_s2] sm:$0xf]  ;;  %v9772_v15 = vrot.slane %v9525_v39, %v9032_v49 }
  0xe9   : > { %5400 = vmatpush1.bf16.msra.mxu0 %v7854_v16  ;;  %v5121_v16 = vsub.s32 0, %v9009_v43  ;;  %v9787_v39 = vcombine.high %v9772_v15, %v9772_v15 }
  0xea   : > { %5441 = vmatpush1.bf16.msra.mxu1 %v7857_v19  ;;  %5401 = vmatprep.subr.bf16.mxu0 %v7862_v20  ;;  %v7923_v19 = vld [vmem:[%s11638_s1 + $0x10e4] ss:$16 sps:$4 sm:$0xff]  }
  0xeb   : > { %5442 = vmatprep.subr.bf16.mxu1 %v7865_v21  ;;  %v7926_v20 = vld [vmem:[%s11638_s1 + $0x12e4] ss:$16 sps:$4 sm:$0xff]   ;;  %v5125_v21 = vsub.s32 1, %v9009_v43 }
  0xed   : > { %5402 = vmatpush1.bf16.msra.mxu0 %v7860_v22  ;;  %v9783_v22 = vrot.slane %v1126_v11, %v9032_v49  ;;  %v7954_v11 = vld [vmem:[%s11638_s1 + $0x1240] ss:$16 sps:$4 sm:$0xff]  }
  0xee   : > { %5443 = vmatpush1.bf16.msra.mxu1 %v7863_v24  ;;  %5403 = vmatprep.subr.bf16.mxu0 %v7868_v25  ;;  %v7921_v24 = vld [vmem:[%s11638_s1 + $0x10e0] ss:$16 sps:$4 sm:$0xff]  }
  0xef   : > { %5444 = vmatprep.subr.bf16.mxu1 %v7871_v27  ;;  %v7924_v25 = vld [vmem:[%s11638_s1 + $0x12e0] ss:$16 sps:$4 sm:$0xff]   ;;  %v5122_v27 = vrot.slane %v1008_v14, %v5121_v16 }
  0xf0   : > { %v7957_v16 = vld [vmem:[%s11638_s1 + $0x1020] ss:$16 sps:$4 sm:$0xff]  }
  0xf1   : > { %5404 = vmatpush1.bf16.msra.mxu0 %v7866_v28  ;;  %v7929_v28 = vld [vmem:[%s11638_s1 + $0x10c4] ss:$16 sps:$4 sm:$0xff]  }
  0xf2   : > { %5445 = vmatpush1.bf16.msra.mxu1 %v7869_v29  ;;  %5405 = vmatprep.subr.bf16.mxu0 %v7874_v30  ;;  %v7932_v29 = vld [vmem:[%s11638_s1 + $0x12c4] ss:$16 sps:$4 sm:$0xff]   ;;  %v5126_v30 = vrot.slane %v1008_v14, %v5125_v21 }
  0xf3   : > { %5446 = vmatprep.subr.bf16.mxu1 %v7877_v31  ;;  %v9803_v31 = vcombine.high %v9783_v22, %v9783_v22  ;;  %v7962_v14 = vld [vmem:[%s11638_s1 + $0x1224] ss:$16 sps:$4 sm:$0xff]  }
  0xf4   : > { %v7968_v21 = vld [vmem:[%s11638_s1 + $0x1204] ss:$16 sps:$4 sm:$0xff]  }
  0xf5   : > { %5406 = vmatpush2.bf16.msra.mxu0 %v7872_v33 }
  0xf6   : > { %5447 = vmatpush2.bf16.msra.mxu1 %v7875_v34  ;;  %5407 = vmatprep.subr.bf16.mxu0 %v7880_v36  ;;  %v7927_v36 = vld [vmem:[%s11638_s1 + $0x10c0] ss:$16 sps:$4 sm:$0xff]  }
  0xf7   : > { %5448 = vmatprep.subr.bf16.mxu1 %v7883_v37  ;;  %v7930_v37 = vld [vmem:[%s11638_s1 + $0x12c0] ss:$16 sps:$4 sm:$0xff]  }
  0xf9   : > { %5408 = vmatpush2.bf16.msra.mxu0 %v7878_v38 }
  0xfa   : > { %5449 = vmatpush2.bf16.msra.mxu1 %v7881_v32  ;;  %5409 = vmatprep.subr.bf16.mxu0 %v7886_v40 }
  0xfb   : > { %5450 = vmatprep.subr.bf16.mxu1 %v7889_v44  ;;  %v7935_v44 = vld [vmem:[%s11638_s1 + $0x10a4] ss:$16 sps:$4 sm:$0xff]  }
  0xfd   : > { %5410 = vmatpush2.bf16.msra.mxu0 %v7884_v45  ;;  %v7938_v45 = vld [vmem:[%s11638_s1 + $0x12a4] ss:$16 sps:$4 sm:$0xff]  }
  0xfe   : > { %5451 = vmatpush2.bf16.msra.mxu1 %v7887_v46  ;;  %5411 = vmatprep.subr.bf16.mxu0 %v7892_v47 }
  0xff   : > { %5452 = vmatprep.subr.bf16.mxu1 %v7895_v48  ;;  %v7933_v48 = vld [vmem:[%s11638_s1 + $0x10a0] ss:$16 sps:$4 sm:$0xff]  }
 0x101   : > { %5412 = vmatpush2.bf16.msra.mxu0 %v7890_v51  ;;  %v7936_v51 = vld [vmem:[%s11638_s1 + $0x12a0] ss:$16 sps:$4 sm:$0xff]  }
 0x102   : > { %5453 = vmatpush2.bf16.msra.mxu1 %v7893_v52  ;;  %5413 = vmatprep.subr.bf16.mxu0 %v7898_v53 }
 0x103   : > { %5454 = vmatprep.subr.bf16.mxu1 %v7901_v55 }
 0x105   : > { %5414 = vmatpush2.bf16.msra.mxu0 %v7896_v56 }
 0x106   : > { %5455 = vmatpush2.bf16.msra.mxu1 %v7899_v57  ;;  %5415 = vmatprep.subr.bf16.mxu0 %v7904_v58  ;;  %v7941_v58 = vld [vmem:[%s11638_s1 + $0x1084] ss:$16 sps:$4 sm:$0xff]  }
 0x107   : > { %5456 = vmatprep.subr.bf16.mxu1 %v7907_v61  ;;  %v7944_v61 = vld [vmem:[%s11638_s1 + $0x1284] ss:$16 sps:$4 sm:$0xff]  }
 0x109   : > { %5416 = vmatpush2.bf16.msra.mxu0 %v7902_v62  ;;  %v7939_v62 = vld [vmem:[%s11638_s1 + $0x1080] ss:$16 sps:$4 sm:$0xff]  }
 0x10a   : > { %5457 = vmatpush2.bf16.msra.mxu1 %v7905_v63  ;;  %5417 = vmatprep.subr.bf16.mxu0 %v7910_v2  ;;  %v7942_v63 = vld [vmem:[%s11638_s1 + $0x1280] ss:$16 sps:$4 sm:$0xff]   ;;  %v7947_v2 = vld [vmem:[%s11638_s1 + $0x1064] ss:$16 sps:$4 sm:$0xff]  }
 0x10b   : > { %5458 = vmatprep.subr.bf16.mxu1 %v7913_v3  ;;  %v7950_v3 = vld [vmem:[%s11638_s1 + $0x1264] ss:$16 sps:$4 sm:$0xff]  }
 0x10d   : > { %5418 = vmatpush2.bf16.msra.mxu0 %v7908_v5  ;;  %v7945_v5 = vld [vmem:[%s11638_s1 + $0x1060] ss:$16 sps:$4 sm:$0xff]  }
 0x10e   : > { %5459 = vmatpush2.bf16.msra.mxu1 %v7911_v7  ;;  %5419 = vmatprep.subr.bf16.mxu0 %v7916_v8  ;;  %v7948_v7 = vld [vmem:[%s11638_s1 + $0x1260] ss:$16 sps:$4 sm:$0xff]   ;;  %v7953_v8 = vld [vmem:[%s11638_s1 + $0x1044] ss:$16 sps:$4 sm:$0xff]  }
 0x10f   : > { %5460 = vmatprep.subr.bf16.mxu1 %v7919_v9  ;;  %v7956_v9 = vld [vmem:[%s11638_s1 + $0x1244] ss:$16 sps:$4 sm:$0xff]  }
 0x111   : > { %5420 = vmatpush2.bf16.msra.mxu0 %v7914_v10  ;;  %v7951_v10 = vld [vmem:[%s11638_s1 + $0x1040] ss:$16 sps:$4 sm:$0xff]  }
 0x112   : > { %5461 = vmatpush2.bf16.msra.mxu1 %v7917_v12  ;;  %5471 = vmatprep.subr.bf16.mxu0 %v7923_v19  ;;  %v7959_v12 = vld [vmem:[%s11638_s1 + $0x1024] ss:$16 sps:$4 sm:$0xff]   ;;  %v7960_v19 = vld [vmem:[%s11638_s1 + $0x1220] ss:$16 sps:$4 sm:$0xff]  }
 0x113   : > { %5512 = vmatprep.subr.bf16.mxu1 %v7926_v20  ;;  %v7965_v20 = vld [vmem:[%s11638_s1 + $0x1004] ss:$16 sps:$4 sm:$0xff]  }
 0x114   : > { %v5177_v33 = vpop.f32.mrf.mxu0  ;;  %5422 = vmatmul.mubr.bf16.vlgmr.msra.gmra.mxu0 %v9772_v15 }
 0x115   : > { %v5218_v34 = vpop.f32.mrf.mxu1  ;;  %5463 = vmatmul.mubr.bf16.vlgmr.msra.gmra.mxu1 %v9787_v39  ;;  %v5178_v38 = vadd.f32 %v5177_v33, %v5122_v27  ;;  %5472 = vmatpush1.bf16.msra.mxu0 %v7921_v24  ;;  %v7963_v24 = vld [vmem:[%s11638_s1 + $0x1000] ss:$16 sps:$4 sm:$0xff]   ;;  %v7971_v27 = vld [vmem:[%s11638_s1 + $0x11e4] ss:$16 sps:$4 sm:$0xff]  }
 0x116   : > { %5513 = vmatpush1.bf16.msra.mxu1 %v7924_v25  ;;  %v5179_v32 = vpop.f32.mrf.mxu0  ;;  %5473 = vmatprep.subr.bf16.mxu0 %v7929_v28  ;;  %v7966_v25 = vld [vmem:[%s11638_s1 + $0x1200] ss:$16 sps:$4 sm:$0xff]   ;;  %v7974_v28 = vld [vmem:[%s11638_s1 + $0x13e4] ss:$16 sps:$4 sm:$0xff]  }
 0x117   : > { %v5220_v40 = vpop.f32.mrf.mxu1  ;;  %5514 = vmatprep.subr.bf16.mxu1 %v7932_v29  ;;  %v9819_v46 = vadd.f32 %v5218_v34, %v5178_v38  ;;  %v5180_v47 = vadd.f32 %v5179_v32, %v5126_v30  ;;  %5503 = vmatprep.mubr.bf16.mxu0 %v9783_v22  ;;  %v7969_v29 = vld [vmem:[%s11638_s1 + $0x11e0] ss:$16 sps:$4 sm:$0xff]   ;;  %v7977_v33 = vld [vmem:[%s11638_s1 + $0x11c4] ss:$16 sps:$4 sm:$0xff]  }
 0x118   : > { %5544 = vmatprep.mubr.bf16.mxu1 %v9803_v31  ;;  %v5181_v52 = vpop.f32.mrf.mxu0  ;;  %v7972_v30 = vld [vmem:[%s11638_s1 + $0x13e0] ss:$16 sps:$4 sm:$0xff]   ;;  %v7980_v34 = vld [vmem:[%s11638_s1 + $0x13c4] ss:$16 sps:$4 sm:$0xff]  }
 0x119   : > { %v5222_v53 = vpop.f32.mrf.mxu1  ;;  %v9829_v55 = vadd.f32 %v5220_v40, %v5180_v47  ;;  %5474 = vmatpush1.bf16.msra.mxu0 %v7927_v36  ;;  %v7975_v36 = vld [vmem:[%s11638_s1 + $0x11c0] ss:$16 sps:$4 sm:$0xff]   ;;  %v7983_v38 = vld [vmem:[%s11638_s1 + $0x11a4] ss:$16 sps:$4 sm:$0xff]  }
 0x11a   : > { %5515 = vmatpush1.bf16.msra.mxu1 %v7930_v37  ;;  %v5182_v56 = vpop.f32.mrf.mxu0  ;;  %5475 = vmatprep.subr.bf16.mxu0 %v7935_v44  ;;  %v7978_v37 = vld [vmem:[%s11638_s1 + $0x13c0] ss:$16 sps:$4 sm:$0xff]   ;;  %v7986_v32 = vld [vmem:[%s11638_s1 + $0x13a4] ss:$16 sps:$4 sm:$0xff]  }
 0x11b   : > { %v5223_v57 = vpop.f32.mrf.mxu1  ;;  %5516 = vmatprep.subr.bf16.mxu1 %v7938_v45  ;;  %v7981_v40 = vld [vmem:[%s11638_s1 + $0x11a0] ss:$16 sps:$4 sm:$0xff]   ;;  %v7989_v45 = vld [vmem:[%s11638_s1 + $0x1184] ss:$16 sps:$4 sm:$0xff]  }
 0x11c   : > { %v7984_v44 = vld [vmem:[%s11638_s1 + $0x13a0] ss:$16 sps:$4 sm:$0xff]   ;;  %v7992_v47 = vld [vmem:[%s11638_s1 + $0x1384] ss:$16 sps:$4 sm:$0xff]  }
 0x11d   : > { %5476 = vmatpush1.bf16.msra.mxu0 %v7933_v48  ;;  %v7987_v48 = vld [vmem:[%s11638_s1 + $0x1180] ss:$16 sps:$4 sm:$0xff]   ;;  %v7995_v52 = vld [vmem:[%s11638_s1 + $0x1164] ss:$16 sps:$4 sm:$0xff]  }
 0x11e   : > { %5517 = vmatpush1.bf16.msra.mxu1 %v7936_v51  ;;  %5477 = vmatprep.subr.bf16.mxu0 %v7941_v58  ;;  %v7990_v51 = vld [vmem:[%s11638_s1 + $0x1380] ss:$16 sps:$4 sm:$0xff]   ;;  %v7998_v53 = vld [vmem:[%s11638_s1 + $0x1364] ss:$16 sps:$4 sm:$0xff]  }
 0x11f   : > { %5518 = vmatprep.subr.bf16.mxu1 %v7944_v61  ;;  %v7993_v56 = vld [vmem:[%s11638_s1 + $0x1160] ss:$16 sps:$4 sm:$0xff]   ;;  %v8001_v58 = vld [vmem:[%s11638_s1 + $0x1144] ss:$16 sps:$4 sm:$0xff]  }
 0x120   : > { %v7996_v57 = vld [vmem:[%s11638_s1 + $0x1360] ss:$16 sps:$4 sm:$0xff]   ;;  %v8004_v61 = vld [vmem:[%s11638_s1 + $0x1344] ss:$16 sps:$4 sm:$0xff]  }
 0x121   : > { %5478 = vmatpush1.bf16.msra.mxu0 %v7939_v62  ;;  %v1111_v62 = vcombine.high %v9735_v1, %v9735_v1  ;;  %v8010_v1 = vld [vmem:[%s11638_s1 + $0x1324] ss:$16 sps:$4 sm:$0xff]  }
 0x122   : > { %5519 = vmatpush1.bf16.msra.mxu1 %v7942_v63  ;;  %5479 = vmatprep.subr.bf16.mxu0 %v7947_v2  ;;  %v7999_v63 = vld [vmem:[%s11638_s1 + $0x1140] ss:$16 sps:$4 sm:$0xff]  }
 0x123   : > { %5520 = vmatprep.subr.bf16.mxu1 %v7950_v3  ;;  %v8002_v2 = vld [vmem:[%s11638_s1 + $0x1340] ss:$16 sps:$4 sm:$0xff]   ;;  %v8007_v3 = vld [vmem:[%s11638_s1 + $0x1124] ss:$16 sps:$4 sm:$0xff]  }
 0x125   : > { %5480 = vmatpush1.bf16.msra.mxu0 %v7945_v5  ;;  %v9972_v5 = vrot.slane %v1111_v62, %v9032_v49  ;;  %v8038_v62 = vld [vmem:[%s11638_s1 + $0x1680] ss:$16 sps:$4 sm:$0xff]  }
 0x126   : > { %5521 = vmatpush1.bf16.msra.mxu1 %v7948_v7  ;;  %5481 = vmatprep.subr.bf16.mxu0 %v7953_v8  ;;  %v8005_v7 = vld [vmem:[%s11638_s1 + $0x1120] ss:$16 sps:$4 sm:$0xff]  }
 0x127   : > { %5522 = vmatprep.subr.bf16.mxu1 %v7956_v9  ;;  %v8008_v8 = vld [vmem:[%s11638_s1 + $0x1320] ss:$16 sps:$4 sm:$0xff]   ;;  %v8013_v9 = vld [vmem:[%s11638_s1 + $0x1104] ss:$16 sps:$4 sm:$0xff]  }
 0x129   : > { %5482 = vmatpush1.bf16.msra.mxu0 %v7951_v10  ;;  %v8016_v10 = vld [vmem:[%s11638_s1 + $0x1304] ss:$16 sps:$4 sm:$0xff]  }
 0x12a   : > { %5523 = vmatpush1.bf16.msra.mxu1 %v7954_v11  ;;  %5483 = vmatprep.subr.bf16.mxu0 %v7959_v12  ;;  %v1127_v11 = vcombine.high %v9972_v5, %v9972_v5  ;;  %v9990_v12 = vrot.slane %v9745_v4, %v9032_v49  ;;  %v8022_v4 = vld [vmem:[%s11638_s1 + $0x16e4] ss:$16 sps:$4 sm:$0xff]  }
 0x12b   : > { %5524 = vmatprep.subr.bf16.mxu1 %v7962_v14  ;;  %v8011_v14 = vld [vmem:[%s11638_s1 + $0x1100] ss:$16 sps:$4 sm:$0xff]  }
 0x12d   : > { %5484 = vmatpush1.bf16.msra.mxu0 %v7957_v16  ;;  %v8014_v16 = vld [vmem:[%s11638_s1 + $0x1300] ss:$16 sps:$4 sm:$0xff]  }
 0x12e   : > { %5525 = vmatpush1.bf16.msra.mxu1 %v7960_v19  ;;  %5485 = vmatprep.subr.bf16.mxu0 %v7965_v20  ;;  %v8019_v19 = vld [vmem:[%s11638_s1 + $0x14e4] ss:$16 sps:$4 sm:$0xff]   ;;  %v8017_v20 = vld [vmem:[%s11638_s1 + $0x14e0] ss:$16 sps:$4 sm:$0xff]  }
 0x12f   : > { %5526 = vmatprep.subr.bf16.mxu1 %v7968_v21  ;;  %v8020_v21 = vld [vmem:[%s11638_s1 + $0x16e0] ss:$16 sps:$4 sm:$0xff]  }
 0x131   : > { %5486 = vmatpush1.bf16.msra.mxu0 %v7963_v24  ;;  %v10011_v24 = vrot.slane %v1127_v11, %v9032_v49  ;;  %v8055_v11 = vld [vmem:[%s11638_s1 + $0x1424] ss:$16 sps:$4 sm:$0xff]  }
 0x132   : > { %5527 = vmatpush1.bf16.msra.mxu1 %v7966_v25  ;;  %5487 = vmatprep.subr.bf16.mxu0 %v7971_v27  ;;  %v10015_v25 = vcombine.high %v9990_v12, %v9990_v12  ;;  %v8025_v27 = vld [vmem:[%s11638_s1 + $0x14c4] ss:$16 sps:$4 sm:$0xff]  }
 0x133   : > { %5528 = vmatprep.subr.bf16.mxu1 %v7974_v28  ;;  %v8028_v28 = vld [vmem:[%s11638_s1 + $0x16c4] ss:$16 sps:$4 sm:$0xff]  }
 0x135   : > { %5488 = vmatpush2.bf16.msra.mxu0 %v7969_v29  ;;  %v8023_v29 = vld [vmem:[%s11638_s1 + $0x14c0] ss:$16 sps:$4 sm:$0xff]  }
 0x136   : > { %5529 = vmatpush2.bf16.msra.mxu1 %v7972_v30  ;;  %5489 = vmatprep.subr.bf16.mxu0 %v7977_v33  ;;  %v8026_v30 = vld [vmem:[%s11638_s1 + $0x16c0] ss:$16 sps:$4 sm:$0xff]   ;;  %v10031_v33 = vcombine.high %v10011_v24, %v10011_v24 }
 0x137   : > { %5530 = vmatprep.subr.bf16.mxu1 %v7980_v34 }
 0x139   : > { %5490 = vmatpush2.bf16.msra.mxu0 %v7975_v36 }
 0x13a   : > { %5531 = vmatpush2.bf16.msra.mxu1 %v7978_v37  ;;  %5491 = vmatprep.subr.bf16.mxu0 %v7983_v38 }
 0x13b   : > { %5532 = vmatprep.subr.bf16.mxu1 %v7986_v32 }
 0x13d   : > { %5492 = vmatpush2.bf16.msra.mxu0 %v7981_v40  ;;  %v8031_v40 = vld [vmem:[%s11638_s1 + $0x14a4] ss:$16 sps:$4 sm:$0xff]  }
 0x13e   : > { %5533 = vmatpush2.bf16.msra.mxu1 %v7984_v44  ;;  %5493 = vmatprep.subr.bf16.mxu0 %v7989_v45  ;;  %v8034_v44 = vld [vmem:[%s11638_s1 + $0x16a4] ss:$16 sps:$4 sm:$0xff]  }
 0x13f   : > { %5534 = vmatprep.subr.bf16.mxu1 %v7992_v47 }
 0x141   : > { %5494 = vmatpush2.bf16.msra.mxu0 %v7987_v48  ;;  %v8032_v48 = vld [vmem:[%s11638_s1 + $0x16a0] ss:$16 sps:$4 sm:$0xff]  }
 0x142   : > { %5535 = vmatpush2.bf16.msra.mxu1 %v7990_v51  ;;  %5495 = vmatprep.subr.bf16.mxu0 %v7995_v52 }
 0x143   : > { %5536 = vmatprep.subr.bf16.mxu1 %v7998_v53 }
 0x145   : > { %5496 = vmatpush2.bf16.msra.mxu0 %v7993_v56 }
 0x146   : > { %5537 = vmatpush2.bf16.msra.mxu1 %v7996_v57  ;;  %5497 = vmatprep.subr.bf16.mxu0 %v8001_v58  ;;  %v8037_v57 = vld [vmem:[%s11638_s1 + $0x1484] ss:$16 sps:$4 sm:$0xff]  }
 0x147   : > { %5538 = vmatprep.subr.bf16.mxu1 %v8004_v61  ;;  %v8040_v58 = vld [vmem:[%s11638_s1 + $0x1684] ss:$16 sps:$4 sm:$0xff]   ;;  %v8035_v61 = vld [vmem:[%s11638_s1 + $0x1480] ss:$16 sps:$4 sm:$0xff]  }
 0x149   : > { %5498 = vmatpush2.bf16.msra.mxu0 %v7999_v63  ;;  %v8043_v63 = vld [vmem:[%s11638_s1 + $0x1464] ss:$16 sps:$4 sm:$0xff]  }
 0x14a   : > { %5539 = vmatpush2.bf16.msra.mxu1 %v8002_v2  ;;  %5499 = vmatprep.subr.bf16.mxu0 %v8007_v3  ;;  %v8046_v2 = vld [vmem:[%s11638_s1 + $0x1664] ss:$16 sps:$4 sm:$0xff]   ;;  %v8041_v3 = vld [vmem:[%s11638_s1 + $0x1460] ss:$16 sps:$4 sm:$0xff]  }
 0x14b   : > { %5540 = vmatprep.subr.bf16.mxu1 %v8010_v1  ;;  %v8044_v1 = vld [vmem:[%s11638_s1 + $0x1660] ss:$16 sps:$4 sm:$0xff]  }
 0x14d   : > { %5500 = vmatpush2.bf16.msra.mxu0 %v8005_v7  ;;  %v8049_v7 = vld [vmem:[%s11638_s1 + $0x1444] ss:$16 sps:$4 sm:$0xff]  }
 0x14e   : > { %5541 = vmatpush2.bf16.msra.mxu1 %v8008_v8  ;;  %5501 = vmatprep.subr.bf16.mxu0 %v8013_v9  ;;  %v8052_v8 = vld [vmem:[%s11638_s1 + $0x1644] ss:$16 sps:$4 sm:$0xff]   ;;  %v8047_v9 = vld [vmem:[%s11638_s1 + $0x1440] ss:$16 sps:$4 sm:$0xff]  }
 0x14f   : > { %5542 = vmatprep.subr.bf16.mxu1 %v8016_v10  ;;  %v8050_v10 = vld [vmem:[%s11638_s1 + $0x1640] ss:$16 sps:$4 sm:$0xff]  }
 0x151   : > { %5502 = vmatpush2.bf16.msra.mxu0 %v8011_v14  ;;  %v8058_v14 = vld [vmem:[%s11638_s1 + $0x1624] ss:$16 sps:$4 sm:$0xff]  }
 0x152   : > { %5543 = vmatpush2.bf16.msra.mxu1 %v8014_v16  ;;  %5553 = vmatprep.subr.bf16.mxu0 %v8019_v19  ;;  %v8053_v16 = vld [vmem:[%s11638_s1 + $0x1420] ss:$16 sps:$4 sm:$0xff]  }
 0x153   : > { %5594 = vmatprep.subr.bf16.mxu1 %v8022_v4  ;;  %v8056_v19 = vld [vmem:[%s11638_s1 + $0x1620] ss:$16 sps:$4 sm:$0xff]   ;;  %v8061_v4 = vld [vmem:[%s11638_s1 + $0x1404] ss:$16 sps:$4 sm:$0xff]  }
 0x154   : > { %v5259_v34 = vpop.f32.mrf.mxu0  ;;  %5504 = vmatmul.mubr.bf16.vlgmr.msra.gmra.mxu0 %v9990_v12 }
 0x155   : > { %v5300_v36 = vpop.f32.mrf.mxu1  ;;  %5545 = vmatmul.mubr.bf16.vlgmr.msra.gmra.mxu1 %v10015_v25  ;;  %v5260_v37 = vadd.f32 %v5259_v34, %v9819_v46  ;;  %5554 = vmatpush1.bf16.msra.mxu0 %v8017_v20  ;;  %v8029_v46 = vld [vmem:[%s11638_s1 + $0x14a0] ss:$16 sps:$4 sm:$0xff]   ;;  %v8064_v20 = vld [vmem:[%s11638_s1 + $0x1604] ss:$16 sps:$4 sm:$0xff]  }
 0x156   : > { %5595 = vmatpush1.bf16.msra.mxu1 %v8020_v21  ;;  %v5261_v38 = vpop.f32.mrf.mxu0  ;;  %5555 = vmatprep.subr.bf16.mxu0 %v8025_v27  ;;  %v8059_v21 = vld [vmem:[%s11638_s1 + $0x1400] ss:$16 sps:$4 sm:$0xff]  }
 0x157   : > { %v5302_v32 = vpop.f32.mrf.mxu1  ;;  %5596 = vmatprep.subr.bf16.mxu1 %v8028_v28  ;;  %v10042_v45 = vadd.f32 %v5300_v36, %v5260_v37  ;;  %v5262_v47 = vadd.f32 %v5261_v38, %v9829_v55  ;;  %5585 = vmatprep.mubr.bf16.mxu0 %v10011_v24  ;;  %v8062_v27 = vld [vmem:[%s11638_s1 + $0x1600] ss:$16 sps:$4 sm:$0xff]   ;;  %v8067_v28 = vld [vmem:[%s11638_s1 + $0x15e4] ss:$16 sps:$4 sm:$0xff]  }
 0x158   : > { %5626 = vmatprep.mubr.bf16.mxu1 %v10031_v33  ;;  %v5263_v51 = vpop.f32.mrf.mxu0  ;;  %v8068_v34 = vld [vmem:[%s11638_s1 + $0x17e0] ss:$16 sps:$4 sm:$0xff]   ;;  %v8073_v36 = vld [vmem:[%s11638_s1 + $0x15c4] ss:$16 sps:$4 sm:$0xff]  }
 0x159   : > { %v5304_v52 = vpop.f32.mrf.mxu1  ;;  %v10053_v53 = vadd.f32 %v5302_v32, %v5262_v47  ;;  %5556 = vmatpush1.bf16.msra.mxu0 %v8023_v29  ;;  %v8070_v29 = vld [vmem:[%s11638_s1 + $0x17e4] ss:$16 sps:$4 sm:$0xff]   ;;  %v8071_v38 = vld [vmem:[%s11638_s1 + $0x15c0] ss:$16 sps:$4 sm:$0xff]  }
 0x15a   : > { %5597 = vmatpush1.bf16.msra.mxu1 %v8026_v30  ;;  %v5264_v56 = vpop.f32.mrf.mxu0  ;;  %5557 = vmatprep.subr.bf16.mxu0 %v8031_v40  ;;  %v8065_v30 = vld [vmem:[%s11638_s1 + $0x15e0] ss:$16 sps:$4 sm:$0xff]   ;;  %v8076_v37 = vld [vmem:[%s11638_s1 + $0x17c4] ss:$16 sps:$4 sm:$0xff]  }
 0x15b   : > { %v5305_v55 = vpop.f32.mrf.mxu1  ;;  %5598 = vmatprep.subr.bf16.mxu1 %v8034_v44  ;;  %v8074_v32 = vld [vmem:[%s11638_s1 + $0x17c0] ss:$16 sps:$4 sm:$0xff]   ;;  %v8079_v40 = vld [vmem:[%s11638_s1 + $0x15a4] ss:$16 sps:$4 sm:$0xff]  }
 0x15c   : > { %v8082_v44 = vld [vmem:[%s11638_s1 + $0x17a4] ss:$16 sps:$4 sm:$0xff]   ;;  %v8077_v47 = vld [vmem:[%s11638_s1 + $0x15a0] ss:$16 sps:$4 sm:$0xff]  }
 0x15d   : > { %5558 = vmatpush1.bf16.msra.mxu0 %v8029_v46  ;;  %v8080_v46 = vld [vmem:[%s11638_s1 + $0x17a0] ss:$16 sps:$4 sm:$0xff]   ;;  %v8088_v51 = vld [vmem:[%s11638_s1 + $0x1784] ss:$16 sps:$4 sm:$0xff]  }
 0x15e   : > { %5599 = vmatpush1.bf16.msra.mxu1 %v8032_v48  ;;  %5559 = vmatprep.subr.bf16.mxu0 %v8037_v57  ;;  %v8085_v48 = vld [vmem:[%s11638_s1 + $0x1584] ss:$16 sps:$4 sm:$0xff]   ;;  %v8083_v52 = vld [vmem:[%s11638_s1 + $0x1580] ss:$16 sps:$4 sm:$0xff]  }
 0x15f   : > { %5600 = vmatprep.subr.bf16.mxu1 %v8040_v58  ;;  %v8086_v56 = vld [vmem:[%s11638_s1 + $0x1780] ss:$16 sps:$4 sm:$0xff]   ;;  %v8091_v55 = vld [vmem:[%s11638_s1 + $0x1564] ss:$16 sps:$4 sm:$0xff]  }
 0x160   : > { %v8094_v57 = vld [vmem:[%s11638_s1 + $0x1764] ss:$16 sps:$4 sm:$0xff]   ;;  %v8089_v58 = vld [vmem:[%s11638_s1 + $0x1560] ss:$16 sps:$4 sm:$0xff]  }
 0x161   : > { %5560 = vmatpush1.bf16.msra.mxu0 %v8035_v61  ;;  %v8092_v61 = vld [vmem:[%s11638_s1 + $0x1760] ss:$16 sps:$4 sm:$0xff]  }
 0x162   : > { %5601 = vmatpush1.bf16.msra.mxu1 %v8038_v62  ;;  %5561 = vmatprep.subr.bf16.mxu0 %v8043_v63  ;;  %v8097_v62 = vld [vmem:[%s11638_s1 + $0x1544] ss:$16 sps:$4 sm:$0xff]  }
 0x163   : > { %5602 = vmatprep.subr.bf16.mxu1 %v8046_v2  ;;  %v8100_v63 = vld [vmem:[%s11638_s1 + $0x1744] ss:$16 sps:$4 sm:$0xff]   ;;  %v8095_v2 = vld [vmem:[%s11638_s1 + $0x1540] ss:$16 sps:$4 sm:$0xff]  }
 0x165   : > { %5562 = vmatpush1.bf16.msra.mxu0 %v8041_v3  ;;  %v8098_v3 = vld [vmem:[%s11638_s1 + $0x1740] ss:$16 sps:$4 sm:$0xff]  }
 0x166   : > { %5603 = vmatpush1.bf16.msra.mxu1 %v8044_v1  ;;  %5563 = vmatprep.subr.bf16.mxu0 %v8049_v7  ;;  %v8103_v1 = vld [vmem:[%s11638_s1 + $0x1524] ss:$16 sps:$4 sm:$0xff]  }
 0x167   : > { %5604 = vmatprep.subr.bf16.mxu1 %v8052_v8  ;;  %v8106_v7 = vld [vmem:[%s11638_s1 + $0x1724] ss:$16 sps:$4 sm:$0xff]   ;;  %v8101_v8 = vld [vmem:[%s11638_s1 + $0x1520] ss:$16 sps:$4 sm:$0xff]  }
 0x169   : > { %5564 = vmatpush1.bf16.msra.mxu0 %v8047_v9  ;;  %v8104_v9 = vld [vmem:[%s11638_s1 + $0x1720] ss:$16 sps:$4 sm:$0xff]  }
 0x16a   : > { %5605 = vmatpush1.bf16.msra.mxu1 %v8050_v10  ;;  %5565 = vmatprep.subr.bf16.mxu0 %v8055_v11  ;;  %v8109_v10 = vld [vmem:[%s11638_s1 + $0x1504] ss:$16 sps:$4 sm:$0xff]  }
 0x16b   : > { %5606 = vmatprep.subr.bf16.mxu1 %v8058_v14  ;;  %v8112_v11 = vld [vmem:[%s11638_s1 + $0x1704] ss:$16 sps:$4 sm:$0xff]   ;;  %v10207_v14 = vrot.slane %v9972_v5, %v9032_v49  ;;  %v8119_v5 = vld [vmem:[%s11638_s1 + $0xec] ss:$16 sps:$4 sm:$0xff]  }
 0x16d   : > { %5566 = vmatpush1.bf16.msra.mxu0 %v8053_v16  ;;  %v8107_v16 = vld [vmem:[%s11638_s1 + $0x1500] ss:$16 sps:$4 sm:$0xff]  }
 0x16e   : > { %5607 = vmatpush1.bf16.msra.mxu1 %v8056_v19  ;;  %5567 = vmatprep.subr.bf16.mxu0 %v8061_v4  ;;  %v8110_v19 = vld [vmem:[%s11638_s1 + $0x1700] ss:$16 sps:$4 sm:$0xff]   ;;  %v8116_v4 = vld [vmem:[%s11638_s1 + $0x1864] ss:$16 sps:$4 sm:$0xff]  }
 0x16f   : > { %5608 = vmatprep.subr.bf16.mxu1 %v8064_v20  ;;  %v8114_v20 = vld [vmem:[%s11638_s1 + $0x1860] ss:$16 sps:$4 sm:$0xff]  }
 0x171   : > { %5568 = vmatpush1.bf16.msra.mxu0 %v8059_v21  ;;  %v8117_v21 = vld [vmem:[%s11638_s1 + $0xe8] ss:$16 sps:$4 sm:$0xff]  }
 0x172   : > { %5609 = vmatpush1.bf16.msra.mxu1 %v8062_v27  ;;  %5569 = vmatprep.subr.bf16.mxu0 %v8067_v28  ;;  %v10229_v27 = vcombine.high %v10207_v14, %v10207_v14  ;;  %v8122_v28 = vld [vmem:[%s11638_s1 + $0x1844] ss:$16 sps:$4 sm:$0xff]  }
 0x173   : > { %5610 = vmatprep.subr.bf16.mxu1 %v8070_v29  ;;  %v8125_v29 = vld [vmem:[%s11638_s1 + $0xcc] ss:$16 sps:$4 sm:$0xff]  }
 0x175   : > { %5570 = vmatpush2.bf16.msra.mxu0 %v8065_v30  ;;  %v8120_v30 = vld [vmem:[%s11638_s1 + $0x1840] ss:$16 sps:$4 sm:$0xff]  }
 0x176   : > { %5611 = vmatpush2.bf16.msra.mxu1 %v8068_v34  ;;  %5571 = vmatprep.subr.bf16.mxu0 %v8073_v36  ;;  %v8123_v34 = vld [vmem:[%s11638_s1 + $0xc8] ss:$16 sps:$4 sm:$0xff]  }
 0x177   : > { %5612 = vmatprep.subr.bf16.mxu1 %v8076_v37 }
 0x179   : > { %5572 = vmatpush2.bf16.msra.mxu0 %v8071_v38 }
 0x17a   : > { %5613 = vmatpush2.bf16.msra.mxu1 %v8074_v32  ;;  %5573 = vmatprep.subr.bf16.mxu0 %v8079_v40 }
 0x17b   : > { %5614 = vmatprep.subr.bf16.mxu1 %v8082_v44  ;;  %v8128_v44 = vld [vmem:[%s11638_s1 + $0x1824] ss:$16 sps:$4 sm:$0xff]  }
 0x17d   : > { %5574 = vmatpush2.bf16.msra.mxu0 %v8077_v47  ;;  %v8131_v47 = vld [vmem:[%s11638_s1 + $0xac] ss:$16 sps:$4 sm:$0xff]  }
 0x17e   : > { %5615 = vmatpush2.bf16.msra.mxu1 %v8080_v46  ;;  %5575 = vmatprep.subr.bf16.mxu0 %v8085_v48 }
 0x17f   : > { %5616 = vmatprep.subr.bf16.mxu1 %v8088_v51  ;;  %v8129_v51 = vld [vmem:[%s11638_s1 + $0xa8] ss:$16 sps:$4 sm:$0xff]  }
 0x181   : > { %5576 = vmatpush2.bf16.msra.mxu0 %v8083_v52  ;;  %v8810_v52 = vmov 0  }
 0x182   : > { %5617 = vmatpush2.bf16.msra.mxu1 %v8086_v56  ;;  %5577 = vmatprep.subr.bf16.mxu0 %v8091_v55 }
 0x183   : > { %5618 = vmatprep.subr.bf16.mxu1 %v8094_v57 }
 0x185   : > { %5578 = vmatpush2.bf16.msra.mxu0 %v8089_v58 }
 0x186   : > { %5619 = vmatpush2.bf16.msra.mxu1 %v8092_v61  ;;  %5579 = vmatprep.subr.bf16.mxu0 %v8097_v62  ;;  %v8134_v61 = vld [vmem:[%s11638_s1 + $0x1804] ss:$16 sps:$4 sm:$0xff]   ;;  %v8137_v62 = vld [vmem:[%s11638_s1 + $0x8c] ss:$16 sps:$4 sm:$0xff]  }
 0x187   : > { %5620 = vmatprep.subr.bf16.mxu1 %v8100_v63  ;;  %v8135_v63 = vld [vmem:[%s11638_s1 + $0x88] ss:$16 sps:$4 sm:$0xff]  }
 0x189   : > { %5580 = vmatpush2.bf16.msra.mxu0 %v8095_v2  ;;  %v6627_v2 = vld.sshfl [vmem:[%s9029_s17 + $0x18] sm:$0x1 pattern:$0x75316420] }
 0x18a   : > { %5621 = vmatpush2.bf16.msra.mxu1 %v8098_v3  ;;  %5581 = vmatprep.subr.bf16.mxu0 %v8103_v1  ;;  %v8140_v3 = vld [vmem:[%s11638_s1 + $0x6c] ss:$16 sps:$4 sm:$0xff]  }
 0x18b   : > { %5622 = vmatprep.subr.bf16.mxu1 %v8106_v7  ;;  %v8143_v1 = vld [vmem:[%s11638_s1 + $0x2ec] ss:$16 sps:$4 sm:$0xff]   ;;  %v8138_v7 = vld [vmem:[%s11638_s1 + $0x68] ss:$16 sps:$4 sm:$0xff]  }
 0x18d   : > { %5582 = vmatpush2.bf16.msra.mxu0 %v8101_v8  ;;  %v8141_v8 = vld [vmem:[%s11638_s1 + $0x2e8] ss:$16 sps:$4 sm:$0xff]  }
 0x18e   : > { %5623 = vmatpush2.bf16.msra.mxu1 %v8104_v9  ;;  %5583 = vmatprep.subr.bf16.mxu0 %v8109_v10  ;;  %v10291_v9 = vrot.slane %v6627_v2, %v9032_v49  ;;  %v8146_v10 = vld [vmem:[%s11638_s1 + $0x4c] ss:$16 sps:$4 sm:$0xff]   ;;  %v8144_v49 = vld [vmem:[%s11638_s1 + $0x48] ss:$16 sps:$4 sm:$0xff]  }
 0x18f   : > { %5624 = vmatprep.subr.bf16.mxu1 %v8112_v11  ;;  %v8149_v11 = vld [vmem:[%s11638_s1 + $0x2cc] ss:$16 sps:$4 sm:$0xff]  }
 0x190   : > { %v8194_v2 = vld [vmem:[%s11638_s1 + $0x14c] ss:$16 sps:$4 sm:$0xff]  }
 0x191   : > { %5584 = vmatpush2.bf16.msra.mxu0 %v8107_v16  ;;  %v8147_v16 = vld [vmem:[%s11638_s1 + $0x2c8] ss:$16 sps:$4 sm:$0xff]  }
 0x192   : > { %5625 = vmatpush2.bf16.msra.mxu1 %v8110_v19  ;;  %5643 = vmatprep.subr.bf16.mxu0 %v8116_v4  ;;  %v8152_v19 = vld [vmem:[%s11638_s1 + $0x2c] ss:$16 sps:$4 sm:$0xff]  }
 0x193   : > { %5676 = vmatprep.subr.bf16.mxu1 %v8119_v5  ;;  %v8155_v4 = vld [vmem:[%s11638_s1 + $0x2ac] ss:$16 sps:$4 sm:$0xff]   ;;  %v8150_v5 = vld [vmem:[%s11638_s1 + $0x28] ss:$16 sps:$4 sm:$0xff]  }
 0x194   : > { %v5341_v36 = vpop.f32.mrf.mxu0  ;;  %5586 = vmatmul.mubr.bf16.vlgmr.msra.gmra.mxu0 %v10207_v14 }
 0x195   : > { %v5382_v37 = vpop.f32.mrf.mxu1  ;;  %5627 = vmatmul.mubr.bf16.vlgmr.msra.gmra.mxu1 %v10229_v27  ;;  %v5342_v38 = vadd.f32 %v5341_v36, %v10042_v45  ;;  %5644 = vmatpush1.bf16.msra.mxu0 %v8114_v20  ;;  %v8126_v45 = vld [vmem:[%s11638_s1 + $0x1820] ss:$16 sps:$4 sm:$0xff]   ;;  %v8153_v20 = vld [vmem:[%s11638_s1 + $0x2a8] ss:$16 sps:$4 sm:$0xff]  }
 0x196   : > { %5677 = vmatpush1.bf16.msra.mxu1 %v8117_v21  ;;  %v5343_v32 = vpop.f32.mrf.mxu0  ;;  %5645 = vmatprep.subr.bf16.mxu0 %v8122_v28  ;;  %v8158_v21 = vld [vmem:[%s11638_s1 + $0xc] ss:$16 sps:$4 sm:$0xff]   ;;  %v8156_v28 = vld [vmem:[%s11638_s1 + $0x8] ss:$16 sps:$4 sm:$0xff]  }
 0x197   : > { %v5384_v40 = vpop.f32.mrf.mxu1  ;;  %5678 = vmatprep.subr.bf16.mxu1 %v8125_v29  ;;  %v10252_v46 = vadd.f32 %v5382_v37, %v5342_v38  ;;  %v5344_v48 = vadd.f32 %v5343_v32, %v10053_v53  ;;  %5667 = vmatprep.mubr.bf16.mxu0 %v8810_v52  ;;  %v8159_v29 = vld [vmem:[%s11638_s1 + $0x288] ss:$16 sps:$4 sm:$0xff]   ;;  %v8170_v38 = vld [vmem:[%s11638_s1 + $0x1cc] ss:$16 sps:$4 sm:$0xff]  }
 0x198   : > { %5708 = vmatprep.mubr.bf16.mxu1 %v9058_v60  ;;  %v5345_v56 = vpop.f32.mrf.mxu0  ;;  %v8132_v60 = vld [vmem:[%s11638_s1 + $0x1800] ss:$16 sps:$4 sm:$0xff]   ;;  %v8162_v36 = vld [vmem:[%s11638_s1 + $0x1e8] ss:$16 sps:$4 sm:$0xff]   ;;  %v8173_v32 = vld [vmem:[%s11638_s1 + $0x24c] ss:$16 sps:$4 sm:$0xff]  }
 0x199   : > { %v5386_v55 = vpop.f32.mrf.mxu1  ;;  %v10263_v57 = vadd.f32 %v5384_v40, %v5344_v48  ;;  %5646 = vmatpush1.bf16.msra.mxu0 %v8120_v30  ;;  %v8164_v30 = vld [vmem:[%s11638_s1 + $0x1ec] ss:$16 sps:$4 sm:$0xff]   ;;  %v8165_v37 = vld [vmem:[%s11638_s1 + $0x268] ss:$16 sps:$4 sm:$0xff]  }
 0x19a   : > { %5679 = vmatpush1.bf16.msra.mxu1 %v8123_v34  ;;  %v5346_v53 = vpop.f32.mrf.mxu0  ;;  %5647 = vmatprep.subr.bf16.mxu0 %v8128_v44  ;;  %v8167_v34 = vld [vmem:[%s11638_s1 + $0x26c] ss:$16 sps:$4 sm:$0xff]   ;;  %v8168_v40 = vld [vmem:[%s11638_s1 + $0x1c8] ss:$16 sps:$4 sm:$0xff]  }
 0x19b   : > { %v5387_v58 = vpop.f32.mrf.mxu1  ;;  %5680 = vmatprep.subr.bf16.mxu1 %v8131_v47  ;;  %v8171_v44 = vld [vmem:[%s11638_s1 + $0x248] ss:$16 sps:$4 sm:$0xff]   ;;  %v8176_v47 = vld [vmem:[%s11638_s1 + $0x1ac] ss:$16 sps:$4 sm:$0xff]  }
 0x19c   : > { %v8179_v48 = vld [vmem:[%s11638_s1 + $0x22c] ss:$16 sps:$4 sm:$0xff]   ;;  %v8180_v53 = vld [vmem:[%s11638_s1 + $0x188] ss:$16 sps:$4 sm:$0xff]  }
 0x19d   : > { %5648 = vmatpush1.bf16.msra.mxu0 %v8126_v45  ;;  %v8174_v45 = vld [vmem:[%s11638_s1 + $0x1a8] ss:$16 sps:$4 sm:$0xff]   ;;  %v8182_v56 = vld [vmem:[%s11638_s1 + $0x18c] ss:$16 sps:$4 sm:$0xff]  }
 0x19e   : > { %5681 = vmatpush1.bf16.msra.mxu1 %v8129_v51  ;;  %5649 = vmatprep.subr.bf16.mxu0 %v8134_v61  ;;  %v8177_v51 = vld [vmem:[%s11638_s1 + $0x228] ss:$16 sps:$4 sm:$0xff]   ;;  %v8185_v55 = vld [vmem:[%s11638_s1 + $0x20c] ss:$16 sps:$4 sm:$0xff]  }
 0x19f   : > { %5682 = vmatprep.subr.bf16.mxu1 %v8137_v62  ;;  %v8183_v58 = vld [vmem:[%s11638_s1 + $0x208] ss:$16 sps:$4 sm:$0xff]   ;;  %v8188_v61 = vld [vmem:[%s11638_s1 + $0x16c] ss:$16 sps:$4 sm:$0xff]  }
 0x1a0   : > { %v8191_v62 = vld [vmem:[%s11638_s1 + $0x3ec] ss:$16 sps:$4 sm:$0xff]  }
 0x1a1   : > { %5650 = vmatpush1.bf16.msra.mxu0 %v8132_v60  ;;  %v8186_v60 = vld [vmem:[%s11638_s1 + $0x168] ss:$16 sps:$4 sm:$0xff]  }
 0x1a2   : > { %5683 = vmatpush1.bf16.msra.mxu1 %v8135_v63  ;;  %5717 = vmatprep.subr.bf16.mxu0 %v8143_v1  ;;  %v8189_v63 = vld [vmem:[%s11638_s1 + $0x3e8] ss:$16 sps:$4 sm:$0xff]  }
 0x1a3   : > { %5684 = vmatprep.subr.bf16.mxu1 %v8140_v3  ;;  %v8197_v3 = vld [vmem:[%s11638_s1 + $0x3cc] ss:$16 sps:$4 sm:$0xff]   ;;  %v8192_v1 = vld [vmem:[%s11638_s1 + $0x148] ss:$16 sps:$4 sm:$0xff]  }
 0x1a4   : > { %7412 = vmatmul.mubr.msk.bf16.vlgmr.msra.gmra.mxu0 %vm5139_vm0, %v10291_v9 }
 0x1a5   : > { %5718 = vmatpush1.bf16.msra.mxu0 %v8141_v8  ;;  %5749 = vmatprep.mubr.bf16.mxu0 %v9071_v0  ;;  %v8161_v0 = vld [vmem:[%s11638_s1 + $0x28c] ss:$16 sps:$4 sm:$0xff]  }
 0x1a6   : > { %5685 = vmatpush1.bf16.msra.mxu1 %v8138_v7  ;;  %5719 = vmatprep.subr.bf16.mxu0 %v8149_v11  ;;  %v8195_v7 = vld [vmem:[%s11638_s1 + $0x3c8] ss:$16 sps:$4 sm:$0xff]   ;;  %v8200_v8 = vld [vmem:[%s11638_s1 + $0x12c] ss:$16 sps:$4 sm:$0xff]  }
 0x1a7   : > { %5686 = vmatprep.subr.bf16.mxu1 %v8146_v10  ;;  %v8203_v10 = vld [vmem:[%s11638_s1 + $0x3ac] ss:$16 sps:$4 sm:$0xff]   ;;  %v8198_v11 = vld [vmem:[%s11638_s1 + $0x128] ss:$16 sps:$4 sm:$0xff]  }
 0x1a9   : > { %5720 = vmatpush1.bf16.msra.mxu0 %v8147_v16  ;;  %v8206_v16 = vld [vmem:[%s11638_s1 + $0x10c] ss:$16 sps:$4 sm:$0xff]  }
 0x1aa   : > { %5687 = vmatpush1.bf16.msra.mxu1 %v8144_v49  ;;  %5721 = vmatprep.subr.bf16.mxu0 %v8155_v4  ;;  %v8201_v49 = vld [vmem:[%s11638_s1 + $0x3a8] ss:$16 sps:$4 sm:$0xff]  }
 0x1ab   : > { %5688 = vmatprep.subr.bf16.mxu1 %v8152_v19  ;;  %v8209_v19 = vld [vmem:[%s11638_s1 + $0x38c] ss:$16 sps:$4 sm:$0xff]   ;;  %v8204_v4 = vld [vmem:[%s11638_s1 + $0x108] ss:$16 sps:$4 sm:$0xff]  }
 0x1ad   : > { %5722 = vmatpush1.bf16.msra.mxu0 %v8153_v20  ;;  %v8212_v20 = vld [vmem:[%s11638_s1 + $0x36c] ss:$16 sps:$4 sm:$0xff]  }
 0x1ae   : > { %5689 = vmatpush1.bf16.msra.mxu1 %v8150_v5  ;;  %5723 = vmatprep.subr.bf16.mxu0 %v8161_v0  ;;  %v8207_v5 = vld [vmem:[%s11638_s1 + $0x388] ss:$16 sps:$4 sm:$0xff]  }
 0x1af   : > { %5690 = vmatprep.subr.bf16.mxu1 %v8158_v21  ;;  %v8215_v21 = vld [vmem:[%s11638_s1 + $0x4ec] ss:$16 sps:$4 sm:$0xff]   ;;  %v8210_v0 = vld [vmem:[%s11638_s1 + $0x368] ss:$16 sps:$4 sm:$0xff]  }
 0x1b1   : > { %5724 = vmatpush1.bf16.msra.mxu0 %v8159_v29  ;;  %v8218_v29 = vld [vmem:[%s11638_s1 + $0x34c] ss:$16 sps:$4 sm:$0xff]  }
 0x1b2   : > { %5691 = vmatpush1.bf16.msra.mxu1 %v8156_v28  ;;  %5725 = vmatprep.subr.bf16.mxu0 %v8167_v34  ;;  %v8213_v28 = vld [vmem:[%s11638_s1 + $0x4e8] ss:$16 sps:$4 sm:$0xff]  }
 0x1b3   : > { %5692 = vmatprep.subr.bf16.mxu1 %v8164_v30  ;;  %v8221_v30 = vld [vmem:[%s11638_s1 + $0x4cc] ss:$16 sps:$4 sm:$0xff]   ;;  %v8216_v34 = vld [vmem:[%s11638_s1 + $0x348] ss:$16 sps:$4 sm:$0xff]  }
 0x1b5   : > { %5726 = vmatpush1.bf16.msra.mxu0 %v8165_v37 }
 0x1b6   : > { %5693 = vmatpush2.bf16.msra.mxu1 %v8162_v36  ;;  %5727 = vmatprep.subr.bf16.mxu0 %v8173_v32  ;;  %v8219_v36 = vld [vmem:[%s11638_s1 + $0x4c8] ss:$16 sps:$4 sm:$0xff]  }
 0x1b7   : > { %5694 = vmatprep.subr.bf16.mxu1 %v8170_v38 }
 0x1b9   : > { %5728 = vmatpush1.bf16.msra.mxu0 %v8171_v44 }
 0x1ba   : > { %5695 = vmatpush2.bf16.msra.mxu1 %v8168_v40  ;;  %5729 = vmatprep.subr.bf16.mxu0 %v8179_v48  ;;  %v8227_v48 = vld [vmem:[%s11638_s1 + $0x4ac] ss:$16 sps:$4 sm:$0xff]  }
 0x1bb   : > { %5696 = vmatprep.subr.bf16.mxu1 %v8176_v47  ;;  %v8224_v47 = vld [vmem:[%s11638_s1 + $0x32c] ss:$16 sps:$4 sm:$0xff]  }
 0x1bd   : > { %5730 = vmatpush1.bf16.msra.mxu0 %v8177_v51  ;;  %v8225_v51 = vld [vmem:[%s11638_s1 + $0x4a8] ss:$16 sps:$4 sm:$0xff]  }
 0x1be   : > { %5697 = vmatpush2.bf16.msra.mxu1 %v8174_v45  ;;  %5731 = vmatprep.subr.bf16.mxu0 %v8185_v55 }
 0x1bf   : > { %5698 = vmatprep.subr.bf16.mxu1 %v8182_v56 }
 0x1c1   : > { %5732 = vmatpush1.bf16.msra.mxu0 %v8183_v58 }
 0x1c2   : > { %5699 = vmatpush2.bf16.msra.mxu1 %v8180_v53  ;;  %5733 = vmatprep.subr.bf16.mxu0 %v8191_v62  ;;  %v8233_v62 = vld [vmem:[%s11638_s1 + $0x48c] ss:$16 sps:$4 sm:$0xff]  }
 0x1c3   : > { %5700 = vmatprep.subr.bf16.mxu1 %v8188_v61 }
 0x1c5   : > { %5734 = vmatpush2.bf16.msra.mxu0 %v8189_v63  ;;  %v8236_v63 = vld [vmem:[%s11638_s1 + $0x46c] ss:$16 sps:$4 sm:$0xff]  }
 0x1c6   : > { %5701 = vmatpush2.bf16.msra.mxu1 %v8186_v60  ;;  %5735 = vmatprep.subr.bf16.mxu0 %v8197_v3  ;;  %v8231_v60 = vld [vmem:[%s11638_s1 + $0x488] ss:$16 sps:$4 sm:$0xff]  }
 0x1c7   : > { %5702 = vmatprep.subr.bf16.mxu1 %v8194_v2  ;;  %v8239_v2 = vld [vmem:[%s11638_s1 + $0x6ec] ss:$16 sps:$4 sm:$0xff]   ;;  %v8234_v3 = vld [vmem:[%s11638_s1 + $0x468] ss:$16 sps:$4 sm:$0xff]  }
 0x1c9   : > { %5736 = vmatpush2.bf16.msra.mxu0 %v8195_v7  ;;  %v8242_v7 = vld [vmem:[%s11638_s1 + $0x44c] ss:$16 sps:$4 sm:$0xff]  }
 0x1ca   : > { %5703 = vmatpush2.bf16.msra.mxu1 %v8192_v1  ;;  %5737 = vmatprep.subr.bf16.mxu0 %v8203_v10  ;;  %v8237_v1 = vld [vmem:[%s11638_s1 + $0x6e8] ss:$16 sps:$4 sm:$0xff]  }
 0x1cb   : > { %5704 = vmatprep.subr.bf16.mxu1 %v8200_v8  ;;  %v8245_v8 = vld [vmem:[%s11638_s1 + $0x6cc] ss:$16 sps:$4 sm:$0xff]   ;;  %v8240_v10 = vld [vmem:[%s11638_s1 + $0x448] ss:$16 sps:$4 sm:$0xff]  }
 0x1cd   : > { %5738 = vmatpush2.bf16.msra.mxu0 %v8201_v49  ;;  %v8248_v49 = vld [vmem:[%s11638_s1 + $0x42c] ss:$16 sps:$4 sm:$0xff]  }
 0x1ce   : > { %5705 = vmatpush2.bf16.msra.mxu1 %v8198_v11  ;;  %5739 = vmatprep.subr.bf16.mxu0 %v8209_v19  ;;  %v8243_v11 = vld [vmem:[%s11638_s1 + $0x6c8] ss:$16 sps:$4 sm:$0xff]  }
 0x1cf   : > { %5706 = vmatprep.subr.bf16.mxu1 %v8206_v16  ;;  %v8251_v16 = vld [vmem:[%s11638_s1 + $0x6ac] ss:$16 sps:$4 sm:$0xff]   ;;  %v8246_v19 = vld [vmem:[%s11638_s1 + $0x428] ss:$16 sps:$4 sm:$0xff]  }
 0x1d1   : > { %5740 = vmatpush2.bf16.msra.mxu0 %v8207_v5  ;;  %v8257_v5 = vld [vmem:[%s11638_s1 + $0x68c] ss:$16 sps:$4 sm:$0xff]  }
 0x1d2   : > { %5707 = vmatpush2.bf16.msra.mxu1 %v8204_v4  ;;  %5741 = vmatprep.subr.bf16.mxu0 %v8212_v20  ;;  %v8254_v4 = vld [vmem:[%s11638_s1 + $0x40c] ss:$16 sps:$4 sm:$0xff]   ;;  %v8252_v20 = vld [vmem:[%s11638_s1 + $0x408] ss:$16 sps:$4 sm:$0xff]  }
 0x1d3   : > { %5758 = vmatprep.subr.bf16.mxu1 %v8215_v21  ;;  %v8260_v21 = vld [vmem:[%s11638_s1 + $0x5ec] ss:$16 sps:$4 sm:$0xff]  }
 0x1d4   : > { %v5423_v37 = vpop.f32.mrf.mxu0 }
 0x1d5   : > { %v5464_v38 = vpop.f32.mrf.mxu1  ;;  %5709 = vmatmul.mubr.bf16.vlgmr.msra.gmra.mxu1 %v9108_v13  ;;  %v5424_v32 = vadd.f32 %v5423_v37, %v10252_v46  ;;  %5742 = vmatpush2.bf16.msra.mxu0 %v8210_v0  ;;  %v8222_v46 = vld [vmem:[%s11638_s1 + $0x328] ss:$16 sps:$4 sm:$0xff]   ;;  %v8263_v0 = vld [vmem:[%s11638_s1 + $0x66c] ss:$16 sps:$4 sm:$0xff]  }
 0x1d6   : > { %5759 = vmatpush1.bf16.msra.mxu1 %v8213_v28  ;;  %v5425_v40 = vpop.f32.mrf.mxu0  ;;  %5743 = vmatprep.subr.bf16.mxu0 %v8218_v29  ;;  %v8258_v28 = vld [vmem:[%s11638_s1 + $0x5e8] ss:$16 sps:$4 sm:$0xff]  }
 0x1d7   : > { %v5466_v44 = vpop.f32.mrf.mxu1  ;;  %5760 = vmatprep.subr.bf16.mxu1 %v8221_v30  ;;  %v10460_v45 = vadd.f32 %v5464_v38, %v5424_v32  ;;  %v5426_v13 = vadd.f32 %v5425_v40, %v10263_v57  ;;  %5790 = vmatprep.mubr.bf16.mxu1 %v9120_v17  ;;  %v8230_v57 = vld [vmem:[%s11638_s1 + $0x30c] ss:$16 sps:$4 sm:$0xff]   ;;  %v8228_v17 = vld [vmem:[%s11638_s1 + $0x308] ss:$16 sps:$4 sm:$0xff]  }
 0x1d8   : > { %v5427_v56 = vpop.f32.mrf.mxu0  ;;  %v8261_v29 = vld [vmem:[%s11638_s1 + $0x668] ss:$16 sps:$4 sm:$0xff]   ;;  %v8266_v30 = vld [vmem:[%s11638_s1 + $0x5cc] ss:$16 sps:$4 sm:$0xff]  }
 0x1d9   : > { %v5468_v55 = vpop.f32.mrf.mxu1  ;;  %v10470_v53 = vadd.f32 %v5466_v44, %v5426_v13  ;;  %5744 = vmatpush2.bf16.msra.mxu0 %v8216_v34  ;;  %v8269_v34 = vld [vmem:[%s11638_s1 + $0x64c] ss:$16 sps:$4 sm:$0xff]   ;;  %v8267_v37 = vld [vmem:[%s11638_s1 + $0x648] ss:$16 sps:$4 sm:$0xff]  }
 0x1da   : > { %5761 = vmatpush1.bf16.msra.mxu1 %v8219_v36  ;;  %v5428_v58 = vpop.f32.mrf.mxu0  ;;  %5745 = vmatprep.subr.bf16.mxu0 %v8224_v47  ;;  %v8264_v36 = vld [vmem:[%s11638_s1 + $0x5c8] ss:$16 sps:$4 sm:$0xff]   ;;  %v8272_v38 = vld [vmem:[%s11638_s1 + $0x5ac] ss:$16 sps:$4 sm:$0xff]  }
 0x1db   : > { %v5469_v61 = vpop.f32.mrf.mxu1  ;;  %5762 = vmatprep.subr.bf16.mxu1 %v8227_v48  ;;  %v8275_v32 = vld [vmem:[%s11638_s1 + $0x62c] ss:$16 sps:$4 sm:$0xff]   ;;  %v8270_v40 = vld [vmem:[%s11638_s1 + $0x5a8] ss:$16 sps:$4 sm:$0xff]  }
 0x1dc   : > { %v8273_v44 = vld [vmem:[%s11638_s1 + $0x628] ss:$16 sps:$4 sm:$0xff]   ;;  %v8278_v47 = vld [vmem:[%s11638_s1 + $0x58c] ss:$16 sps:$4 sm:$0xff]  }
 0x1dd   : > { %5746 = vmatpush2.bf16.msra.mxu0 %v8222_v46  ;;  %v8281_v48 = vld [vmem:[%s11638_s1 + $0x60c] ss:$16 sps:$4 sm:$0xff]   ;;  %v8276_v13 = vld [vmem:[%s11638_s1 + $0x588] ss:$16 sps:$4 sm:$0xff]  }
 0x1de   : > { %5763 = vmatpush1.bf16.msra.mxu1 %v8225_v51  ;;  %5747 = vmatprep.subr.bf16.mxu0 %v8230_v57  ;;  %v8279_v46 = vld [vmem:[%s11638_s1 + $0x608] ss:$16 sps:$4 sm:$0xff]   ;;  %v8284_v51 = vld [vmem:[%s11638_s1 + $0x56c] ss:$16 sps:$4 sm:$0xff]  }
 0x1df   : > { %5764 = vmatprep.subr.bf16.mxu1 %v8233_v62  ;;  %v8287_v56 = vld [vmem:[%s11638_s1 + $0x7ec] ss:$16 sps:$4 sm:$0xff]   ;;  %v8282_v55 = vld [vmem:[%s11638_s1 + $0x568] ss:$16 sps:$4 sm:$0xff]  }
 0x1e0   : > { %v8285_v58 = vld [vmem:[%s11638_s1 + $0x7e8] ss:$16 sps:$4 sm:$0xff]   ;;  %v8290_v61 = vld [vmem:[%s11638_s1 + $0x54c] ss:$16 sps:$4 sm:$0xff]  }
 0x1e1   : > { %5748 = vmatpush2.bf16.msra.mxu0 %v8228_v17  ;;  %v8293_v57 = vld [vmem:[%s11638_s1 + $0x7cc] ss:$16 sps:$4 sm:$0xff]   ;;  %v8288_v62 = vld [vmem:[%s11638_s1 + $0x548] ss:$16 sps:$4 sm:$0xff]  }
 0x1e2   : > { %5765 = vmatpush1.bf16.msra.mxu1 %v8231_v60  ;;  %5799 = vmatprep.subr.bf16.mxu0 %v8239_v2  ;;  %v8291_v17 = vld [vmem:[%s11638_s1 + $0x7c8] ss:$16 sps:$4 sm:$0xff]   ;;  %v8296_v60 = vld [vmem:[%s11638_s1 + $0x52c] ss:$16 sps:$4 sm:$0xff]  }
 0x1e3   : > { %5766 = vmatprep.subr.bf16.mxu1 %v8236_v63  ;;  %v8299_v63 = vld [vmem:[%s11638_s1 + $0x7ac] ss:$16 sps:$4 sm:$0xff]   ;;  %v8294_v2 = vld [vmem:[%s11638_s1 + $0x528] ss:$16 sps:$4 sm:$0xff]  }
 0x1e4   : > { %5750 = vmatmul.mubr.bf16.vlgmr.msra.gmra.mxu0 %v9124_v18  ;;  %v8249_v18 = vld [vmem:[%s11638_s1 + $0x6a8] ss:$16 sps:$4 sm:$0xff]  }
 0x1e5   : > { %5800 = vmatpush1.bf16.msra.mxu0 %v8237_v1  ;;  %5831 = vmatprep.mubr.bf16.mxu0 %v9140_v23  ;;  %v8255_v23 = vld [vmem:[%s11638_s1 + $0x688] ss:$16 sps:$4 sm:$0xff]   ;;  %v8302_v1 = vld [vmem:[%s11638_s1 + $0x50c] ss:$16 sps:$4 sm:$0xff]  }
 0x1e6   : > { %5767 = vmatpush1.bf16.msra.mxu1 %v8234_v3  ;;  %5801 = vmatprep.subr.bf16.mxu0 %v8245_v8  ;;  %v8297_v3 = vld [vmem:[%s11638_s1 + $0x7a8] ss:$16 sps:$4 sm:$0xff]  }
 0x1e7   : > { %5768 = vmatprep.subr.bf16.mxu1 %v8242_v7  ;;  %v8305_v7 = vld [vmem:[%s11638_s1 + $0x78c] ss:$16 sps:$4 sm:$0xff]   ;;  %v8300_v8 = vld [vmem:[%s11638_s1 + $0x508] ss:$16 sps:$4 sm:$0xff]  }
 0x1e9   : > { %5802 = vmatpush1.bf16.msra.mxu0 %v8243_v11  ;;  %v8308_v11 = vld [vmem:[%s11638_s1 + $0x76c] ss:$16 sps:$4 sm:$0xff]  }
 0x1ea   : > { %5769 = vmatpush1.bf16.msra.mxu1 %v8240_v10  ;;  %5803 = vmatprep.subr.bf16.mxu0 %v8251_v16  ;;  %v8303_v10 = vld [vmem:[%s11638_s1 + $0x788] ss:$16 sps:$4 sm:$0xff]  }
 0x1eb   : > { %5770 = vmatprep.subr.bf16.mxu1 %v8248_v49  ;;  %v8311_v49 = vld [vmem:[%s11638_s1 + $0x8ec] ss:$16 sps:$4 sm:$0xff]   ;;  %v8306_v16 = vld [vmem:[%s11638_s1 + $0x768] ss:$16 sps:$4 sm:$0xff]  }
 0x1ed   : > { %5804 = vmatpush1.bf16.msra.mxu0 %v8249_v18  ;;  %v8314_v18 = vld [vmem:[%s11638_s1 + $0x74c] ss:$16 sps:$4 sm:$0xff]  }
 0x1ee   : > { %5771 = vmatpush1.bf16.msra.mxu1 %v8246_v19  ;;  %5805 = vmatprep.subr.bf16.mxu0 %v8257_v5  ;;  %v8309_v19 = vld [vmem:[%s11638_s1 + $0x8e8] ss:$16 sps:$4 sm:$0xff]  }
 0x1ef   : > { %5772 = vmatprep.subr.bf16.mxu1 %v8254_v4  ;;  %v8317_v4 = vld [vmem:[%s11638_s1 + $0x8cc] ss:$16 sps:$4 sm:$0xff]  }
 0x1f1   : > { %5806 = vmatpush1.bf16.msra.mxu0 %v8255_v23 }
 0x1f2   : > { %5773 = vmatpush1.bf16.msra.mxu1 %v8252_v20  ;;  %5807 = vmatprep.subr.bf16.mxu0 %v8263_v0  ;;  %v8315_v0 = vld [vmem:[%s11638_s1 + $0x8c8] ss:$16 sps:$4 sm:$0xff]  }
 0x1f3   : > { %5774 = vmatprep.subr.bf16.mxu1 %v8260_v21  ;;  %v8312_v21 = vld [vmem:[%s11638_s1 + $0x748] ss:$16 sps:$4 sm:$0xff]  }
 0x1f5   : > { %5808 = vmatpush1.bf16.msra.mxu0 %v8261_v29 }
 0x1f6   : > { %5775 = vmatpush2.bf16.msra.mxu1 %v8258_v28  ;;  %5809 = vmatprep.subr.bf16.mxu0 %v8269_v34 }
 0x1f7   : > { %5776 = vmatprep.subr.bf16.mxu1 %v8266_v30 }
 0x1f9   : > { %5810 = vmatpush1.bf16.msra.mxu0 %v8267_v37 }
 0x1fa   : > { %5777 = vmatpush2.bf16.msra.mxu1 %v8264_v36  ;;  %5811 = vmatprep.subr.bf16.mxu0 %v8275_v32  ;;  %v8318_v32 = vld [vmem:[%s11638_s1 + $0x728] ss:$16 sps:$4 sm:$0xff]  }
 0x1fb   : > { %5778 = vmatprep.subr.bf16.mxu1 %v8272_v38 }
 0x1fd   : > { %5812 = vmatpush1.bf16.msra.mxu0 %v8273_v44 }
 0x1fe   : > { %5779 = vmatpush2.bf16.msra.mxu1 %v8270_v40  ;;  %5813 = vmatprep.subr.bf16.mxu0 %v8281_v48  ;;  %v8321_v40 = vld [vmem:[%s11638_s1 + $0x8a8] ss:$16 sps:$4 sm:$0xff]  }
 0x1ff   : > { %5780 = vmatprep.subr.bf16.mxu1 %v8278_v47  ;;  %v8324_v48 = vld [vmem:[%s11638_s1 + $0x708] ss:$16 sps:$4 sm:$0xff]  }
 0x201   : > { %5814 = vmatpush1.bf16.msra.mxu0 %v8279_v46  ;;  %v8332_v46 = vld [vmem:[%s11638_s1 + $0x86c] ss:$16 sps:$4 sm:$0xff]  }
 0x202   : > { %5781 = vmatpush2.bf16.msra.mxu1 %v8276_v13  ;;  %5815 = vmatprep.subr.bf16.mxu0 %v8287_v56  ;;  %v8327_v13 = vld [vmem:[%s11638_s1 + $0x888] ss:$16 sps:$4 sm:$0xff]  }
 0x203   : > { %5782 = vmatprep.subr.bf16.mxu1 %v8284_v51  ;;  %v8335_v51 = vld [vmem:[%s11638_s1 + $0xaec] ss:$16 sps:$4 sm:$0xff]   ;;  %v8330_v56 = vld [vmem:[%s11638_s1 + $0x868] ss:$16 sps:$4 sm:$0xff]  }
 0x205   : > { %5816 = vmatpush2.bf16.msra.mxu0 %v8285_v58  ;;  %v8338_v58 = vld [vmem:[%s11638_s1 + $0x84c] ss:$16 sps:$4 sm:$0xff]  }
 0x206   : > { %5783 = vmatpush2.bf16.msra.mxu1 %v8282_v55  ;;  %5817 = vmatprep.subr.bf16.mxu0 %v8293_v57  ;;  %v8333_v55 = vld [vmem:[%s11638_s1 + $0xae8] ss:$16 sps:$4 sm:$0xff]  }
 0x207   : > { %5784 = vmatprep.subr.bf16.mxu1 %v8290_v61  ;;  %v8341_v61 = vld [vmem:[%s11638_s1 + $0xacc] ss:$16 sps:$4 sm:$0xff]   ;;  %v8336_v57 = vld [vmem:[%s11638_s1 + $0x848] ss:$16 sps:$4 sm:$0xff]  }
 0x209   : > { %5818 = vmatpush2.bf16.msra.mxu0 %v8291_v17  ;;  %v8344_v17 = vld [vmem:[%s11638_s1 + $0x82c] ss:$16 sps:$4 sm:$0xff]  }
 0x20a   : > { %5785 = vmatpush2.bf16.msra.mxu1 %v8288_v62  ;;  %5819 = vmatprep.subr.bf16.mxu0 %v8299_v63  ;;  %v8339_v62 = vld [vmem:[%s11638_s1 + $0xac8] ss:$16 sps:$4 sm:$0xff]  }
 0x20b   : > { %5786 = vmatprep.subr.bf16.mxu1 %v8296_v60  ;;  %v8342_v60 = vld [vmem:[%s11638_s1 + $0x828] ss:$16 sps:$4 sm:$0xff]  }
 0x20c   : > { %v8345_v63 = vld [vmem:[%s11638_s1 + $0xaa8] ss:$16 sps:$4 sm:$0xff]  }
 0x20d   : > { %5820 = vmatpush2.bf16.msra.mxu0 %v8297_v3  ;;  %v8348_v3 = vld [vmem:[%s11638_s1 + $0x808] ss:$16 sps:$4 sm:$0xff]  }
 0x20e   : > { %5787 = vmatpush2.bf16.msra.mxu1 %v8294_v2  ;;  %5821 = vmatprep.subr.bf16.mxu0 %v8305_v7  ;;  %v8350_v2 = vld [vmem:[%s11638_s1 + $0x80c] ss:$16 sps:$4 sm:$0xff]  }
 0x20f   : > { %5788 = vmatprep.subr.bf16.mxu1 %v8302_v1  ;;  %v8351_v1 = vld [vmem:[%s11638_s1 + $0xa88] ss:$16 sps:$4 sm:$0xff]   ;;  %v8356_v7 = vld [vmem:[%s11638_s1 + $0x9ec] ss:$16 sps:$4 sm:$0xff]  }
 0x211   : > { %5822 = vmatpush2.bf16.msra.mxu0 %v8303_v10  ;;  %v8354_v10 = vld [vmem:[%s11638_s1 + $0x9e8] ss:$16 sps:$4 sm:$0xff]  }
 0x212   : > { %5789 = vmatpush2.bf16.msra.mxu1 %v8300_v8  ;;  %5823 = vmatprep.subr.bf16.mxu0 %v8308_v11  ;;  %v8359_v8 = vld [vmem:[%s11638_s1 + $0xa6c] ss:$16 sps:$4 sm:$0xff]   ;;  %v8357_v11 = vld [vmem:[%s11638_s1 + $0xa68] ss:$16 sps:$4 sm:$0xff]  }
 0x213   : > { %5840 = vmatprep.subr.bf16.mxu1 %v8311_v49  ;;  %v8362_v49 = vld [vmem:[%s11638_s1 + $0x9cc] ss:$16 sps:$4 sm:$0xff]  }
 0x214   : > { %v5505_v5 = vpop.f32.mrf.mxu0 }
 0x215   : > { %v5546_v20 = vpop.f32.mrf.mxu1  ;;  %5791 = vmatmul.mubr.bf16.vlgmr.msra.gmra.mxu1 %v9319_v26  ;;  %v5506_v23 = vadd.f32 %v5505_v5, %v10460_v45  ;;  %5824 = vmatpush2.bf16.msra.mxu0 %v8306_v16  ;;  %v8320_v26 = vld [vmem:[%s11638_s1 + $0x72c] ss:$16 sps:$4 sm:$0xff]  }
 0x216   : > { %5841 = vmatpush1.bf16.msra.mxu1 %v8309_v19  ;;  %v5507_v28 = vpop.f32.mrf.mxu0  ;;  %5825 = vmatprep.subr.bf16.mxu0 %v8314_v18  ;;  %v8323_v45 = vld [vmem:[%s11638_s1 + $0x8ac] ss:$16 sps:$4 sm:$0xff]   ;;  %v8360_v19 = vld [vmem:[%s11638_s1 + $0x9c8] ss:$16 sps:$4 sm:$0xff]  }
 0x217   : > { %v5548_v29 = vpop.f32.mrf.mxu1  ;;  %5842 = vmatprep.subr.bf16.mxu1 %v8317_v4  ;;  %v10662_v30 = vadd.f32 %v5546_v20, %v5506_v23  ;;  %v5508_v34 = vadd.f32 %v5507_v28, %v10470_v53  ;;  %5872 = vmatprep.mubr.bf16.mxu1 %v9370_v41  ;;  %v8326_v41 = vld [vmem:[%s11638_s1 + $0x70c] ss:$16 sps:$4 sm:$0xff]   ;;  %v8363_v18 = vld [vmem:[%s11638_s1 + $0xa48] ss:$16 sps:$4 sm:$0xff]  }
 0x218   : > { %v5509_v36 = vpop.f32.mrf.mxu0  ;;  %v8329_v53 = vld [vmem:[%s11638_s1 + $0x88c] ss:$16 sps:$4 sm:$0xff]   ;;  %v8366_v20 = vld [vmem:[%s11638_s1 + $0x9a8] ss:$16 sps:$4 sm:$0xff]  }
 0x219   : > { %v5550_v37 = vpop.f32.mrf.mxu1  ;;  %v10666_v38 = vadd.f32 %v5548_v29, %v5508_v34  ;;  %5826 = vmatpush2.bf16.msra.mxu0 %v8312_v21  ;;  %v8365_v16 = vld [vmem:[%s11638_s1 + $0xa4c] ss:$16 sps:$4 sm:$0xff]   ;;  %v8369_v23 = vld [vmem:[%s11638_s1 + $0xa28] ss:$16 sps:$4 sm:$0xff]  }
 0x21a   : > { %5843 = vmatpush1.bf16.msra.mxu1 %v8315_v0  ;;  %v5510_v44 = vpop.f32.mrf.mxu0  ;;  %5827 = vmatprep.subr.bf16.mxu0 %v8320_v26  ;;  %v8368_v4 = vld [vmem:[%s11638_s1 + $0x9ac] ss:$16 sps:$4 sm:$0xff]   ;;  %v8372_v28 = vld [vmem:[%s11638_s1 + $0x988] ss:$16 sps:$4 sm:$0xff]  }
 0x21b   : > { %v5551_v47 = vpop.f32.mrf.mxu1  ;;  %5844 = vmatprep.subr.bf16.mxu1 %v8323_v45  ;;  %v8371_v5 = vld [vmem:[%s11638_s1 + $0xa2c] ss:$16 sps:$4 sm:$0xff]   ;;  %v8375_v29 = vld [vmem:[%s11638_s1 + $0xa08] ss:$16 sps:$4 sm:$0xff]  }
 0x21c   : > { %v8374_v21 = vld [vmem:[%s11638_s1 + $0x98c] ss:$16 sps:$4 sm:$0xff]   ;;  %v8378_v34 = vld [vmem:[%s11638_s1 + $0x968] ss:$16 sps:$4 sm:$0xff]  }
 0x21d   : > { %5828 = vmatpush2.bf16.msra.mxu0 %v8318_v32  ;;  %v8377_v0 = vld [vmem:[%s11638_s1 + $0xa0c] ss:$16 sps:$4 sm:$0xff]   ;;  %v8381_v36 = vld [vmem:[%s11638_s1 + $0xbe8] ss:$16 sps:$4 sm:$0xff]  }
 0x21e   : > { %5845 = vmatpush1.bf16.msra.mxu1 %v8321_v40  ;;  %5829 = vmatprep.subr.bf16.mxu0 %v8326_v41  ;;  %v8380_v26 = vld [vmem:[%s11638_s1 + $0x96c] ss:$16 sps:$4 sm:$0xff]   ;;  %v8384_v40 = vld [vmem:[%s11638_s1 + $0x948] ss:$16 sps:$4 sm:$0xff]  }
 0x21f   : > { %5846 = vmatprep.subr.bf16.mxu1 %v8329_v53  ;;  %v8383_v45 = vld [vmem:[%s11638_s1 + $0xbec] ss:$16 sps:$4 sm:$0xff]   ;;  %v8387_v44 = vld [vmem:[%s11638_s1 + $0xbc8] ss:$16 sps:$4 sm:$0xff]  }
 0x220   : > { %v8386_v37 = vld [vmem:[%s11638_s1 + $0x94c] ss:$16 sps:$4 sm:$0xff]   ;;  %v8390_v53 = vld [vmem:[%s11638_s1 + $0x928] ss:$16 sps:$4 sm:$0xff]  }
 0x221   : > { %5830 = vmatpush2.bf16.msra.mxu0 %v8324_v48  ;;  %v8389_v32 = vld [vmem:[%s11638_s1 + $0xbcc] ss:$16 sps:$4 sm:$0xff]   ;;  %v8393_v48 = vld [vmem:[%s11638_s1 + $0xba8] ss:$16 sps:$4 sm:$0xff]  }
 0x222   : > { %5847 = vmatpush1.bf16.msra.mxu1 %v8327_v13  ;;  %5881 = vmatprep.subr.bf16.mxu0 %v8335_v51  ;;  %v8392_v47 = vld [vmem:[%s11638_s1 + $0x92c] ss:$16 sps:$4 sm:$0xff]   ;;  %v8396_v51 = vld [vmem:[%s11638_s1 + $0x908] ss:$16 sps:$4 sm:$0xff]  }
 0x223   : > { %5848 = vmatprep.subr.bf16.mxu1 %v8332_v46  ;;  %v8395_v41 = vld [vmem:[%s11638_s1 + $0xbac] ss:$16 sps:$4 sm:$0xff]  }
 0x224   : > { %5832 = vmatmul.mubr.bf16.vlgmr.msra.gmra.mxu0 %v9332_v6  ;;  %v8347_v6 = vld [vmem:[%s11638_s1 + $0xaac] ss:$16 sps:$4 sm:$0xff]  }
 0x225   : > { %5882 = vmatpush1.bf16.msra.mxu0 %v8333_v55  ;;  %5913 = vmatprep.mubr.bf16.mxu0 %v9375_v42  ;;  %v8353_v42 = vld [vmem:[%s11638_s1 + $0xa8c] ss:$16 sps:$4 sm:$0xff]  }
 0x226   : > { %5849 = vmatpush1.bf16.msra.mxu1 %v8330_v56  ;;  %5883 = vmatprep.subr.bf16.mxu0 %v8341_v61  ;;  %v8398_v13 = vld [vmem:[%s11638_s1 + $0x90c] ss:$16 sps:$4 sm:$0xff]   ;;  %v8399_v56 = vld [vmem:[%s11638_s1 + $0xb88] ss:$16 sps:$4 sm:$0xff]  }
 0x227   : > { %5850 = vmatprep.subr.bf16.mxu1 %v8338_v58  ;;  %v8401_v46 = vld [vmem:[%s11638_s1 + $0xb8c] ss:$16 sps:$4 sm:$0xff]   ;;  %v8402_v61 = vld [vmem:[%s11638_s1 + $0xb68] ss:$16 sps:$4 sm:$0xff]  }
 0x228   : > { %v8404_v55 = vld [vmem:[%s11638_s1 + $0xb6c] ss:$16 sps:$4 sm:$0xff]  }
 0x229   : > { %5884 = vmatpush1.bf16.msra.mxu0 %v8339_v62  ;;  %v8407_v58 = vld [vmem:[%s11638_s1 + $0xcec] ss:$16 sps:$4 sm:$0xff]  }
 0x22a   : > { %5851 = vmatpush1.bf16.msra.mxu1 %v8336_v57  ;;  %5885 = vmatprep.subr.bf16.mxu0 %v8347_v6  ;;  %v8405_v57 = vld [vmem:[%s11638_s1 + $0xce8] ss:$16 sps:$4 sm:$0xff]   ;;  %v8410_v62 = vld [vmem:[%s11638_s1 + $0xb4c] ss:$16 sps:$4 sm:$0xff]  }
 0x22b   : > { %5852 = vmatprep.subr.bf16.mxu1 %v8344_v17  ;;  %v8413_v17 = vld [vmem:[%s11638_s1 + $0xccc] ss:$16 sps:$4 sm:$0xff]  }
 0x22d   : > { %5886 = vmatpush1.bf16.msra.mxu0 %v8345_v63 }
 0x22e   : > { %5853 = vmatpush1.bf16.msra.mxu1 %v8342_v60  ;;  %5887 = vmatprep.subr.bf16.mxu0 %v8353_v42  ;;  %v8411_v42 = vld [vmem:[%s11638_s1 + $0xcc8] ss:$16 sps:$4 sm:$0xff]  }
 0x22f   : > { %5854 = vmatprep.subr.bf16.mxu1 %v8350_v2  ;;  %v8408_v2 = vld [vmem:[%s11638_s1 + $0xb48] ss:$16 sps:$4 sm:$0xff]  }
 0x231   : > { %5888 = vmatpush1.bf16.msra.mxu0 %v8351_v1 }
 0x232   : > { %5855 = vmatpush1.bf16.msra.mxu1 %v8348_v3  ;;  %5889 = vmatprep.subr.bf16.mxu0 %v8359_v8 }
 0x233   : > { %5856 = vmatprep.subr.bf16.mxu1 %v8356_v7 }
 0x235   : > { %5890 = vmatpush1.bf16.msra.mxu0 %v8357_v11 }
 0x236   : > { %5857 = vmatpush2.bf16.msra.mxu1 %v8354_v10  ;;  %5891 = vmatprep.subr.bf16.mxu0 %v8365_v16  ;;  %v8414_v16 = vld [vmem:[%s11638_s1 + $0xb28] ss:$16 sps:$4 sm:$0xff]  }
 0x237   : > { %5858 = vmatprep.subr.bf16.mxu1 %v8362_v49 }
 0x239   : > { %5892 = vmatpush1.bf16.msra.mxu0 %v8363_v18 }
 0x23a   : > { %5859 = vmatpush2.bf16.msra.mxu1 %v8360_v19  ;;  %5893 = vmatprep.subr.bf16.mxu0 %v8371_v5  ;;  %v8417_v19 = vld [vmem:[%s11638_s1 + $0xca8] ss:$16 sps:$4 sm:$0xff]  }
 0x23b   : > { %5860 = vmatprep.subr.bf16.mxu1 %v8368_v4  ;;  %v8420_v5 = vld [vmem:[%s11638_s1 + $0xb08] ss:$16 sps:$4 sm:$0xff]  }
 0x23d   : > { %5894 = vmatpush1.bf16.msra.mxu0 %v8369_v23  ;;  %v8428_v23 = vld [vmem:[%s11638_s1 + $0xc6c] ss:$16 sps:$4 sm:$0xff]  }
 0x23e   : > { %5861 = vmatpush2.bf16.msra.mxu1 %v8366_v20  ;;  %5895 = vmatprep.subr.bf16.mxu0 %v8377_v0  ;;  %v8423_v20 = vld [vmem:[%s11638_s1 + $0xc88] ss:$16 sps:$4 sm:$0xff]  }
 0x23f   : > { %5862 = vmatprep.subr.bf16.mxu1 %v8374_v21  ;;  %v8431_v21 = vld [vmem:[%s11638_s1 + $0xeec] ss:$16 sps:$4 sm:$0xff]   ;;  %v8426_v0 = vld [vmem:[%s11638_s1 + $0xc68] ss:$16 sps:$4 sm:$0xff]  }
 0x241   : > { %5896 = vmatpush1.bf16.msra.mxu0 %v8375_v29  ;;  %v8434_v29 = vld [vmem:[%s11638_s1 + $0xc4c] ss:$16 sps:$4 sm:$0xff]  }
 0x242   : > { %5863 = vmatpush2.bf16.msra.mxu1 %v8372_v28  ;;  %5897 = vmatprep.subr.bf16.mxu0 %v8383_v45  ;;  %v8429_v28 = vld [vmem:[%s11638_s1 + $0xee8] ss:$16 sps:$4 sm:$0xff]  }
 0x243   : > { %5864 = vmatprep.subr.bf16.mxu1 %v8380_v26  ;;  %v8437_v26 = vld [vmem:[%s11638_s1 + $0xecc] ss:$16 sps:$4 sm:$0xff]  }
 0x245   : > { %5898 = vmatpush2.bf16.msra.mxu0 %v8381_v36  ;;  %v8432_v36 = vld [vmem:[%s11638_s1 + $0xc48] ss:$16 sps:$4 sm:$0xff]  }
 0x246   : > { %5865 = vmatpush2.bf16.msra.mxu1 %v8378_v34  ;;  %5899 = vmatprep.subr.bf16.mxu0 %v8389_v32 }
 0x247   : > { %5866 = vmatprep.subr.bf16.mxu1 %v8386_v37  ;;  %v8435_v37 = vld [vmem:[%s11638_s1 + $0xec8] ss:$16 sps:$4 sm:$0xff]  }
 0x249   : > { %5900 = vmatpush2.bf16.msra.mxu0 %v8387_v44 }
 0x24a   : > { %5867 = vmatpush2.bf16.msra.mxu1 %v8384_v40  ;;  %5901 = vmatprep.subr.bf16.mxu0 %v8395_v41  ;;  %v8440_v40 = vld [vmem:[%s11638_s1 + $0xc2c] ss:$16 sps:$4 sm:$0xff]   ;;  %v8438_v41 = vld [vmem:[%s11638_s1 + $0xc28] ss:$16 sps:$4 sm:$0xff]  }
 0x24b   : > { %5868 = vmatprep.subr.bf16.mxu1 %v8392_v47 }
 0x24d   : > { %5902 = vmatpush2.bf16.msra.mxu0 %v8393_v48 }
 0x24e   : > { %5869 = vmatpush2.bf16.msra.mxu1 %v8390_v53  ;;  %5903 = vmatprep.subr.bf16.mxu0 %v8401_v46  ;;  %v8441_v53 = vld [vmem:[%s11638_s1 + $0xea8] ss:$16 sps:$4 sm:$0xff]  }
 0x24f   : > { %5870 = vmatprep.subr.bf16.mxu1 %v8398_v13  ;;  %v8446_v13 = vld [vmem:[%s11638_s1 + $0xc0c] ss:$16 sps:$4 sm:$0xff]   ;;  %v8444_v46 = vld [vmem:[%s11638_s1 + $0xc08] ss:$16 sps:$4 sm:$0xff]  }
 0x251   : > { %5904 = vmatpush2.bf16.msra.mxu0 %v8399_v56  ;;  %v8452_v56 = vld [vmem:[%s11638_s1 + $0xdec] ss:$16 sps:$4 sm:$0xff]  }
 0x252   : > { %5871 = vmatpush2.bf16.msra.mxu1 %v8396_v51  ;;  %5905 = vmatprep.subr.bf16.mxu0 %v8404_v55  ;;  %v8447_v51 = vld [vmem:[%s11638_s1 + $0xe88] ss:$16 sps:$4 sm:$0xff]   ;;  %v8455_v55 = vld [vmem:[%s11638_s1 + $0xe6c] ss:$16 sps:$4 sm:$0xff]  }
 0x253   : > { %5922 = vmatprep.subr.bf16.mxu1 %v8407_v58  ;;  %v8450_v58 = vld [vmem:[%s11638_s1 + $0xde8] ss:$16 sps:$4 sm:$0xff]  }
 0x254   : > { %v5587_v6 = vpop.f32.mrf.mxu0 }
 0x255   : > { %v5628_v60 = vpop.f32.mrf.mxu1  ;;  %5873 = vmatmul.mubr.bf16.vlgmr.msra.gmra.mxu1 %v9546_v50  ;;  %v5588_v63 = vadd.f32 %v5587_v6, %v10662_v30  ;;  %5906 = vmatpush2.bf16.msra.mxu0 %v8402_v61  ;;  %v8416_v50 = vld [vmem:[%s11638_s1 + $0xb2c] ss:$16 sps:$4 sm:$0xff]   ;;  %v8453_v61 = vld [vmem:[%s11638_s1 + $0xe68] ss:$16 sps:$4 sm:$0xff]  }
 0x256   : > { %5923 = vmatpush1.bf16.msra.mxu1 %v8405_v57  ;;  %v5589_v3 = vpop.f32.mrf.mxu0  ;;  %5907 = vmatprep.subr.bf16.mxu0 %v8410_v62  ;;  %v8419_v30 = vld [vmem:[%s11638_s1 + $0xcac] ss:$16 sps:$4 sm:$0xff]   ;;  %v8459_v6 = vld [vmem:[%s11638_s1 + $0xe48] ss:$16 sps:$4 sm:$0xff]  }
 0x257   : > { %v5630_v1 = vpop.f32.mrf.mxu1  ;;  %5924 = vmatprep.subr.bf16.mxu1 %v8413_v17  ;;  %v5629_v7 = vadd.f32 %v5628_v60, %v5588_v63  ;;  %v5590_v8 = vadd.f32 %v5589_v3, %v10666_v38  ;;  %5954 = vmatprep.mubr.bf16.mxu1 %v9558_v54  ;;  %v8422_v54 = vld [vmem:[%s11638_s1 + $0xb0c] ss:$16 sps:$4 sm:$0xff]   ;;  %v8456_v17 = vld [vmem:[%s11638_s1 + $0xdc8] ss:$16 sps:$4 sm:$0xff]  }
 0x258   : > { %v5591_v10 = vpop.f32.mrf.mxu0  ;;  %v8425_v38 = vld [vmem:[%s11638_s1 + $0xc8c] ss:$16 sps:$4 sm:$0xff]  }
 0x259   : > { %v5632_v11 = vpop.f32.mrf.mxu1  ;;  %v5631_v49 = vadd.f32 %v5630_v1, %v5590_v8  ;;  %5908 = vmatpush2.bf16.msra.mxu0 %v8408_v2  ;;  %v8458_v57 = vld [vmem:[%s11638_s1 + $0xdcc] ss:$16 sps:$4 sm:$0xff]   ;;  %v8462_v2 = vld [vmem:[%s11638_s1 + $0xda8] ss:$16 sps:$4 sm:$0xff]  }
 0x25a   : > { %5925 = vmatpush1.bf16.msra.mxu1 %v8411_v42  ;;  %v5592_v18 = vpop.f32.mrf.mxu0  ;;  %5909 = vmatprep.subr.bf16.mxu0 %v8416_v50  ;;  %v8461_v62 = vld [vmem:[%s11638_s1 + $0xe4c] ss:$16 sps:$4 sm:$0xff]   ;;  %v8465_v42 = vld [vmem:[%s11638_s1 + $0xe28] ss:$16 sps:$4 sm:$0xff]  }
 0x25b   : > { %v5633_v4 = vpop.f32.mrf.mxu1  ;;  %5926 = vmatprep.subr.bf16.mxu1 %v8419_v30  ;;  %v8464_v60 = vld [vmem:[%s11638_s1 + $0xdac] ss:$16 sps:$4 sm:$0xff]   ;;  %v8468_v50 = vld [vmem:[%s11638_s1 + $0xd88] ss:$16 sps:$4 sm:$0xff]  }
 0x25c   : > { %v8467_v63 = vld [vmem:[%s11638_s1 + $0xe2c] ss:$16 sps:$4 sm:$0xff]   ;;  %v8471_v30 = vld [vmem:[%s11638_s1 + $0xe08] ss:$16 sps:$4 sm:$0xff]  }
 0x25d   : > { %5910 = vmatpush2.bf16.msra.mxu0 %v8414_v16  ;;  %v8470_v3 = vld [vmem:[%s11638_s1 + $0xd8c] ss:$16 sps:$4 sm:$0xff]   ;;  %v8474_v10 = vld [vmem:[%s11638_s1 + $0xd68] ss:$16 sps:$4 sm:$0xff]  }
 0x25e   : > { %5927 = vmatpush1.bf16.msra.mxu1 %v8417_v19  ;;  %5911 = vmatprep.subr.bf16.mxu0 %v8422_v54  ;;  %v8473_v1 = vld [vmem:[%s11638_s1 + $0xe0c] ss:$16 sps:$4 sm:$0xff]   ;;  %v8477_v11 = vld [vmem:[%s11638_s1 + $0xfe8] ss:$16 sps:$4 sm:$0xff]  }
 0x25f   : > { %5928 = vmatprep.subr.bf16.mxu1 %v8425_v38  ;;  %v8479_v8 = vld [vmem:[%s11638_s1 + $0xfec] ss:$16 sps:$4 sm:$0xff]   ;;  %v8480_v19 = vld [vmem:[%s11638_s1 + $0xd48] ss:$16 sps:$4 sm:$0xff]  }
 0x260   : > { %v8485_v16 = vld [vmem:[%s11638_s1 + $0xfcc] ss:$16 sps:$4 sm:$0xff]   ;;  %v8483_v18 = vld [vmem:[%s11638_s1 + $0xfc8] ss:$16 sps:$4 sm:$0xff]  }
 0x261   : > { %5912 = vmatpush2.bf16.msra.mxu0 %v8420_v5  ;;  %v8488_v4 = vld [vmem:[%s11638_s1 + $0xd2c] ss:$16 sps:$4 sm:$0xff]   ;;  %v8486_v38 = vld [vmem:[%s11638_s1 + $0xd28] ss:$16 sps:$4 sm:$0xff]  }
 0x262   : > { %5929 = vmatpush1.bf16.msra.mxu1 %v8423_v20  ;;  %5963 = vmatprep.subr.bf16.mxu0 %v8431_v21  ;;  %v8491_v54 = vld [vmem:[%s11638_s1 + $0xfac] ss:$16 sps:$4 sm:$0xff]   ;;  %v8489_v5 = vld [vmem:[%s11638_s1 + $0xfa8] ss:$16 sps:$4 sm:$0xff]  }
 0x263   : > { %5930 = vmatprep.subr.bf16.mxu1 %v8428_v23  ;;  %v8494_v20 = vld [vmem:[%s11638_s1 + $0xd0c] ss:$16 sps:$4 sm:$0xff]   ;;  %v8492_v21 = vld [vmem:[%s11638_s1 + $0xd08] ss:$16 sps:$4 sm:$0xff]  }
 0x264   : > { %v5669_v45 = vpop.f32.mrf.mxu0  ;;  %5914 = vmatmul.mubr.bf16.vlgmr.msra.gmra.mxu0 %v9562_v35  ;;  %v8443_v35 = vld [vmem:[%s11638_s1 + $0xeac] ss:$16 sps:$4 sm:$0xff]  }
 0x265   : > { %v10903_v34 = vadd.f32 %v5669_v45, %v5629_v7  ;;  %5964 = vmatpush1.bf16.msra.mxu0 %v8429_v28  ;;  %5995 = vmatprep.mubr.bf16.mxu0 %v9578_v59  ;;  %v8449_v59 = vld [vmem:[%s11638_s1 + $0xe8c] ss:$16 sps:$4 sm:$0xff]   ;;  %v8501_v45 = vld [vmem:[%s11638_s1 + $0x10e8] ss:$16 sps:$4 sm:$0xff]  }
 0x266   : > { %5931 = vmatpush1.bf16.msra.mxu1 %v8426_v0  ;;  %v5671_v32 = vpop.f32.mrf.mxu0  ;;  %5965 = vmatprep.subr.bf16.mxu0 %v8437_v26  ;;  %v8476_v7 = vld [vmem:[%s11638_s1 + $0xd6c] ss:$16 sps:$4 sm:$0xff]   ;;  %v8495_v0 = vld [vmem:[%s11638_s1 + $0xf88] ss:$16 sps:$4 sm:$0xff]  }
 0x267   : > { %5932 = vmatprep.subr.bf16.mxu1 %v8434_v29  ;;  %v10917_v44 = vadd.f32 %v5671_v32, %v5631_v49  ;;  %v8482_v49 = vld [vmem:[%s11638_s1 + $0xd4c] ss:$16 sps:$4 sm:$0xff]   ;;  %v8498_v26 = vld [vmem:[%s11638_s1 + $0xf68] ss:$16 sps:$4 sm:$0xff]  }
 0x268   : > { %v5673_v47 = vpop.f32.mrf.mxu0  ;;  %v8497_v23 = vld [vmem:[%s11638_s1 + $0xf8c] ss:$16 sps:$4 sm:$0xff]  }
 0x269   : > { %5966 = vmatpush1.bf16.msra.mxu0 %v8435_v37  ;;  %v8500_v28 = vld [vmem:[%s11638_s1 + $0xf6c] ss:$16 sps:$4 sm:$0xff]  }
 0x26a   : > { %5933 = vmatpush1.bf16.msra.mxu1 %v8432_v36  ;;  %v5674_v48 = vpop.f32.mrf.mxu0  ;;  %5967 = vmatprep.subr.bf16.mxu0 %v8443_v35  ;;  %v8503_v29 = vld [vmem:[%s11638_s1 + $0x10ec] ss:$16 sps:$4 sm:$0xff]   ;;  %v8507_v35 = vld [vmem:[%s11638_s1 + $0x10c8] ss:$16 sps:$4 sm:$0xff]  }
 0x26b   : > { %5934 = vmatprep.subr.bf16.mxu1 %v8440_v40  ;;  %v8506_v36 = vld [vmem:[%s11638_s1 + $0xf4c] ss:$16 sps:$4 sm:$0xff]   ;;  %v8504_v40 = vld [vmem:[%s11638_s1 + $0xf48] ss:$16 sps:$4 sm:$0xff]  }
 0x26c   : > { %v8509_v37 = vld [vmem:[%s11638_s1 + $0x10cc] ss:$16 sps:$4 sm:$0xff]   ;;  %v8510_v48 = vld [vmem:[%s11638_s1 + $0xf28] ss:$16 sps:$4 sm:$0xff]  }
 0x26d   : > { %5968 = vmatpush1.bf16.msra.mxu0 %v8441_v53 }
 0x26e   : > { %5935 = vmatpush1.bf16.msra.mxu1 %v8438_v41  ;;  %5969 = vmatprep.subr.bf16.mxu0 %v8449_v59  ;;  %v8512_v41 = vld [vmem:[%s11638_s1 + $0xf2c] ss:$16 sps:$4 sm:$0xff]  }
 0x26f   : > { %5936 = vmatprep.subr.bf16.mxu1 %v8446_v13  ;;  %v8513_v13 = vld [vmem:[%s11638_s1 + $0x10a8] ss:$16 sps:$4 sm:$0xff]  }
 0x271   : > { %5970 = vmatpush1.bf16.msra.mxu0 %v8447_v51  ;;  %v5129_v51 = vsub.s32 2, %v9009_v43 }
 0x272   : > { %5937 = vmatpush1.bf16.msra.mxu1 %v8444_v46  ;;  %5971 = vmatprep.subr.bf16.mxu0 %v8455_v55  ;;  %v8518_v46 = vld [vmem:[%s11638_s1 + $0xf0c] ss:$16 sps:$4 sm:$0xff]   ;;  %v8516_v55 = vld [vmem:[%s11638_s1 + $0xf08] ss:$16 sps:$4 sm:$0xff]  }
 0x273   : > { %5938 = vmatprep.subr.bf16.mxu1 %v8452_v56  ;;  %v5133_v56 = vsub.s32 3, %v9009_v43  ;;  %v8527_v43 = vld [vmem:[%s11638_s1 + $0x12ec] ss:$16 sps:$4 sm:$0xff]  }
 0x275   : > { %5972 = vmatpush1.bf16.msra.mxu0 %v8453_v61  ;;  %v8524_v61 = vld [vmem:[%s11638_s1 + $0x106c] ss:$16 sps:$4 sm:$0xff]  }
 0x276   : > { %5939 = vmatpush2.bf16.msra.mxu1 %v8450_v58  ;;  %5973 = vmatprep.subr.bf16.mxu0 %v8461_v62  ;;  %v8519_v58 = vld [vmem:[%s11638_s1 + $0x1088] ss:$16 sps:$4 sm:$0xff]  }
 0x277   : > { %5940 = vmatprep.subr.bf16.mxu1 %v8458_v57  ;;  %v8746_v57 = vld [vmem:[%s11639_s2] sm:$0xf] }
 0x278   : > { %v5130_v62 = vrot.slane %v8746_v57, %v5129_v51  ;;  %v8579_v51 = vld [vmem:[%s11638_s1 + $0x13c8] ss:$16 sps:$4 sm:$0xff]  }
 0x279   : > { %5974 = vmatpush1.bf16.msra.mxu0 %v8459_v6  ;;  %v8522_v6 = vld [vmem:[%s11638_s1 + $0x1068] ss:$16 sps:$4 sm:$0xff]  }
 0x27a   : > { %5941 = vmatpush2.bf16.msra.mxu1 %v8456_v17  ;;  %5975 = vmatprep.subr.bf16.mxu0 %v8467_v63  ;;  %v5134_v17 = vrot.slane %v8746_v57, %v5133_v56  ;;  %v8530_v63 = vld [vmem:[%s11638_s1 + $0x104c] ss:$16 sps:$4 sm:$0xff]  }
 0x27b   : > { %5942 = vmatprep.subr.bf16.mxu1 %v8464_v60  ;;  %v8525_v60 = vld [vmem:[%s11638_s1 + $0x12e8] ss:$16 sps:$4 sm:$0xff]   ;;  %v8584_v56 = vld [vmem:[%s11638_s1 + $0x112c] ss:$16 sps:$4 sm:$0xff]  }
 0x27c   : > { %v8593_v57 = vld [vmem:[%s11638_s1 + $0x138c] ss:$16 sps:$4 sm:$0xff]  }
 0x27d   : > { %5976 = vmatpush1.bf16.msra.mxu0 %v8465_v42 }
 0x27e   : > { %5943 = vmatpush2.bf16.msra.mxu1 %v8462_v2  ;;  %5977 = vmatprep.subr.bf16.mxu0 %v8473_v1  ;;  %v8533_v2 = vld [vmem:[%s11638_s1 + $0x12cc] ss:$16 sps:$4 sm:$0xff]  }
 0x27f   : > { %5944 = vmatprep.subr.bf16.mxu1 %v8470_v3 }
 0x281   : > { %5978 = vmatpush1.bf16.msra.mxu0 %v8471_v30  ;;  %v8528_v30 = vld [vmem:[%s11638_s1 + $0x1048] ss:$16 sps:$4 sm:$0xff]  }
 0x282   : > { %5945 = vmatpush2.bf16.msra.mxu1 %v8468_v50  ;;  %5979 = vmatprep.subr.bf16.mxu0 %v8479_v8 }
 0x283   : > { %5946 = vmatprep.subr.bf16.mxu1 %v8476_v7  ;;  %v8531_v7 = vld [vmem:[%s11638_s1 + $0x12c8] ss:$16 sps:$4 sm:$0xff]  }
 0x285   : > { %5980 = vmatpush2.bf16.msra.mxu0 %v8477_v11 }
 0x286   : > { %5947 = vmatpush2.bf16.msra.mxu1 %v8474_v10  ;;  %5981 = vmatprep.subr.bf16.mxu0 %v8485_v16  ;;  %v8539_v10 = vld [vmem:[%s11638_s1 + $0x12ac] ss:$16 sps:$4 sm:$0xff]   ;;  %v8534_v16 = vld [vmem:[%s11638_s1 + $0x1028] ss:$16 sps:$4 sm:$0xff]  }
 0x287   : > { %5948 = vmatprep.subr.bf16.mxu1 %v8482_v49 }
 0x289   : > { %5982 = vmatpush2.bf16.msra.mxu0 %v8483_v18 }
 0x28a   : > { %5949 = vmatpush2.bf16.msra.mxu1 %v8480_v19  ;;  %5983 = vmatprep.subr.bf16.mxu0 %v8491_v54  ;;  %v8537_v19 = vld [vmem:[%s11638_s1 + $0x12a8] ss:$16 sps:$4 sm:$0xff]  }
 0x28b   : > { %5950 = vmatprep.subr.bf16.mxu1 %v8488_v4  ;;  %v8542_v4 = vld [vmem:[%s11638_s1 + $0x100c] ss:$16 sps:$4 sm:$0xff]   ;;  %v8540_v54 = vld [vmem:[%s11638_s1 + $0x1008] ss:$16 sps:$4 sm:$0xff]  }
 0x28d   : > { %5984 = vmatpush2.bf16.msra.mxu0 %v8489_v5  ;;  %v8548_v5 = vld [vmem:[%s11638_s1 + $0x11ec] ss:$16 sps:$4 sm:$0xff]  }
 0x28e   : > { %5951 = vmatpush2.bf16.msra.mxu1 %v8486_v38  ;;  %5985 = vmatprep.subr.bf16.mxu0 %v8497_v23  ;;  %v8543_v38 = vld [vmem:[%s11638_s1 + $0x1288] ss:$16 sps:$4 sm:$0xff]  }
 0x28f   : > { %5952 = vmatprep.subr.bf16.mxu1 %v8494_v20  ;;  %v8551_v20 = vld [vmem:[%s11638_s1 + $0x126c] ss:$16 sps:$4 sm:$0xff]   ;;  %v8546_v23 = vld [vmem:[%s11638_s1 + $0x11e8] ss:$16 sps:$4 sm:$0xff]  }
 0x291   : > { %5986 = vmatpush2.bf16.msra.mxu0 %v8495_v0  ;;  %v8554_v0 = vld [vmem:[%s11638_s1 + $0x11cc] ss:$16 sps:$4 sm:$0xff]  }
 0x292   : > { %5953 = vmatpush2.bf16.msra.mxu1 %v8492_v21  ;;  %5987 = vmatprep.subr.bf16.mxu0 %v8500_v28  ;;  %v8549_v21 = vld [vmem:[%s11638_s1 + $0x1268] ss:$16 sps:$4 sm:$0xff]   ;;  %v8557_v28 = vld [vmem:[%s11638_s1 + $0x124c] ss:$16 sps:$4 sm:$0xff]  }
 0x293   : > { %6004 = vmatprep.subr.bf16.mxu1 %v8503_v29  ;;  %v8552_v29 = vld [vmem:[%s11638_s1 + $0x11c8] ss:$16 sps:$4 sm:$0xff]  }
 0x295   : > { %v5710_v32 = vpop.f32.mrf.mxu1  ;;  %5955 = vmatmul.mubr.bf16.vlgmr.msra.gmra.mxu1 %v9772_v15  ;;  %5988 = vmatpush2.bf16.msra.mxu0 %v8498_v26  ;;  %v8515_v15 = vld [vmem:[%s11638_s1 + $0x10ac] ss:$16 sps:$4 sm:$0xff]   ;;  %v8555_v26 = vld [vmem:[%s11638_s1 + $0x1248] ss:$16 sps:$4 sm:$0xff]  }
 0x296   : > { %6005 = vmatpush1.bf16.msra.mxu1 %v8501_v45  ;;  %5989 = vmatprep.subr.bf16.mxu0 %v8506_v36  ;;  %v5711_v42 = vadd.f32 %v5710_v32, %v5130_v62  ;;  %v8560_v45 = vld [vmem:[%s11638_s1 + $0x11ac] ss:$16 sps:$4 sm:$0xff]   ;;  %v8561_v32 = vld [vmem:[%s11638_s1 + $0x1228] ss:$16 sps:$4 sm:$0xff]  }
 0x297   : > { %v5712_v47 = vpop.f32.mrf.mxu1  ;;  %6006 = vmatprep.subr.bf16.mxu1 %v8509_v37  ;;  %6036 = vmatprep.mubr.bf16.mxu1 %v9783_v22  ;;  %v8521_v22 = vld [vmem:[%s11638_s1 + $0x108c] ss:$16 sps:$4 sm:$0xff]   ;;  %v8558_v37 = vld [vmem:[%s11638_s1 + $0x11a8] ss:$16 sps:$4 sm:$0xff]  }
 0x298   : > { %v5713_v1 = vadd.f32 %v5712_v47, %v5134_v17  ;;  %v8563_v36 = vld [vmem:[%s11638_s1 + $0x122c] ss:$16 sps:$4 sm:$0xff]   ;;  %v8564_v47 = vld [vmem:[%s11638_s1 + $0x1188] ss:$16 sps:$4 sm:$0xff]  }
 0x299   : > { %v5714_v53 = vpop.f32.mrf.mxu1  ;;  %5990 = vmatpush2.bf16.msra.mxu0 %v8504_v40  ;;  %v8566_v40 = vld [vmem:[%s11638_s1 + $0x118c] ss:$16 sps:$4 sm:$0xff]   ;;  %v8588_v62 = vld [vmem:[%s11638_s1 + $0x1108] ss:$16 sps:$4 sm:$0xff]  }
 0x29a   : > { %6007 = vmatpush1.bf16.msra.mxu1 %v8507_v35  ;;  %5991 = vmatprep.subr.bf16.mxu0 %v8512_v41  ;;  %v8569_v35 = vld [vmem:[%s11638_s1 + $0x120c] ss:$16 sps:$4 sm:$0xff]   ;;  %v8567_v41 = vld [vmem:[%s11638_s1 + $0x1208] ss:$16 sps:$4 sm:$0xff]  }
 0x29b   : > { %v5715_v59 = vpop.f32.mrf.mxu1  ;;  %6008 = vmatprep.subr.bf16.mxu1 %v8515_v15  ;;  %v8572_v15 = vld [vmem:[%s11638_s1 + $0x116c] ss:$16 sps:$4 sm:$0xff]   ;;  %v8591_v17 = vld [vmem:[%s11638_s1 + $0x1388] ss:$16 sps:$4 sm:$0xff]  }
 0x29c   : > { %v8575_v53 = vld [vmem:[%s11638_s1 + $0x13ec] ss:$16 sps:$4 sm:$0xff]  }
 0x29d   : > { %5992 = vmatpush2.bf16.msra.mxu0 %v8510_v48  ;;  %v8570_v48 = vld [vmem:[%s11638_s1 + $0x1168] ss:$16 sps:$4 sm:$0xff]   ;;  %v8578_v59 = vld [vmem:[%s11638_s1 + $0x114c] ss:$16 sps:$4 sm:$0xff]  }
 0x29e   : > { %6009 = vmatpush1.bf16.msra.mxu1 %v8513_v13  ;;  %5993 = vmatprep.subr.bf16.mxu0 %v8518_v46  ;;  %v8573_v13 = vld [vmem:[%s11638_s1 + $0x13e8] ss:$16 sps:$4 sm:$0xff]   ;;  %v8581_v46 = vld [vmem:[%s11638_s1 + $0x13cc] ss:$16 sps:$4 sm:$0xff]  }
 0x29f   : > { %6010 = vmatprep.subr.bf16.mxu1 %v8521_v22  ;;  %v8576_v22 = vld [vmem:[%s11638_s1 + $0x1148] ss:$16 sps:$4 sm:$0xff]  }
 0x2a1   : > { %5994 = vmatpush2.bf16.msra.mxu0 %v8516_v55  ;;  %v8587_v55 = vld [vmem:[%s11638_s1 + $0x13ac] ss:$16 sps:$4 sm:$0xff]  }
 0x2a2   : > { %6011 = vmatpush1.bf16.msra.mxu1 %v8519_v58  ;;  %6045 = vmatprep.subr.bf16.mxu0 %v8527_v43  ;;  %v8582_v58 = vld [vmem:[%s11638_s1 + $0x1128] ss:$16 sps:$4 sm:$0xff]   ;;  %v8590_v43 = vld [vmem:[%s11638_s1 + $0x110c] ss:$16 sps:$4 sm:$0xff]  }
 0x2a3   : > { %6012 = vmatprep.subr.bf16.mxu1 %v8524_v61  ;;  %v8585_v61 = vld [vmem:[%s11638_s1 + $0x13a8] ss:$16 sps:$4 sm:$0xff]  }
 0x2a4   : > { %v5751_v3 = vpop.f32.mrf.mxu0  ;;  %5996 = vmatmul.mubr.bf16.vlgmr.msra.gmra.mxu0 %v9787_v39  ;;  %v8536_v39 = vld [vmem:[%s11638_s1 + $0x102c] ss:$16 sps:$4 sm:$0xff]  }
 0x2a5   : > { %v11108_v50 = vadd.f32 %v5751_v3, %v5711_v42  ;;  %6046 = vmatpush1.bf16.msra.mxu0 %v8525_v60  ;;  %6077 = vmatprep.mubr.bf16.mxu0 %v9803_v31  ;;  %v8545_v31 = vld [vmem:[%s11638_s1 + $0x128c] ss:$16 sps:$4 sm:$0xff]  }
 0x2a6   : > { %6013 = vmatpush1.bf16.msra.mxu1 %v8522_v6  ;;  %v5753_v8 = vpop.f32.mrf.mxu0  ;;  %6047 = vmatprep.subr.bf16.mxu0 %v8533_v2  ;;  %v8596_v6 = vld [vmem:[%s11638_s1 + $0x136c] ss:$16 sps:$4 sm:$0xff]   ;;  %v8597_v2 = vld [vmem:[%s11638_s1 + $0x14e8] ss:$16 sps:$4 sm:$0xff]  }
 0x2a7   : > { %6014 = vmatprep.subr.bf16.mxu1 %v8530_v63  ;;  %v11122_v11 = vadd.f32 %v5753_v8, %v5713_v1  ;;  %v8599_v60 = vld [vmem:[%s11638_s1 + $0x14ec] ss:$16 sps:$4 sm:$0xff]   ;;  %v8594_v63 = vld [vmem:[%s11638_s1 + $0x1368] ss:$16 sps:$4 sm:$0xff]  }
 0x2a8   : > { %v5755_v49 = vpop.f32.mrf.mxu0  ;;  %v8602_v42 = vld [vmem:[%s11638_s1 + $0x134c] ss:$16 sps:$4 sm:$0xff]   ;;  %v8603_v8 = vld [vmem:[%s11638_s1 + $0x14c8] ss:$16 sps:$4 sm:$0xff]  }
 0x2a9   : > { %6048 = vmatpush1.bf16.msra.mxu0 %v8531_v7  ;;  %v8605_v3 = vld [vmem:[%s11638_s1 + $0x14cc] ss:$16 sps:$4 sm:$0xff]   ;;  %v8600_v7 = vld [vmem:[%s11638_s1 + $0x1348] ss:$16 sps:$4 sm:$0xff]  }
 0x2aa   : > { %6015 = vmatpush1.bf16.msra.mxu1 %v8528_v30  ;;  %v5756_v18 = vpop.f32.mrf.mxu0  ;;  %6049 = vmatprep.subr.bf16.mxu0 %v8539_v10  ;;  %v8608_v10 = vld [vmem:[%s11638_s1 + $0x132c] ss:$16 sps:$4 sm:$0xff]  }
 0x2ab   : > { %6016 = vmatprep.subr.bf16.mxu1 %v8536_v39 }
 0x2ad   : > { %6050 = vmatpush1.bf16.msra.mxu0 %v8537_v19  ;;  %v8609_v19 = vld [vmem:[%s11638_s1 + $0x14a8] ss:$16 sps:$4 sm:$0xff]  }
 0x2ae   : > { %6017 = vmatpush1.bf16.msra.mxu1 %v8534_v16  ;;  %6051 = vmatprep.subr.bf16.mxu0 %v8545_v31  ;;  %v8606_v16 = vld [vmem:[%s11638_s1 + $0x1328] ss:$16 sps:$4 sm:$0xff]  }
 0x2af   : > { %6018 = vmatprep.subr.bf16.mxu1 %v8542_v4  ;;  %v8612_v4 = vld [vmem:[%s11638_s1 + $0x1308] ss:$16 sps:$4 sm:$0xff]  }
 0x2b0   : > { %v8615_v31 = vld [vmem:[%s11638_s1 + $0x1488] ss:$16 sps:$4 sm:$0xff]  }
 0x2b1   : > { %6052 = vmatpush1.bf16.msra.mxu0 %v8543_v38  ;;  %v8623_v38 = vld [vmem:[%s11638_s1 + $0x16ec] ss:$16 sps:$4 sm:$0xff]  }
 0x2b2   : > { %6019 = vmatpush1.bf16.msra.mxu1 %v8540_v54  ;;  %6053 = vmatprep.subr.bf16.mxu0 %v8551_v20  ;;  %v8620_v54 = vld [vmem:[%s11638_s1 + $0x146c] ss:$16 sps:$4 sm:$0xff]   ;;  %v8621_v20 = vld [vmem:[%s11638_s1 + $0x16e8] ss:$16 sps:$4 sm:$0xff]  }
 0x2b3   : > { %6020 = vmatprep.subr.bf16.mxu1 %v8548_v5  ;;  %v8618_v5 = vld [vmem:[%s11638_s1 + $0x1468] ss:$16 sps:$4 sm:$0xff]  }
 0x2b5   : > { %6054 = vmatpush1.bf16.msra.mxu0 %v8549_v21  ;;  %v8629_v21 = vld [vmem:[%s11638_s1 + $0x16cc] ss:$16 sps:$4 sm:$0xff]  }
 0x2b6   : > { %6021 = vmatpush2.bf16.msra.mxu1 %v8546_v23  ;;  %6055 = vmatprep.subr.bf16.mxu0 %v8557_v28  ;;  %v8626_v23 = vld [vmem:[%s11638_s1 + $0x144c] ss:$16 sps:$4 sm:$0xff]  }
 0x2b7   : > { %6022 = vmatprep.subr.bf16.mxu1 %v8554_v0 }
 0x2b9   : > { %6056 = vmatpush1.bf16.msra.mxu0 %v8555_v26  ;;  %v8627_v26 = vld [vmem:[%s11638_s1 + $0x16c8] ss:$16 sps:$4 sm:$0xff]  }
 0x2ba   : > { %6023 = vmatpush2.bf16.msra.mxu1 %v8552_v29  ;;  %6057 = vmatprep.subr.bf16.mxu0 %v8563_v36  ;;  %v8624_v29 = vld [vmem:[%s11638_s1 + $0x1448] ss:$16 sps:$4 sm:$0xff]   ;;  %v8632_v36 = vld [vmem:[%s11638_s1 + $0x142c] ss:$16 sps:$4 sm:$0xff]  }
 0x2bb   : > { %6024 = vmatprep.subr.bf16.mxu1 %v8560_v45 }
 0x2bd   : > { %6058 = vmatpush1.bf16.msra.mxu0 %v8561_v32 }
 0x2be   : > { %6025 = vmatpush2.bf16.msra.mxu1 %v8558_v37  ;;  %6059 = vmatprep.subr.bf16.mxu0 %v8569_v35  ;;  %v8633_v35 = vld [vmem:[%s11638_s1 + $0x16a8] ss:$16 sps:$4 sm:$0xff]  }
 0x2bf   : > { %6026 = vmatprep.subr.bf16.mxu1 %v8566_v40  ;;  %v8630_v40 = vld [vmem:[%s11638_s1 + $0x1428] ss:$16 sps:$4 sm:$0xff]  }
 0x2c1   : > { %6060 = vmatpush1.bf16.msra.mxu0 %v8567_v41  ;;  %v8638_v41 = vld [vmem:[%s11638_s1 + $0x140c] ss:$16 sps:$4 sm:$0xff]  }
 0x2c2   : > { %6027 = vmatpush2.bf16.msra.mxu1 %v8564_v47  ;;  %6061 = vmatprep.subr.bf16.mxu0 %v8575_v53  ;;  %v8639_v53 = vld [vmem:[%s11638_s1 + $0x1688] ss:$16 sps:$4 sm:$0xff]  }
 0x2c3   : > { %6028 = vmatprep.subr.bf16.mxu1 %v8572_v15  ;;  %v8636_v15 = vld [vmem:[%s11638_s1 + $0x1408] ss:$16 sps:$4 sm:$0xff]  }
 0x2c5   : > { %6062 = vmatpush2.bf16.msra.mxu0 %v8573_v13  ;;  %v8647_v13 = vld [vmem:[%s11638_s1 + $0x166c] ss:$16 sps:$4 sm:$0xff]  }
 0x2c6   : > { %6029 = vmatpush2.bf16.msra.mxu1 %v8570_v48  ;;  %6063 = vmatprep.subr.bf16.mxu0 %v8581_v46  ;;  %v8644_v48 = vld [vmem:[%s11638_s1 + $0x15ec] ss:$16 sps:$4 sm:$0xff]   ;;  %v8645_v46 = vld [vmem:[%s11638_s1 + $0x1668] ss:$16 sps:$4 sm:$0xff]  }
 0x2c7   : > { %6030 = vmatprep.subr.bf16.mxu1 %v8578_v59  ;;  %v8642_v59 = vld [vmem:[%s11638_s1 + $0x15e8] ss:$16 sps:$4 sm:$0xff]  }
 0x2c9   : > { %6064 = vmatpush2.bf16.msra.mxu0 %v8579_v51  ;;  %v8653_v51 = vld [vmem:[%s11638_s1 + $0x164c] ss:$16 sps:$4 sm:$0xff]  }
 0x2ca   : > { %6031 = vmatpush2.bf16.msra.mxu1 %v8576_v22  ;;  %6065 = vmatprep.subr.bf16.mxu0 %v8587_v55  ;;  %v8650_v22 = vld [vmem:[%s11638_s1 + $0x15cc] ss:$16 sps:$4 sm:$0xff]   ;;  %v8651_v55 = vld [vmem:[%s11638_s1 + $0x1648] ss:$16 sps:$4 sm:$0xff]  }
 0x2cb   : > { %6032 = vmatprep.subr.bf16.mxu1 %v8584_v56  ;;  %v8648_v56 = vld [vmem:[%s11638_s1 + $0x15c8] ss:$16 sps:$4 sm:$0xff]  }
 0x2cd   : > { %6066 = vmatpush2.bf16.msra.mxu0 %v8585_v61  ;;  %v8659_v61 = vld [vmem:[%s11638_s1 + $0x162c] ss:$16 sps:$4 sm:$0xff]  }
 0x2ce   : > { %6033 = vmatpush2.bf16.msra.mxu1 %v8582_v58  ;;  %6067 = vmatprep.subr.bf16.mxu0 %v8593_v57  ;;  %v8656_v58 = vld [vmem:[%s11638_s1 + $0x15ac] ss:$16 sps:$4 sm:$0xff]   ;;  %v8657_v57 = vld [vmem:[%s11638_s1 + $0x1628] ss:$16 sps:$4 sm:$0xff]  }
 0x2cf   : > { %6034 = vmatprep.subr.bf16.mxu1 %v8590_v43  ;;  %v8654_v43 = vld [vmem:[%s11638_s1 + $0x15a8] ss:$16 sps:$4 sm:$0xff]  }
 0x2d1   : > { %6068 = vmatpush2.bf16.msra.mxu0 %v8591_v17  ;;  %v8665_v17 = vld [vmem:[%s11638_s1 + $0x160c] ss:$16 sps:$4 sm:$0xff]  }
 0x2d2   : > { %6035 = vmatpush2.bf16.msra.mxu1 %v8588_v62  ;;  %6069 = vmatprep.subr.bf16.mxu0 %v8596_v6  ;;  %v8662_v62 = vld [vmem:[%s11638_s1 + $0x158c] ss:$16 sps:$4 sm:$0xff]   ;;  %v8660_v6 = vld [vmem:[%s11638_s1 + $0x1588] ss:$16 sps:$4 sm:$0xff]  }
 0x2d3   : > { %6086 = vmatprep.subr.bf16.mxu1 %v8599_v60  ;;  %v8663_v60 = vld [vmem:[%s11638_s1 + $0x1608] ss:$16 sps:$4 sm:$0xff]  }
 0x2d5   : > { %v5792_v1 = vpop.f32.mrf.mxu1  ;;  %6037 = vmatmul.mubr.bf16.vlgmr.msra.gmra.mxu1 %v9990_v12  ;;  %6070 = vmatpush2.bf16.msra.mxu0 %v8594_v63  ;;  %v8611_v12 = vld [vmem:[%s11638_s1 + $0x14ac] ss:$16 sps:$4 sm:$0xff]  }
 0x2d6   : > { %v5793_v30 = vadd.f32 %v5792_v1, %v11108_v50  ;;  %6087 = vmatpush1.bf16.msra.mxu1 %v8597_v2  ;;  %6071 = vmatprep.subr.bf16.mxu0 %v8602_v42  ;;  %v8668_v63 = vld [vmem:[%s11638_s1 + $0x156c] ss:$16 sps:$4 sm:$0xff]   ;;  %v8666_v42 = vld [vmem:[%s11638_s1 + $0x1568] ss:$16 sps:$4 sm:$0xff]  }
 0x2d7   : > { %v5794_v39 = vpop.f32.mrf.mxu1  ;;  %6088 = vmatprep.subr.bf16.mxu1 %v8605_v3  ;;  %6118 = vmatprep.mubr.bf16.mxu1 %v10011_v24  ;;  %v8617_v24 = vld [vmem:[%s11638_s1 + $0x148c] ss:$16 sps:$4 sm:$0xff]   ;;  %v8669_v3 = vld [vmem:[%s11638_s1 + $0x17e8] ss:$16 sps:$4 sm:$0xff]  }
 0x2d8   : > { %v5795_v50 = vadd.f32 %v5794_v39, %v11122_v11  ;;  %v8614_v11 = vld [vmem:[%s11638_s1 + $0x130c] ss:$16 sps:$4 sm:$0xff]  }
 0x2d9   : > { %v5796_v49 = vpop.f32.mrf.mxu1  ;;  %6072 = vmatpush2.bf16.msra.mxu0 %v8600_v7  ;;  %v8671_v2 = vld [vmem:[%s11638_s1 + $0x17ec] ss:$16 sps:$4 sm:$0xff]   ;;  %v8672_v7 = vld [vmem:[%s11638_s1 + $0x1548] ss:$16 sps:$4 sm:$0xff]  }
 0x2da   : > { %6089 = vmatpush1.bf16.msra.mxu1 %v8603_v8  ;;  %6073 = vmatprep.subr.bf16.mxu0 %v8608_v10  ;;  %v8674_v1 = vld [vmem:[%s11638_s1 + $0x154c] ss:$16 sps:$4 sm:$0xff]   ;;  %v8675_v8 = vld [vmem:[%s11638_s1 + $0x17c8] ss:$16 sps:$4 sm:$0xff]  }
 0x2db   : > { %v5797_v18 = vpop.f32.mrf.mxu1  ;;  %6090 = vmatprep.subr.bf16.mxu1 %v8611_v12  ;;  %v8680_v39 = vld [vmem:[%s11638_s1 + $0x152c] ss:$16 sps:$4 sm:$0xff]   ;;  %v8678_v12 = vld [vmem:[%s11638_s1 + $0x1528] ss:$16 sps:$4 sm:$0xff]  }
 0x2dc   : > { %v8683_v10 = vld [vmem:[%s11638_s1 + $0x17ac] ss:$16 sps:$4 sm:$0xff]   ;;  %v8687_v18 = vld [vmem:[%s11638_s1 + $0x1788] ss:$16 sps:$4 sm:$0xff]  }
 0x2dd   : > { %6074 = vmatpush2.bf16.msra.mxu0 %v8606_v16  ;;  %v8686_v49 = vld [vmem:[%s11638_s1 + $0x150c] ss:$16 sps:$4 sm:$0xff]  }
 0x2de   : > { %6091 = vmatpush1.bf16.msra.mxu1 %v8609_v19  ;;  %6075 = vmatprep.subr.bf16.mxu0 %v8614_v11  ;;  %v8689_v16 = vld [vmem:[%s11638_s1 + $0x178c] ss:$16 sps:$4 sm:$0xff]   ;;  %v8684_v19 = vld [vmem:[%s11638_s1 + $0x1508] ss:$16 sps:$4 sm:$0xff]  }
 0x2df   : > { %6092 = vmatprep.subr.bf16.mxu1 %v8617_v24  ;;  %v8692_v11 = vld [vmem:[%s11638_s1 + $0x176c] ss:$16 sps:$4 sm:$0xff]  }
 0x2e0   : > { %v8695_v24 = vld [vmem:[%s11638_s1 + $0x186c] ss:$16 sps:$4 sm:$0xff]  }
 0x2e1   : > { %6076 = vmatpush2.bf16.msra.mxu0 %v8612_v4  ;;  %v8690_v4 = vld [vmem:[%s11638_s1 + $0x1768] ss:$16 sps:$4 sm:$0xff]  }
 0x2e2   : > { %6093 = vmatpush1.bf16.msra.mxu1 %v8615_v31  ;;  %6127 = vmatprep.subr.bf16.mxu0 %v8623_v38  ;;  %v8693_v31 = vld [vmem:[%s11638_s1 + $0x1868] ss:$16 sps:$4 sm:$0xff]   ;;  %v8701_v38 = vld [vmem:[%s11638_s1 + $0x184c] ss:$16 sps:$4 sm:$0xff]  }
 0x2e3   : > { %6094 = vmatprep.subr.bf16.mxu1 %v8620_v54  ;;  %v8698_v54 = vld [vmem:[%s11638_s1 + $0x174c] ss:$16 sps:$4 sm:$0xff]  }
 0x2e4   : > { %v5833_v0 = vpop.f32.mrf.mxu0  ;;  %6078 = vmatmul.mubr.bf16.vlgmr.msra.gmra.mxu0 %v10015_v25  ;;  %v8635_v25 = vld [vmem:[%s11638_s1 + $0x16ac] ss:$16 sps:$4 sm:$0xff]  }
 0x2e5   : > { %v11310_v28 = vadd.f32 %v5833_v0, %v5793_v30  ;;  %6128 = vmatpush1.bf16.msra.mxu0 %v8621_v20  ;;  %6159 = vmatprep.mubr.bf16.mxu0 %v10031_v33  ;;  %v8641_v33 = vld [vmem:[%s11638_s1 + $0x168c] ss:$16 sps:$4 sm:$0xff]  }
 0x2e6   : > { %6095 = vmatpush1.bf16.msra.mxu1 %v8618_v5  ;;  %v5835_v45 = vpop.f32.mrf.mxu0  ;;  %6129 = vmatprep.subr.bf16.mxu0 %v8629_v21  ;;  %v8677_v30 = vld [vmem:[%s11638_s1 + $0x17cc] ss:$16 sps:$4 sm:$0xff]   ;;  %v8699_v21 = vld [vmem:[%s11638_s1 + $0x1848] ss:$16 sps:$4 sm:$0xff]  }
 0x2e7   : > { %6096 = vmatprep.subr.bf16.mxu1 %v8626_v23  ;;  %v11324_v37 = vadd.f32 %v5835_v45, %v5795_v50  ;;  %v8681_v50 = vld [vmem:[%s11638_s1 + $0x17a8] ss:$16 sps:$4 sm:$0xff]  }
 0x2e8   : > { %v5837_v32 = vpop.f32.mrf.mxu0  ;;  %v8696_v23 = vld [vmem:[%s11638_s1 + $0x1748] ss:$16 sps:$4 sm:$0xff]  }
 0x2e9   : > { %6130 = vmatpush1.bf16.msra.mxu0 %v8627_v26  ;;  %v8702_v45 = vld [vmem:[%s11638_s1 + $0x1728] ss:$16 sps:$4 sm:$0xff]  }
 0x2ea   : > { %6097 = vmatpush1.bf16.msra.mxu1 %v8624_v29  ;;  %v5838_v47 = vpop.f32.mrf.mxu0  ;;  %6131 = vmatprep.subr.bf16.mxu0 %v8635_v25  ;;  %v8704_v29 = vld [vmem:[%s11638_s1 + $0x172c] ss:$16 sps:$4 sm:$0xff]   ;;  %v8708_v32 = vld [vmem:[%s11638_s1 + $0x1708] ss:$16 sps:$4 sm:$0xff]  }
 0x2eb   : > { %6098 = vmatprep.subr.bf16.mxu1 %v8632_v36  ;;  %v8705_v36 = vld [vmem:[%s11638_s1 + $0x1828] ss:$16 sps:$4 sm:$0xff]   ;;  %v6210_v47 = vmax.f32 %v10917_v44, 0.0  ;;  %v8717_v44 = vld [vmem:[%s11640_s3 + $0x30] sm:$0xff]  }
 0x2ed   : > { %6132 = vmatpush1.bf16.msra.mxu0 %v8633_v35  ;;  %v8714_v35 = vld [vmem:[%s11640_s3 + $0x78] sm:$0xff]  }
 0x2ee   : > { %6099 = vmatpush1.bf16.msra.mxu1 %v8630_v40  ;;  %6133 = vmatprep.subr.bf16.mxu0 %v8641_v33  ;;  %v8711_v40 = vld [vmem:[%s11638_s1 + $0x1808] ss:$16 sps:$4 sm:$0xff]   ;;  %v8716_v33 = vld [vmem:[%s11640_s3 + $0x70] sm:$0xff]  }
 0x2ef   : > { %6100 = vmatprep.subr.bf16.mxu1 %v8638_v41  ;;  %v8715_v41 = vld [vmem:[%s11640_s3 + $0x38] sm:$0xff]  }
 0x2f1   : > { %6134 = vmatpush1.bf16.msra.mxu0 %v8639_v53 }
 0x2f2   : > { %6101 = vmatpush1.bf16.msra.mxu1 %v8636_v15  ;;  %6135 = vmatprep.subr.bf16.mxu0 %v8647_v13  ;;  %v6214_v15 = vpack.c.bf16 %v6210_v47, %v6210_v47 }
 0x2f3   : > { %6102 = vmatprep.subr.bf16.mxu1 %v8644_v48 }
 0x2f5   : > { %6136 = vmatpush1.bf16.msra.mxu0 %v8645_v46 }
 0x2f6   : > { %6103 = vmatpush2.bf16.msra.mxu1 %v8642_v59  ;;  %6137 = vmatprep.subr.bf16.mxu0 %v8653_v51  ;;  %v8718_v59 = vld [vmem:[%s11640_s3 + $0x68] sm:$0xff]   ;;  %v8720_v51 = vld [vmem:[%s11640_s3 + $0x60] sm:$0xff]  }
 0x2f7   : > { %6104 = vmatprep.subr.bf16.mxu1 %v8650_v22 }
 0x2f9   : > { %6138 = vmatpush1.bf16.msra.mxu0 %v8651_v55  ;;  %v8731_v55 = vld [vmem:[%s11640_s3 + $0xb8] sm:$0xff]  }
 0x2fa   : > { %6105 = vmatpush2.bf16.msra.mxu1 %v8648_v56  ;;  %6139 = vmatprep.subr.bf16.mxu0 %v8659_v61  ;;  %v8730_v56 = vld [vmem:[%s11640_s3 + $0xf8] sm:$0xff]  }
 0x2fb   : > { %6106 = vmatprep.subr.bf16.mxu1 %v8656_v58  ;;  %v8721_v58 = vld [vmem:[%s11640_s3 + $0x20] sm:$0xff]   ;;  %v8722_v61 = vld [vmem:[%s11640_s3 + $0x58] sm:$0xff]  }
 0x2fd   : > { %6140 = vmatpush1.bf16.msra.mxu0 %v8657_v57  ;;  %v8724_v57 = vld [vmem:[%s11640_s3 + $0x50] sm:$0xff]  }
 0x2fe   : > { %6107 = vmatpush2.bf16.msra.mxu1 %v8654_v43  ;;  %6141 = vmatprep.subr.bf16.mxu0 %v8665_v17  ;;  %v8723_v43 = vld [vmem:[%s11640_s3 + $0x18] sm:$0xff]   ;;  %v8726_v17 = vld [vmem:[%s11640_s3 + $0x48] sm:$0xff]  }
 0x2ff   : > { %6108 = vmatprep.subr.bf16.mxu1 %v8662_v62  ;;  %v8725_v62 = vld [vmem:[%s11640_s3 + $0x10] sm:$0xff]  }
 0x301   : > { %6142 = vmatpush1.bf16.msra.mxu0 %v8663_v60  ;;  %v8728_v60 = vld [vmem:[%s11640_s3 + $0x40] sm:$0xff]  }
 0x302   : > { %6109 = vmatpush2.bf16.msra.mxu1 %v8660_v6  ;;  %6143 = vmatprep.subr.bf16.mxu0 %v8671_v2  ;;  %v8727_v6 = vld [vmem:[%s11640_s3 + $0x8] sm:$0xff]   ;;  %v6209_v2 = vmax.f32 %v10903_v34, 0.0 }
 0x303   : > { %6110 = vmatprep.subr.bf16.mxu1 %v8668_v63  ;;  %v8729_v63 = vld [vmem:[%s11640_s3] sm:$0xff]   ;;  %v8734_v34 = vld [vmem:[%s11640_s3 + $0xe8] sm:$0xff]  }
 0x305   : > { %6144 = vmatpush2.bf16.msra.mxu0 %v8669_v3  ;;  %v8732_v3 = vld [vmem:[%s11640_s3 + $0xf0] sm:$0xff]  }
 0x306   : > { %6111 = vmatpush2.bf16.msra.mxu1 %v8666_v42  ;;  %6145 = vmatprep.subr.bf16.mxu0 %v8677_v30  ;;  %v6213_v42 = vpack.c.bf16 %v6209_v2, %v6209_v2 }
 0x307   : > { %6112 = vmatprep.subr.bf16.mxu1 %v8674_v1  ;;  %v8733_v1 = vld [vmem:[%s11640_s3 + $0xb0] sm:$0xff]  }
 0x309   : > { %6146 = vmatpush2.bf16.msra.mxu0 %v8675_v8 }
 0x30a   : > { %6113 = vmatpush2.bf16.msra.mxu1 %v8672_v7  ;;  %6147 = vmatprep.subr.bf16.mxu0 %v8683_v10  ;;  %v8735_v10 = vld [vmem:[%s11640_s3 + $0xa8] sm:$0xff]  }
 0x30b   : > { %6114 = vmatprep.subr.bf16.mxu1 %v8680_v39 }
 0x30d   : > { %6148 = vmatpush2.bf16.msra.mxu0 %v8681_v50 }
 0x30e   : > { %6115 = vmatpush2.bf16.msra.mxu1 %v8678_v12  ;;  %6149 = vmatprep.subr.bf16.mxu0 %v8689_v16  ;;  %v8737_v16 = vld [vmem:[%s11640_s3 + $0xa0] sm:$0xff]  }
 0x30f   : > { %6116 = vmatprep.subr.bf16.mxu1 %v8686_v49  ;;  %v8736_v49 = vld [vmem:[%s11640_s3 + $0xe0] sm:$0xff]  }
 0x311   : > { %6150 = vmatpush2.bf16.msra.mxu0 %v8687_v18  ;;  %v8739_v18 = vld [vmem:[%s11640_s3 + $0x98] sm:$0xff]  }
 0x312   : > { %6117 = vmatpush2.bf16.msra.mxu1 %v8684_v19  ;;  %6151 = vmatprep.subr.bf16.mxu0 %v8692_v11  ;;  %v8738_v19 = vld [vmem:[%s11640_s3 + $0xd8] sm:$0xff]   ;;  %v8740_v11 = vld [vmem:[%s11640_s3 + $0xd0] sm:$0xff]  }
 0x313   : > { %6176 = vmatprep.subr.bf16.mxu1 %v8695_v24  ;;  %v8741_v24 = vld [vmem:[%s11640_s3 + $0x90] sm:$0xff]  }
 0x315   : > { %v5874_v5 = vpop.f32.mrf.mxu1  ;;  %6119 = vmatmul.mubr.bf16.vlgmr.msra.gmra.mxu1 %v10207_v14  ;;  %6152 = vmatpush2.bf16.msra.mxu0 %v8690_v4  ;;  %v8707_v14 = vld [vmem:[%s11638_s1 + $0x182c] ss:$16 sps:$4 sm:$0xff]  }
 0x316   : > { %v5875_v20 = vadd.f32 %v5874_v5, %v11310_v28  ;;  %6177 = vmatpush1.bf16.msra.mxu1 %v8693_v31  ;;  %6153 = vmatprep.subr.bf16.mxu0 %v8698_v54 }
 0x317   : > { %v5876_v0 = vpop.f32.mrf.mxu1  ;;  %6178 = vmatprep.subr.bf16.mxu1 %v8701_v38  ;;  %6200 = vmatprep.mubr.bf16.mxu1 %v8810_v52  ;;  %v8713_v52 = vld [vmem:[%s11638_s1 + $0x180c] ss:$16 sps:$4 sm:$0xff]  }
 0x318   : > { %v5877_v28 = vadd.f32 %v5876_v0, %v11324_v37  ;;  %v8710_v37 = vld [vmem:[%s11638_s1 + $0x170c] ss:$16 sps:$4 sm:$0xff]   ;;  %v8744_v0 = vld [vmem:[%s11640_s3 + $0xc0] sm:$0xff]  }
 0x319   : > { %v5878_v26 = vpop.f32.mrf.mxu1  ;;  %6154 = vmatpush2.bf16.msra.mxu0 %v8696_v23  ;;  %v8742_v38 = vld [vmem:[%s11640_s3 + $0xc8] sm:$0xff]  }
 0x31a   : > { %6179 = vmatpush1.bf16.msra.mxu1 %v8699_v21  ;;  %6155 = vmatprep.subr.bf16.mxu0 %v8704_v29  ;;  %v8745_v29 = vld [vmem:[%s11640_s3 + $0x80] sm:$0xff]  }
 0x31b   : > { %v5879_v25 = vpop.f32.mrf.mxu1  ;;  %6180 = vmatprep.subr.bf16.mxu1 %v8707_v14 }
 0x31d   : > { %6156 = vmatpush2.bf16.msra.mxu0 %v8702_v45 }
 0x31e   : > { %6181 = vmatpush1.bf16.msra.mxu1 %v8705_v36  ;;  %6157 = vmatprep.subr.bf16.mxu0 %v8710_v37 }
 0x31f   : > { %6182 = vmatprep.subr.bf16.mxu1 %v8713_v52 }
 0x321   : > { %6158 = vmatpush2.bf16.msra.mxu0 %v8708_v32 }
 0x322   : > { %6183 = vmatpush1.bf16.msra.mxu1 %v8711_v40  ;;  %7449 = vmatprep.subr.bf16.mxu0 %v8714_v35 }
 0x323   : > { %7471 = vmatprep.subr.bf16.mxu1 %v8730_v56 }
 0x324   : > { %v5915_v53 = vpop.f32.mrf.mxu0  ;;  %6160 = vmatmul.mubr.bf16.vlgmr.msra.gmra.mxu0 %v10229_v27  ;;  %v8719_v27 = vld [vmem:[%s11640_s3 + $0x28] sm:$0xff]  }
 0x325   : > { %7413 = vmatmul.mubr.msk.bf16.vlgmr.msra.gmra.mxu1 %vm5139_vm0, %v10291_v9  ;;  %v5916_v48 = vadd.f32 %v5915_v53, %v5875_v20  ;;  %7450 = vmatpush3.bf16.msra.mxu0 %v8715_v41  ;;  %v8743_v20 = vld [vmem:[%s11640_s3 + $0x88] sm:$0xff]  }
 0x326   : > { %6506 = vmatprep.mubr.bf16.mxu0 %v6214_v15  ;;  %v5917_v13 = vpop.f32.mrf.mxu0  ;;  %7451 = vmatprep.subr.bf16.mxu0 %v8716_v33 }
 0x327   : > { %v5918_v46 = vadd.f32 %v5917_v13, %v5877_v28  ;;  %7472 = vmatpush3.bf16.msra.mxu1 %v8731_v55 }
 0x328   : > { %v5919_v22 = vpop.f32.mrf.mxu0  ;;  %7473 = vmatprep.subr.bf16.mxu1 %v8732_v3 }
 0x329   : > { %7452 = vmatpush3.bf16.msra.mxu0 %v8717_v44 }
 0x32a   : > { %v5920_v9 = vpop.f32.mrf.mxu0  ;;  %7453 = vmatprep.subr.bf16.mxu0 %v8718_v59 }
 0x32b   : > { %7474 = vmatpush3.bf16.msra.mxu1 %v8733_v1  ;;  %v6281_v1 = vld [vmem:[%s11641_s4] sm:$0x1] }
 0x32c   : > { %7475 = vmatprep.subr.bf16.mxu1 %v8734_v34 }
 0x32d   : > { %7454 = vmatpush3.bf16.msra.mxu0 %v8719_v27 }
 0x32e   : > { %7455 = vmatprep.subr.bf16.mxu0 %v8720_v51 }
 0x32f   : > { %7476 = vmatpush3.bf16.msra.mxu1 %v8735_v10 }
 0x330   : > { %7477 = vmatprep.subr.bf16.mxu1 %v8736_v49 }
 0x331   : > { %7456 = vmatpush3.bf16.msra.mxu0 %v8721_v58 }
 0x332   : > { %7457 = vmatprep.subr.bf16.mxu0 %v8722_v61 }
 0x333   : > { %7478 = vmatpush3.bf16.msra.mxu1 %v8737_v16 }
 0x334   : > { %7479 = vmatprep.subr.bf16.mxu1 %v8738_v19 }
 0x335   : > { %7458 = vmatpush3.bf16.msra.mxu0 %v8723_v43 }
 0x336   : > { %7459 = vmatprep.subr.bf16.mxu0 %v8724_v57 }
 0x337   : > { %7480 = vmatpush3.bf16.msra.mxu1 %v8739_v18 }
 0x338   : > { %7481 = vmatprep.subr.bf16.mxu1 %v8740_v11 }
 0x339   : > { %7460 = vmatpush3.bf16.msra.mxu0 %v8725_v62 }
 0x33a   : > { %7461 = vmatprep.subr.bf16.mxu0 %v8726_v17 }
 0x33b   : > { %7482 = vmatpush3.bf16.msra.mxu1 %v8741_v24 }
 0x33c   : > { %7483 = vmatprep.subr.bf16.mxu1 %v8742_v38 }
 0x33d   : > { %7462 = vmatpush3.bf16.msra.mxu0 %v8727_v6 }
 0x33e   : > { %7463 = vmatprep.subr.bf16.mxu0 %v8728_v60 }
 0x33f   : > { %7484 = vmatpush3.bf16.msra.mxu1 %v8743_v20 }
 0x340   : > { %7485 = vmatprep.subr.bf16.mxu1 %v8744_v0 }
 0x341   : > { %7464 = vmatpush3.bf16.msra.mxu0 %v8729_v63 }
 0x343   : > { %7486 = vmatpush3.bf16.msra.mxu1 %v8745_v29 }
 0x344   : > { %6507 = vmatmul.mubr.bf16.vlgmr.msra.gmra.mxu0 %v6213_v42 }
 0x355   : > { %v5956_v30 = vpop.f32.mrf.mxu1 }
 0x356   : > { %v5957_v7 = vadd.f32 %v5956_v30, %v5916_v48 }
 0x357   : > { %v5958_v8 = vpop.f32.mrf.mxu1 }
 0x358   : > { %v5959_v39 = vadd.f32 %v5958_v8, %v5918_v46 }
 0x359   : > { %v5960_v12 = vpop.f32.mrf.mxu1 }
 0x35b   : > { %v5961_v50 = vpop.f32.mrf.mxu1 }
 0x364   : > { %v5997_v4 = vpop.f32.mrf.mxu0 }
 0x365   : > { %v5998_v31 = vadd.f32 %v5997_v4, %v5957_v7 }
 0x366   : > { %v5999_v54 = vpop.f32.mrf.mxu0 }
 0x367   : > { %v6000_v5 = vadd.f32 %v5999_v54, %v5959_v39 }
 0x368   : > { %v6001_v23 = vpop.f32.mrf.mxu0 }
 0x36a   : > { %v6002_v21 = vpop.f32.mrf.mxu0 }
 0x395   : > { %v6038_v14 = vpop.f32.mrf.mxu1 }
 0x396   : > { %v6039_v28 = vadd.f32 %v6038_v14, %v5998_v31 }
 0x397   : > { %v6040_v26 = vpop.f32.mrf.mxu1 }
 0x398   : > { %v6041_v45 = vadd.f32 %v6040_v26, %v6000_v5 }
 0x399   : > { %v6042_v36 = vpop.f32.mrf.mxu1 }
 0x39b   : > { %v6043_v25 = vpop.f32.mrf.mxu1 }
 0x3a4   : > { %v6079_v37 = vpop.f32.mrf.mxu0 }
 0x3a5   : > { %v6080_v15 = vadd.f32 %v6079_v37, %v6039_v28 }
 0x3a6   : > { %v6081_v52 = vpop.f32.mrf.mxu0 }
 0x3a7   : > { %v6082_v53 = vadd.f32 %v6081_v52, %v6041_v45 }
 0x3a8   : > { %v6083_v32 = vpop.f32.mrf.mxu0 }
 0x3aa   : > { %v6084_v40 = vpop.f32.mrf.mxu0 }
 0x3d5   : > { %v6120_v35 = vpop.f32.mrf.mxu1 }
 0x3d6   : > { %v6121_v48 = vadd.f32 %v6120_v35, %v6080_v15 }
 0x3d7   : > { %v6122_v47 = vpop.f32.mrf.mxu1 }
 0x3d8   : > { %v6123_v59 = vadd.f32 %v6122_v47, %v6082_v53 }
 0x3d9   : > { %v6124_v41 = vpop.f32.mrf.mxu1 }
 0x3db   : > { %v6125_v33 = vpop.f32.mrf.mxu1 }
 0x3e4   : > { %v6161_v44 = vpop.f32.mrf.mxu0 }
 0x3e5   : > { %v6202_v13 = vpop.f32.mrf.mxu1  ;;  %v6162_v46 = vadd.f32 %v6161_v44, %v6121_v48 }
 0x3e6   : > { %v6163_v22 = vpop.f32.mrf.mxu0 }
 0x3e7   : > { %v6204_v27 = vpop.f32.mrf.mxu1  ;;  %v6203_v9 = vadd.f32 %v6202_v13, %v6162_v46  ;;  %v6164_v51 = vadd.f32 %v6163_v22, %v6123_v59 }
 0x3e8   : > { %v6165_v56 = vpop.f32.mrf.mxu0 }
 0x3e9   : > { %v6206_v55 = vpop.f32.mrf.mxu1  ;;  %v6205_v58 = vadd.f32 %v6204_v27, %v6164_v51  ;;  %v6211_v61 = vmax.f32 %v6203_v9, 0.0 }
 0x3ea   : > { %v6166_v43 = vpop.f32.mrf.mxu0 }
 0x3eb   : > { %v6207_v57 = vpop.f32.mrf.mxu1  ;;  %v6212_v62 = vmax.f32 %v6205_v58, 0.0  ;;  %v6215_v6 = vpack.c.bf16 %v6211_v61, %v6211_v61 }
 0x3ed   : > { %v6216_v17 = vpack.c.bf16 %v6212_v62, %v6212_v62 }
 0x3ef   : > { %6546 = vmatprep.mubr.bf16.mxu1 %v6216_v17 }
 0x3f0   : > { %6547 = vmatmul.mubr.bf16.vlgmr.msra.gmra.mxu1 %v6215_v6 }
 0x404   : > { %v7465_v60 = vpop.f32.mrf.mxu0 }
 0x406   : > { %v7466_v63 = vpop.f32.mrf.mxu0 }
 0x407   : > { %v7467_v2 = vadd.f32 %v7466_v63, %v7465_v60 }
 0x408   : > { %v7468_v42 = vpop.f32.mrf.mxu0 }
 0x409   : > { %v6509_v8 = vadd.f32 %v7467_v2, %v6281_v1 }
 0x40a   : > { %v7469_v3 = vpop.f32.mrf.mxu0 }
 0x4b0   : > { %v7487_v30 = vpop.f32.mrf.mxu1 }
 0x4b2   : > { %v7488_v7 = vpop.f32.mrf.mxu1 }
 0x4b3   : > { %v7489_v34 = vadd.f32 %v7488_v7, %v7487_v30 }
 0x4b4   : > { %v7490_v39 = vpop.f32.mrf.mxu1 }
 0x4b5   : > { %v6549_v10 = vadd.f32 %v7489_v34, %v6509_v8 }
 0x4b6   : > { %v7491_v12 = vpop.f32.mrf.mxu1 }
 0x4b7   : > { %6554 = vst [vmem:[%s214_s23] sm:$0x1] %v6549_v10 }
 0x4b8   : > { %8760 = shalt.err (!%p8757_p3)
}
 0x4b9   : > { %s8761_s10 = scalar_lea.hbm %s11602_s6, 16  ;;  %s8765_s13 = scalar_lea.hbm %s11642_s5, 32 }
 0x4ba   : > { %p8762_p4 = scmp.ne.s32.totalorder %s11602_s6, %s8761_s10  ;;  %p8766_p9 = scmp.lt.s32.totalorder %s11602_s6, %s11642_s5 }
 0x4bb   : > { %p8767_p10 = scmp.lt.s32.totalorder %s8765_s13, %s8761_s10 }
 0x4bc   : > { %p8763_p7 = pnand %p8762_p4, %p8880_p5 }
 0x4bd   : > { %p8768_p11 = por %p8767_p10, %p8766_p9 }
 0x4be   : > { %p8764_p8 = pneg %p8763_p7 }
 0x4c0   : > { %p8769_p12 = pnand %p8768_p11, %p8764_p8 }
 0x4c2   : > { %8772 = shalt.err (!%p8769_p12)
}
 0x4c3   : > { %7494 = dma.vmem_to_hbm [thread:$0]  (%p8880_p5), %s6569_s25, 16, %s11602_s6, %s6556_s7  }
 0x4c4 PF: > { %p7500_p13 = scmp.ge.s32.totalorder %s8807_s21, 2  ;;  %s6580_s16 = sand.u32 1, %s8795_s18  }
 0x4c5   : > { %s6581_s23 = scalar_lea.sflag [#allocation3], %s6580_s16 }
 0x4c6   : > { %p7497_p0 = pnand %p7500_p13, %p8884_p6 }
 0x4c8   : > { %p7498_p1 = pneg %p7497_p0 }
 0x4ca   : > { %8790 = dma.done.wait (%p7498_p1), %s6581_s23, 16  }
 0x4cb   : > { %8792 = vsyncadd (%p7498_p1), %s6581_s23, 4294967280  ;;  %p15_p2 = scmp.ge.s32.totalorder %s8867_s24, 4   ;;  %s11645_s18 = smov %s8799_s19 }
 0x4cc   : > { %s11646_s19 = smov %s8803_s20  ;;  %s11647_s20 = smov %s8878_s27 }
 0x4cd   : > { %s11648_s21 = smov %s8867_s24  ;;  %17 = sbr.rel (!%p15_p2) target bundleno = 3 (0x3), region = 75 }
 0x4d2   :  { %6585 = vsyncpa [#allocation3], 1 }
 0x4d3   :  { %6587 = vsyncpa [#allocation3 + $0x1], 1 }

</bundles_post_ra>
